<compile_context>
chip_gen: v5e
topology: v5e:2x2
jax: 0.10.0
libtpu: 0.0.40
codegen_flags: <defaults>
</compile_context>

<pallas_src>
import functools

import numpy as np
import jax
import jax.numpy as jnp
from jax.experimental import pallas as pl
from jax.experimental.pallas import tpu as pltpu


SLAB_W = 128  # lane width of the packed parameter slab


def init_params(key, neurons, dim_e, dim_c, dim_d, gcn_hidden):
    """torch.nn.Linear-style init; weights stored as (in, out) == torch_weight.T,
    already split / fused into the layout the kernel consumes."""
    params = {}
    keys = iter(jax.random.split(key, 64))

    def linear(fan_in, fan_out):
        kw, kb = jax.random.split(next(keys))
        bound = 1.0 / np.sqrt(fan_in)
        w = jax.random.uniform(kw, (fan_in, fan_out), jnp.float32, -bound, bound)
        b = jax.random.uniform(kb, (1, fan_out), jnp.float32, -bound, bound)
        return w, b

    de, dc, dd, N = dim_e, dim_c, dim_d, neurons

    # Two bidirectional encoders (shared-weight GRU cell per encoder).
    # mat_a: cat(x, h) -> cat(r, u); mat_b: cat(x, r*h) -> c.   Gates stay fused.
    for p in ("e1", "e2"):
        params[f"{p}_w_in"], params[f"{p}_b_in"] = linear(N, N)
        wa, ba = linear(de + 1, 2 * de)
        wb, bb = linear(de + 1, de)
        params[f"{p}_w_ru_x"], params[f"{p}_w_ru_h"], params[f"{p}_b_ru"] = wa[:1], wa[1:], ba
        params[f"{p}_w_c_x"], params[f"{p}_w_c_h"], params[f"{p}_b_c"] = wb[:1], wb[1:], bb

    # graph_gru_cell: mat_a (2N -> 2N), mat_b (2N -> N); kept whole (gates fused).
    params["g_wa"], params["g_ba"] = linear(2 * N, 2 * N)
    params["g_wb"], params["g_bb"] = linear(2 * N, N)

    # graph_rnn_gru_cell: mat_a (2de+dc -> 2dc), mat_b (2de+dc -> dc); kept whole.
    params["r_wa"], params["r_ba"] = linear(2 * de + dc, 2 * dc)
    params["r_wb"], params["r_bb"] = linear(2 * de + dc, dc)

    # w_mean / w_var fused into one (dc, 2dd) matmul.
    wm, bm = linear(dc, dd)
    wv, bv = linear(dc, dd)
    params["w_mv"] = jnp.concatenate([wm, wv], axis=1)
    params["b_mv"] = jnp.concatenate([bm, bv], axis=1)

    prev = dd
    for i, h in enumerate(gcn_hidden):
        params[f"gcn{i}_w"], params[f"gcn{i}_b"] = linear(prev, h)
        prev = h
    params["w_out"], params["b_out"] = linear(prev, 1)
    return params


def pack_params(params, noise1, noise2, noise3):
    """Pack every parameter/noise array into one (rows, 128) f32 slab.
    Returns (slab, layout) with layout[name] = (row_offset, nrows, ncols)."""
    entries = dict(params)
    entries["noise1"] = noise1
    entries["noise2"] = noise2
    entries["noise3"] = noise3

    layout = {}
    row = 0
    for name, a in entries.items():
        nr, nc = a.shape
        assert nc <= SLAB_W, (name, a.shape)
        layout[name] = (row, nr, nc)
        row += ((nr + 7) // 8) * 8            # keep every region sublane-aligned

    slab = jnp.zeros((row, SLAB_W), jnp.float32)
    for name, a in entries.items():
        r0, nr, nc = layout[name]
        slab = slab.at[r0:r0 + nr, :nc].set(jnp.asarray(a, jnp.float32))
    return slab, layout


def make_kernel(T, N, dim_e, dim_c, dim_d, n_gcn, layout):
    de, dc, dd = dim_e, dim_c, dim_d

    def kernel(x_ref, slab_ref, o_ref, f_scr, b_scr, pre_ru_scr, pre_c_scr):
        dot = functools.partial(jnp.dot, preferred_element_type=jnp.float32)
        sig = jax.nn.sigmoid

        def W(name):                          # static slab slice -> small VMEM load
            r0, nr, nc = layout[name]
            return slab_ref[r0:r0 + nr, 0:nc]

        x2d = x_ref[...]                      # (T, N) — this batch element

        # zero pads used by the decoder's time-lagged reads
        zeros_e = jnp.zeros((N, de), jnp.float32)
        f_scr[0] = zeros_e                    # f_scr[t+1] = fwd state at time t
        b_scr[T] = zeros_e                    # b_scr[t]   = bwd state at time t

        def run_encoder(p):
            xw = dot(x2d, W(f"{p}_w_in")) + W(f"{p}_b_in")                    # (T, N)
            # hoist the rank-1 x-gate terms out of the serial recurrence
            pre_ru_scr[...] = (xw[:, :, None] * W(f"{p}_w_ru_x").reshape(1, 1, 2 * de)
                               + W(f"{p}_b_ru").reshape(1, 1, 2 * de))
            pre_c_scr[...] = (xw[:, :, None] * W(f"{p}_w_c_x").reshape(1, 1, de)
                              + W(f"{p}_b_c").reshape(1, 1, de))

            def cell(t, h):                                                   # h: (N, de)
                ru = sig(pre_ru_scr[t] + dot(h, W(f"{p}_w_ru_h")))            # (N, 2de)
                r, u = ru[:, :de], ru[:, de:]
                c = jnp.tanh(pre_c_scr[t] + dot(r * h, W(f"{p}_w_c_h")))
                h = u * h + (1.0 - u) * c
                return jnp.clip(h, -10000.0, 10000.0)                         # clip_value = 1e4

            def fwd_body(t, h):
                h = cell(t, h)
                f_scr[t + 1] = h
                return h

            def bwd_body(i, h):
                t = T - 1 - i
                h = cell(t, h)
                b_scr[t] = h
                return h

            h_fwd = jax.lax.fori_loop(0, T, fwd_body, zeros_e)
            h_bwd = jax.lax.fori_loop(0, T, bwd_body, zeros_e)
            return h_fwd, h_bwd               # = fwd[-1], bwd[0]

        # ---- encoder 1: only its endpoints feed the initial graph probability ----
        f1_last, b1_first = run_encoder("e1")
        graph0 = sig(dot(f1_last, f1_last.T) + dot(b1_first, b1_first.T))     # (N, N)

        # ---- encoder 2: all hidden states consumed by the decoder (scratch reused) ----
        run_encoder("e2")

        def dec_body(t, carry):
            graph_state, rnn_state = carry
            f = f_scr[t]                       # fwd_2[t-1]  (zeros at t = 0)
            b = b_scr[t + 1]                   # bwd_2[t+1]  (zeros at t = T-1)

            sigma_t = sig(dot(f, f.T) + dot(b, b.T))                          # (N, N)

            # graph GRU (dense): one fused-gate matmul for r|u, one for c
            xh = jnp.concatenate([sigma_t, graph_state], axis=1)              # (N, 2N)
            ru = sig(dot(xh, W("g_wa")) + W("g_ba"))                          # (N, 2N)
            r, u = ru[:, :N], ru[:, N:]
            xrh = jnp.concatenate([sigma_t, r * graph_state], axis=1)
            c = jnp.tanh(dot(xrh, W("g_wb")) + W("g_bb"))
            graph_state = u * graph_state + (1.0 - u) * c

            # relaxed-Bernoulli adjacency sample (tau = 0.001) in logit form:
            # log(sigmoid(s)) - log(1 - sigmoid(s)) == s   (numerically safe)
            graph = sig((graph_state + W("noise1") - W("noise2")) / 0.001)    # (N, N)

            # graph-RNN GRU: [f|b|h] concatenated -> one graph matmul + one
            # fused-gate weight matmul for r|u (and likewise for c).
            xh2 = jnp.concatenate([f, b, rnn_state], axis=1)                  # (N, 2de+dc)
            gxh = dot(graph, xh2)
            ru2 = sig(dot(gxh, W("r_wa")) + W("r_ba"))                        # (N, 2dc)
            r2, u2 = ru2[:, :dc], ru2[:, dc:]
            xrh2 = jnp.concatenate([f, b, r2 * rnn_state], axis=1)
            gxrh = dot(graph, xrh2)
            c2 = jnp.tanh(dot(gxrh, W("r_wb")) + W("r_bb"))
            rnn_state = u2 * rnn_state + (1.0 - u2) * c2                      # (N, dc)

            # decode to log-rates
            mv = dot(rnn_state, W("w_mv")) + W("b_mv")                        # (N, 2dd)
            d_mean, d_log_var = mv[:, :dd], mv[:, dd:]
            xg = d_mean + jnp.exp(0.5 * d_log_var) * W("noise3")              # (N, dd)
            for i in range(n_gcn):
                xg = sig(dot(graph, dot(xg, W(f"gcn{i}_w")) + W(f"gcn{i}_b")))
            z = dot(xg, W("w_out")) + W("b_out")                              # (N, 1)
            # log(sigmoid(z)) computed stably from the pre-activation
            log_rate = jnp.minimum(z, 0.0) - jnp.log(1.0 + jnp.exp(-jnp.abs(z)))
            o_ref[pl.ds(t, 1), :] = log_rate.reshape(1, N)
            return graph_state, rnn_state

        rnn0 = jnp.zeros((N, dc), jnp.float32)
        jax.lax.fori_loop(0, T, dec_body, (graph0, rnn0))

    return kernel


def lfadsg_forward(x, slab, layout, *, dim_e, dim_c, dim_d, n_gcn):
    # TODO(synk): F.dropout(p=0.95) is applied as eval-mode identity; training-mode
    # dropout RNG has no deterministic Pallas equivalent matching torch.
    B, T, N = x.shape
    kernel = make_kernel(T, N, dim_e, dim_c, dim_d, n_gcn, layout)
    return pl.pallas_call(
        kernel,
        out_shape=jax.ShapeDtypeStruct((B, T, N), jnp.float32),
        grid_spec=pltpu.PrefetchScalarGridSpec(
            num_scalar_prefetch=0,
            grid=(B,),
            in_specs=[
                pl.BlockSpec((None, T, N), lambda b: (b, 0, 0)),   # one batch element
                pl.BlockSpec(slab.shape, lambda b: (0, 0)),        # whole param slab (1 DMA)
            ],
            out_specs=pl.BlockSpec((None, T, N), lambda b: (b, 0, 0)),
            scratch_shapes=[
                pltpu.VMEM((T + 1, N, dim_e), jnp.float32),        # encoder fwd states (+zero pad)
                pltpu.VMEM((T + 1, N, dim_e), jnp.float32),        # encoder bwd states (+zero pad)
                pltpu.VMEM((T, N, 2 * dim_e), jnp.float32),        # hoisted x-gate terms (r|u)
                pltpu.VMEM((T, N, dim_e), jnp.float32),            # hoisted x-gate terms (c)
            ],
        ),
        compiler_params=pltpu.CompilerParams(
            dimension_semantics=("parallel",),                     # shard batch across TCs on v7x
        ),
    )(x, slab)


if __name__ == "__main__":
    B, T, N = 2, 8, 16                 # batch, time, neurons
    dim_e, dim_c, dim_d = 8, 8, 8
    gcn_hidden = (16, 8)

    key = jax.random.PRNGKey(0)
    kx, kp, k1, k2, k3 = jax.random.split(key, 5)

    x = jax.random.normal(kx, (B, T, N), jnp.float32)
    params = init_params(kp, N, dim_e, dim_c, dim_d, gcn_hidden)

    def gumbel(k, shape):              # -log(-log(U)) as in update_noise()
        u = jax.random.uniform(k, shape, jnp.float32, 1e-6, 1.0 - 1e-6)
        return -jnp.log(-jnp.log(u))

    # Noise is drawn once per forward and shared across batch & timesteps,
    # matching update_noise() in the reference module.
    noise1 = gumbel(k1, (N, N))
    noise2 = gumbel(k2, (N, N))
    noise3 = gumbel(k3, (N, dim_d))

    slab, layout = pack_params(params, noise1, noise2, noise3)

    rates = lfadsg_forward(x, slab, layout, dim_e=dim_e, dim_c=dim_c, dim_d=dim_d,
                           n_gcn=len(gcn_hidden))
    jax.block_until_ready(rates)
    assert rates.shape == (B, T, N) and rates.dtype == jnp.float32
    print("KERNEL_OK")
</pallas_src>

<mosaic_0001>
module attributes {stable_mosaic.version = 11 : i64} {
  func.func @kernel(%arg0: i32, %arg1: memref<1x8x16xf32, #tpu.memory_space<vmem>>, %arg2: memref<408x128xf32, #tpu.memory_space<vmem>>, %arg3: memref<1x8x16xf32, #tpu.memory_space<vmem>>, %arg4: memref<9x16x8xf32, #tpu.memory_space<vmem>>, %arg5: memref<9x16x8xf32, #tpu.memory_space<vmem>>, %arg6: memref<8x16x16xf32, #tpu.memory_space<vmem>>, %arg7: memref<8x16x8xf32, #tpu.memory_space<vmem>>) attributes {dimension_semantics = [#tpu.dimension_semantics<parallel>], iteration_bounds = array<i64: 2>, scalar_prefetch = 0 : i64, scratch_operands = 4 : i64, tpu.core_type = #tpu.core_type<tc>, window_params = [{transform_indices = @transform_0, window_bounds = array<i64: 1, 8, 16>}, {pipeline_mode = #tpu.pipeline_mode<synchronous>, transform_indices = @transform_1, window_bounds = array<i64: 408, 128>}, {transform_indices = @transform_2, window_bounds = array<i64: 1, 8, 16>}]} {
    %c0 = arith.constant 0 : index
    %c0_0 = arith.constant 0 : index
    %c0_1 = arith.constant 0 : index
    %0 = vector.load %arg1[%c0, %c0_0, %c0_1] : memref<1x8x16xf32, #tpu.memory_space<vmem>>, vector<1x8x16xf32>
    %1 = vector.shape_cast %0 : vector<1x8x16xf32> to vector<8x16xf32>
    %cst = arith.constant 0.000000e+00 : f32
    %2 = vector.broadcast %cst : f32 to vector<16x8xf32>
    %c0_2 = arith.constant 0 : index
    %c0_3 = arith.constant 0 : index
    %c0_4 = arith.constant 0 : index
    %3 = vector.load %arg4[%c0_2, %c0_3, %c0_4] : memref<9x16x8xf32, #tpu.memory_space<vmem>>, vector<1x16x8xf32>
    %4 = vector.shape_cast %3 : vector<1x16x8xf32> to vector<16x8xf32>
    %5 = vector.shape_cast %2 : vector<16x8xf32> to vector<1x16x8xf32>
    tpu.vector_store %arg4[%c0_2, %c0_3, %c0_4], %5 {strides = array<i32>} : memref<9x16x8xf32, #tpu.memory_space<vmem>>, vector<1x16x8xf32>,
    %c8 = arith.constant 8 : index
    %c0_5 = arith.constant 0 : index
    %c0_6 = arith.constant 0 : index
    %6 = vector.load %arg5[%c8, %c0_5, %c0_6] : memref<9x16x8xf32, #tpu.memory_space<vmem>>, vector<1x16x8xf32>
    %7 = vector.shape_cast %6 : vector<1x16x8xf32> to vector<16x8xf32>
    %8 = vector.shape_cast %2 : vector<16x8xf32> to vector<1x16x8xf32>
    tpu.vector_store %arg5[%c8, %c0_5, %c0_6], %8 {strides = array<i32>} : memref<9x16x8xf32, #tpu.memory_space<vmem>>, vector<1x16x8xf32>,
    %c0_7 = arith.constant 0 : index
    %c0_8 = arith.constant 0 : index
    %9 = vector.load %arg2[%c0_7, %c0_8] : memref<408x128xf32, #tpu.memory_space<vmem>>, vector<16x16xf32>
    %cst_9 = arith.constant dense<0.000000e+00> : vector<8x16xf32>
    %10 = tpu.matmul %1, %9, %cst_9 {dimension_numbers = #tpu.dot_dimension_numbers<[1], [0], [0], [1], [0, 0, 1, 1], [], []>} : vector<8x16xf32>, vector<16x16xf32>, vector<8x16xf32> -> vector<8x16xf32>
    %c16 = arith.constant 16 : index
    %c0_10 = arith.constant 0 : index
    %11 = vector.load %arg2[%c16, %c0_10] : memref<408x128xf32, #tpu.memory_space<vmem>>, vector<1x16xf32>
    %12 = vector.broadcast %11 : vector<1x16xf32> to vector<8x16xf32>
    %13 = arith.addf %10, %12 : vector<8x16xf32>
    %14 = vector.shape_cast %13 : vector<8x16xf32> to vector<8x16x1xf32>
    %c24 = arith.constant 24 : index
    %c0_11 = arith.constant 0 : index
    %15 = vector.load %arg2[%c24, %c0_11] : memref<408x128xf32, #tpu.memory_space<vmem>>, vector<1x16xf32>
    %16 = vector.shape_cast %15 : vector<1x16xf32> to vector<1x1x16xf32>
    %17 = vector.broadcast %14 : vector<8x16x1xf32> to vector<8x16x16xf32>
    %18 = vector.broadcast %16 : vector<1x1x16xf32> to vector<8x16x16xf32>
    %19 = arith.mulf %17, %18 : vector<8x16x16xf32>
    %c40 = arith.constant 40 : index
    %c0_12 = arith.constant 0 : index
    %20 = vector.load %arg2[%c40, %c0_12] : memref<408x128xf32, #tpu.memory_space<vmem>>, vector<1x16xf32>
    %21 = vector.shape_cast %20 : vector<1x16xf32> to vector<1x1x16xf32>
    %22 = vector.broadcast %21 : vector<1x1x16xf32> to vector<8x16x16xf32>
    %23 = arith.addf %19, %22 : vector<8x16x16xf32>
    %c0_13 = arith.constant 0 : index
    %c0_14 = arith.constant 0 : index
    %c0_15 = arith.constant 0 : index
    %24 = vector.load %arg6[%c0_13, %c0_14, %c0_15] : memref<8x16x16xf32, #tpu.memory_space<vmem>>, vector<8x16x16xf32>
    tpu.vector_store %arg6[%c0_13, %c0_14, %c0_15], %23 {strides = array<i32>} : memref<8x16x16xf32, #tpu.memory_space<vmem>>, vector<8x16x16xf32>,
    %25 = vector.shape_cast %13 : vector<8x16xf32> to vector<8x16x1xf32>
    %c48 = arith.constant 48 : index
    %c0_16 = arith.constant 0 : index
    %26 = vector.load %arg2[%c48, %c0_16] : memref<408x128xf32, #tpu.memory_space<vmem>>, vector<1x8xf32>
    %27 = vector.shape_cast %26 : vector<1x8xf32> to vector<1x1x8xf32>
    %28 = vector.broadcast %25 : vector<8x16x1xf32> to vector<8x16x8xf32>
    %29 = vector.broadcast %27 : vector<1x1x8xf32> to vector<8x16x8xf32>
    %30 = arith.mulf %28, %29 : vector<8x16x8xf32>
    %c64 = arith.constant 64 : index
    %c0_17 = arith.constant 0 : index
    %31 = vector.load %arg2[%c64, %c0_17] : memref<408x128xf32, #tpu.memory_space<vmem>>, vector<1x8xf32>
    %32 = vector.shape_cast %31 : vector<1x8xf32> to vector<1x1x8xf32>
    %33 = vector.broadcast %32 : vector<1x1x8xf32> to vector<8x16x8xf32>
    %34 = arith.addf %30, %33 : vector<8x16x8xf32>
    %c0_18 = arith.constant 0 : index
    %c0_19 = arith.constant 0 : index
    %c0_20 = arith.constant 0 : index
    %35 = vector.load %arg7[%c0_18, %c0_19, %c0_20] : memref<8x16x8xf32, #tpu.memory_space<vmem>>, vector<8x16x8xf32>
    tpu.vector_store %arg7[%c0_18, %c0_19, %c0_20], %34 {strides = array<i32>} : memref<8x16x8xf32, #tpu.memory_space<vmem>>, vector<8x16x8xf32>,
    %c0_i32 = arith.constant 0 : i32
    %c8_i32 = arith.constant 8 : i32
    %36 = arith.addi %c0_i32, %c8_i32 : i32
    %c1_i32 = arith.constant 1 : i32
    %37 = scf.for %arg8 = %c0_i32 to %36 step %c1_i32 iter_args(%arg9 = %2) -> (vector<16x8xf32>)  : i32 {
      %84 = arith.index_cast %arg8 : i32 to index
      %c0_55 = arith.constant 0 : index
      %c0_56 = arith.constant 0 : index
      %85 = vector.load %arg6[%84, %c0_55, %c0_56] : memref<8x16x16xf32, #tpu.memory_space<vmem>>, vector<1x16x16xf32>
      %86 = vector.shape_cast %85 : vector<1x16x16xf32> to vector<16x16xf32>
      %c32 = arith.constant 32 : index
      %c0_57 = arith.constant 0 : index
      %87 = vector.load %arg2[%c32, %c0_57] : memref<408x128xf32, #tpu.memory_space<vmem>>, vector<8x16xf32>
      %cst_58 = arith.constant dense<0.000000e+00> : vector<16x16xf32>
      %88 = tpu.matmul %arg9, %87, %cst_58 {dimension_numbers = #tpu.dot_dimension_numbers<[1], [0], [0], [1], [0, 0, 1, 1], [], []>} : vector<16x8xf32>, vector<8x16xf32>, vector<16x16xf32> -> vector<16x16xf32>
      %89 = arith.addf %86, %88 : vector<16x16xf32>
      %90 = arith.negf %89 : vector<16x16xf32>
      %91 = math.exp %90 : vector<16x16xf32>
      %cst_59 = arith.constant 1.000000e+00 : f32
      %92 = vector.broadcast %cst_59 : f32 to vector<16x16xf32>
      %93 = arith.addf %92, %91 : vector<16x16xf32>
      %94 = arith.divf %92, %93 : vector<16x16xf32>
      %95 = vector.extract_strided_slice %94 {offsets = [0, 0], sizes = [16, 8], strides = [1, 1]} : vector<16x16xf32> to vector<16x8xf32>
      %96 = vector.extract_strided_slice %94 {offsets = [0, 8], sizes = [16, 8], strides = [1, 1]} : vector<16x16xf32> to vector<16x8xf32>
      %97 = arith.index_cast %arg8 : i32 to index
      %c0_60 = arith.constant 0 : index
      %c0_61 = arith.constant 0 : index
      %98 = vector.load %arg7[%97, %c0_60, %c0_61] : memref<8x16x8xf32, #tpu.memory_space<vmem>>, vector<1x16x8xf32>
      %99 = vector.shape_cast %98 : vector<1x16x8xf32> to vector<16x8xf32>
      %100 = arith.mulf %95, %arg9 : vector<16x8xf32>
      %c56 = arith.constant 56 : index
      %c0_62 = arith.constant 0 : index
      %101 = vector.load %arg2[%c56, %c0_62] : memref<408x128xf32, #tpu.memory_space<vmem>>, vector<8x8xf32>
      %cst_63 = arith.constant dense<0.000000e+00> : vector<16x8xf32>
      %102 = tpu.matmul %100, %101, %cst_63 {dimension_numbers = #tpu.dot_dimension_numbers<[1], [0], [0], [1], [0, 0, 1, 1], [], []>} : vector<16x8xf32>, vector<8x8xf32>, vector<16x8xf32> -> vector<16x8xf32>
      %103 = arith.addf %99, %102 : vector<16x8xf32>
      %104 = math.tanh %103 : vector<16x8xf32>
      %105 = arith.mulf %96, %arg9 : vector<16x8xf32>
      %cst_64 = arith.constant 1.000000e+00 : f32
      %106 = vector.broadcast %cst_64 : f32 to vector<16x8xf32>
      %107 = arith.subf %106, %96 : vector<16x8xf32>
      %108 = arith.mulf %107, %104 : vector<16x8xf32>
      %109 = arith.addf %105, %108 : vector<16x8xf32>
      %cst_65 = arith.constant -1.000000e+04 : f32
      %cst_66 = arith.constant 1.000000e+04 : f32
      %110 = vector.broadcast %cst_65 : f32 to vector<16x8xf32>
      %111 = arith.maximumf %110, %109 : vector<16x8xf32>
      %112 = vector.broadcast %cst_66 : f32 to vector<16x8xf32>
      %113 = arith.minimumf %112, %111 : vector<16x8xf32>
      %c1_i32_67 = arith.constant 1 : i32
      %114 = arith.addi %arg8, %c1_i32_67 : i32
      %115 = arith.index_cast %114 : i32 to index
      %c0_68 = arith.constant 0 : index
      %c0_69 = arith.constant 0 : index
      %116 = vector.load %arg4[%115, %c0_68, %c0_69] : memref<9x16x8xf32, #tpu.memory_space<vmem>>, vector<1x16x8xf32>
      %117 = vector.shape_cast %116 : vector<1x16x8xf32> to vector<16x8xf32>
      %118 = vector.shape_cast %113 : vector<16x8xf32> to vector<1x16x8xf32>
      tpu.vector_store %arg4[%115, %c0_68, %c0_69], %118 {strides = array<i32>} : memref<9x16x8xf32, #tpu.memory_space<vmem>>, vector<1x16x8xf32>,
      scf.yield %113 : vector<16x8xf32>
    }
    %c8_i32_21 = arith.constant 8 : i32
    %c0_i32_22 = arith.constant 0 : i32
    %c8_i32_23 = arith.constant 8 : i32
    %38 = arith.addi %c0_i32_22, %c8_i32_23 : i32
    %c1_i32_24 = arith.constant 1 : i32
    %39 = scf.for %arg8 = %c0_i32_22 to %38 step %c1_i32_24 iter_args(%arg9 = %2) -> (vector<16x8xf32>)  : i32 {
      %c7_i32 = arith.constant 7 : i32
      %84 = arith.subi %c7_i32, %arg8 : i32
      %85 = arith.index_cast %84 : i32 to index
      %c0_55 = arith.constant 0 : index
      %c0_56 = arith.constant 0 : index
      %86 = vector.load %arg6[%85, %c0_55, %c0_56] : memref<8x16x16xf32, #tpu.memory_space<vmem>>, vector<1x16x16xf32>
      %87 = vector.shape_cast %86 : vector<1x16x16xf32> to vector<16x16xf32>
      %c32 = arith.constant 32 : index
      %c0_57 = arith.constant 0 : index
      %88 = vector.load %arg2[%c32, %c0_57] : memref<408x128xf32, #tpu.memory_space<vmem>>, vector<8x16xf32>
      %cst_58 = arith.constant dense<0.000000e+00> : vector<16x16xf32>
      %89 = tpu.matmul %arg9, %88, %cst_58 {dimension_numbers = #tpu.dot_dimension_numbers<[1], [0], [0], [1], [0, 0, 1, 1], [], []>} : vector<16x8xf32>, vector<8x16xf32>, vector<16x16xf32> -> vector<16x16xf32>
      %90 = arith.addf %87, %89 : vector<16x16xf32>
      %91 = arith.negf %90 : vector<16x16xf32>
      %92 = math.exp %91 : vector<16x16xf32>
      %cst_59 = arith.constant 1.000000e+00 : f32
      %93 = vector.broadcast %cst_59 : f32 to vector<16x16xf32>
      %94 = arith.addf %93, %92 : vector<16x16xf32>
      %95 = arith.divf %93, %94 : vector<16x16xf32>
      %96 = vector.extract_strided_slice %95 {offsets = [0, 0], sizes = [16, 8], strides = [1, 1]} : vector<16x16xf32> to vector<16x8xf32>
      %97 = vector.extract_strided_slice %95 {offsets = [0, 8], sizes = [16, 8], strides = [1, 1]} : vector<16x16xf32> to vector<16x8xf32>
      %98 = arith.index_cast %84 : i32 to index
      %c0_60 = arith.constant 0 : index
      %c0_61 = arith.constant 0 : index
      %99 = vector.load %arg7[%98, %c0_60, %c0_61] : memref<8x16x8xf32, #tpu.memory_space<vmem>>, vector<1x16x8xf32>
      %100 = vector.shape_cast %99 : vector<1x16x8xf32> to vector<16x8xf32>
      %101 = arith.mulf %96, %arg9 : vector<16x8xf32>
      %c56 = arith.constant 56 : index
      %c0_62 = arith.constant 0 : index
      %102 = vector.load %arg2[%c56, %c0_62] : memref<408x128xf32, #tpu.memory_space<vmem>>, vector<8x8xf32>
      %cst_63 = arith.constant dense<0.000000e+00> : vector<16x8xf32>
      %103 = tpu.matmul %101, %102, %cst_63 {dimension_numbers = #tpu.dot_dimension_numbers<[1], [0], [0], [1], [0, 0, 1, 1], [], []>} : vector<16x8xf32>, vector<8x8xf32>, vector<16x8xf32> -> vector<16x8xf32>
      %104 = arith.addf %100, %103 : vector<16x8xf32>
      %105 = math.tanh %104 : vector<16x8xf32>
      %106 = arith.mulf %97, %arg9 : vector<16x8xf32>
      %cst_64 = arith.constant 1.000000e+00 : f32
      %107 = vector.broadcast %cst_64 : f32 to vector<16x8xf32>
      %108 = arith.subf %107, %97 : vector<16x8xf32>
      %109 = arith.mulf %108, %105 : vector<16x8xf32>
      %110 = arith.addf %106, %109 : vector<16x8xf32>
      %cst_65 = arith.constant -1.000000e+04 : f32
      %cst_66 = arith.constant 1.000000e+04 : f32
      %111 = vector.broadcast %cst_65 : f32 to vector<16x8xf32>
      %112 = arith.maximumf %111, %110 : vector<16x8xf32>
      %113 = vector.broadcast %cst_66 : f32 to vector<16x8xf32>
      %114 = arith.minimumf %113, %112 : vector<16x8xf32>
      %115 = arith.index_cast %84 : i32 to index
      %c0_67 = arith.constant 0 : index
      %c0_68 = arith.constant 0 : index
      %116 = vector.load %arg5[%115, %c0_67, %c0_68] : memref<9x16x8xf32, #tpu.memory_space<vmem>>, vector<1x16x8xf32>
      %117 = vector.shape_cast %116 : vector<1x16x8xf32> to vector<16x8xf32>
      %118 = vector.shape_cast %114 : vector<16x8xf32> to vector<1x16x8xf32>
      tpu.vector_store %arg5[%115, %c0_67, %c0_68], %118 {strides = array<i32>} : memref<9x16x8xf32, #tpu.memory_space<vmem>>, vector<1x16x8xf32>,
      scf.yield %114 : vector<16x8xf32>
    }
    %c8_i32_25 = arith.constant 8 : i32
    %40 = tpu.transpose %37, [1, 0] : vector<16x8xf32> -> vector<8x16xf32>
    %cst_26 = arith.constant dense<0.000000e+00> : vector<16x16xf32>
    %41 = tpu.matmul %37, %40, %cst_26 {dimension_numbers = #tpu.dot_dimension_numbers<[1], [0], [0], [1], [0, 0, 1, 1], [], []>} : vector<16x8xf32>, vector<8x16xf32>, vector<16x16xf32> -> vector<16x16xf32>
    %42 = tpu.transpose %39, [1, 0] : vector<16x8xf32> -> vector<8x16xf32>
    %cst_27 = arith.constant dense<0.000000e+00> : vector<16x16xf32>
    %43 = tpu.matmul %39, %42, %cst_27 {dimension_numbers = #tpu.dot_dimension_numbers<[1], [0], [0], [1], [0, 0, 1, 1], [], []>} : vector<16x8xf32>, vector<8x16xf32>, vector<16x16xf32> -> vector<16x16xf32>
    %44 = arith.addf %41, %43 : vector<16x16xf32>
    %45 = arith.negf %44 : vector<16x16xf32>
    %46 = math.exp %45 : vector<16x16xf32>
    %cst_28 = arith.constant 1.000000e+00 : f32
    %47 = vector.broadcast %cst_28 : f32 to vector<16x16xf32>
    %48 = arith.addf %47, %46 : vector<16x16xf32>
    %49 = arith.divf %47, %48 : vector<16x16xf32>
    %c72 = arith.constant 72 : index
    %c0_29 = arith.constant 0 : index
    %50 = vector.load %arg2[%c72, %c0_29] : memref<408x128xf32, #tpu.memory_space<vmem>>, vector<16x16xf32>
    %cst_30 = arith.constant dense<0.000000e+00> : vector<8x16xf32>
    %51 = tpu.matmul %1, %50, %cst_30 {dimension_numbers = #tpu.dot_dimension_numbers<[1], [0], [0], [1], [0, 0, 1, 1], [], []>} : vector<8x16xf32>, vector<16x16xf32>, vector<8x16xf32> -> vector<8x16xf32>
    %c88 = arith.constant 88 : index
    %c0_31 = arith.constant 0 : index
    %52 = vector.load %arg2[%c88, %c0_31] : memref<408x128xf32, #tpu.memory_space<vmem>>, vector<1x16xf32>
    %53 = vector.broadcast %52 : vector<1x16xf32> to vector<8x16xf32>
    %54 = arith.addf %51, %53 : vector<8x16xf32>
    %55 = vector.shape_cast %54 : vector<8x16xf32> to vector<8x16x1xf32>
    %c96 = arith.constant 96 : index
    %c0_32 = arith.constant 0 : index
    %56 = vector.load %arg2[%c96, %c0_32] : memref<408x128xf32, #tpu.memory_space<vmem>>, vector<1x16xf32>
    %57 = vector.shape_cast %56 : vector<1x16xf32> to vector<1x1x16xf32>
    %58 = vector.broadcast %55 : vector<8x16x1xf32> to vector<8x16x16xf32>
    %59 = vector.broadcast %57 : vector<1x1x16xf32> to vector<8x16x16xf32>
    %60 = arith.mulf %58, %59 : vector<8x16x16xf32>
    %c112 = arith.constant 112 : index
    %c0_33 = arith.constant 0 : index
    %61 = vector.load %arg2[%c112, %c0_33] : memref<408x128xf32, #tpu.memory_space<vmem>>, vector<1x16xf32>
    %62 = vector.shape_cast %61 : vector<1x16xf32> to vector<1x1x16xf32>
    %63 = vector.broadcast %62 : vector<1x1x16xf32> to vector<8x16x16xf32>
    %64 = arith.addf %60, %63 : vector<8x16x16xf32>
    %c0_34 = arith.constant 0 : index
    %c0_35 = arith.constant 0 : index
    %c0_36 = arith.constant 0 : index
    %65 = vector.load %arg6[%c0_34, %c0_35, %c0_36] : memref<8x16x16xf32, #tpu.memory_space<vmem>>, vector<8x16x16xf32>
    tpu.vector_store %arg6[%c0_34, %c0_35, %c0_36], %64 {strides = array<i32>} : memref<8x16x16xf32, #tpu.memory_space<vmem>>, vector<8x16x16xf32>,
    %66 = vector.shape_cast %54 : vector<8x16xf32> to vector<8x16x1xf32>
    %c120 = arith.constant 120 : index
    %c0_37 = arith.constant 0 : index
    %67 = vector.load %arg2[%c120, %c0_37] : memref<408x128xf32, #tpu.memory_space<vmem>>, vector<1x8xf32>
    %68 = vector.shape_cast %67 : vector<1x8xf32> to vector<1x1x8xf32>
    %69 = vector.broadcast %66 : vector<8x16x1xf32> to vector<8x16x8xf32>
    %70 = vector.broadcast %68 : vector<1x1x8xf32> to vector<8x16x8xf32>
    %71 = arith.mulf %69, %70 : vector<8x16x8xf32>
    %c136 = arith.constant 136 : index
    %c0_38 = arith.constant 0 : index
    %72 = vector.load %arg2[%c136, %c0_38] : memref<408x128xf32, #tpu.memory_space<vmem>>, vector<1x8xf32>
    %73 = vector.shape_cast %72 : vector<1x8xf32> to vector<1x1x8xf32>
    %74 = vector.broadcast %73 : vector<1x1x8xf32> to vector<8x16x8xf32>
    %75 = arith.addf %71, %74 : vector<8x16x8xf32>
    %c0_39 = arith.constant 0 : index
    %c0_40 = arith.constant 0 : index
    %c0_41 = arith.constant 0 : index
    %76 = vector.load %arg7[%c0_39, %c0_40, %c0_41] : memref<8x16x8xf32, #tpu.memory_space<vmem>>, vector<8x16x8xf32>
    tpu.vector_store %arg7[%c0_39, %c0_40, %c0_41], %75 {strides = array<i32>} : memref<8x16x8xf32, #tpu.memory_space<vmem>>, vector<8x16x8xf32>,
    %c0_i32_42 = arith.constant 0 : i32
    %c8_i32_43 = arith.constant 8 : i32
    %77 = arith.addi %c0_i32_42, %c8_i32_43 : i32
    %c1_i32_44 = arith.constant 1 : i32
    %78 = scf.for %arg8 = %c0_i32_42 to %77 step %c1_i32_44 iter_args(%arg9 = %2) -> (vector<16x8xf32>)  : i32 {
      %84 = arith.index_cast %arg8 : i32 to index
      %c0_55 = arith.constant 0 : index
      %c0_56 = arith.constant 0 : index
      %85 = vector.load %arg6[%84, %c0_55, %c0_56] : memref<8x16x16xf32, #tpu.memory_space<vmem>>, vector<1x16x16xf32>
      %86 = vector.shape_cast %85 : vector<1x16x16xf32> to vector<16x16xf32>
      %c104 = arith.constant 104 : index
      %c0_57 = arith.constant 0 : index
      %87 = vector.load %arg2[%c104, %c0_57] : memref<408x128xf32, #tpu.memory_space<vmem>>, vector<8x16xf32>
      %cst_58 = arith.constant dense<0.000000e+00> : vector<16x16xf32>
      %88 = tpu.matmul %arg9, %87, %cst_58 {dimension_numbers = #tpu.dot_dimension_numbers<[1], [0], [0], [1], [0, 0, 1, 1], [], []>} : vector<16x8xf32>, vector<8x16xf32>, vector<16x16xf32> -> vector<16x16xf32>
      %89 = arith.addf %86, %88 : vector<16x16xf32>
      %90 = arith.negf %89 : vector<16x16xf32>
      %91 = math.exp %90 : vector<16x16xf32>
      %cst_59 = arith.constant 1.000000e+00 : f32
      %92 = vector.broadcast %cst_59 : f32 to vector<16x16xf32>
      %93 = arith.addf %92, %91 : vector<16x16xf32>
      %94 = arith.divf %92, %93 : vector<16x16xf32>
      %95 = vector.extract_strided_slice %94 {offsets = [0, 0], sizes = [16, 8], strides = [1, 1]} : vector<16x16xf32> to vector<16x8xf32>
      %96 = vector.extract_strided_slice %94 {offsets = [0, 8], sizes = [16, 8], strides = [1, 1]} : vector<16x16xf32> to vector<16x8xf32>
      %97 = arith.index_cast %arg8 : i32 to index
      %c0_60 = arith.constant 0 : index
      %c0_61 = arith.constant 0 : index
      %98 = vector.load %arg7[%97, %c0_60, %c0_61] : memref<8x16x8xf32, #tpu.memory_space<vmem>>, vector<1x16x8xf32>
      %99 = vector.shape_cast %98 : vector<1x16x8xf32> to vector<16x8xf32>
      %100 = arith.mulf %95, %arg9 : vector<16x8xf32>
      %c128 = arith.constant 128 : index
      %c0_62 = arith.constant 0 : index
      %101 = vector.load %arg2[%c128, %c0_62] : memref<408x128xf32, #tpu.memory_space<vmem>>, vector<8x8xf32>
      %cst_63 = arith.constant dense<0.000000e+00> : vector<16x8xf32>
      %102 = tpu.matmul %100, %101, %cst_63 {dimension_numbers = #tpu.dot_dimension_numbers<[1], [0], [0], [1], [0, 0, 1, 1], [], []>} : vector<16x8xf32>, vector<8x8xf32>, vector<16x8xf32> -> vector<16x8xf32>
      %103 = arith.addf %99, %102 : vector<16x8xf32>
      %104 = math.tanh %103 : vector<16x8xf32>
      %105 = arith.mulf %96, %arg9 : vector<16x8xf32>
      %cst_64 = arith.constant 1.000000e+00 : f32
      %106 = vector.broadcast %cst_64 : f32 to vector<16x8xf32>
      %107 = arith.subf %106, %96 : vector<16x8xf32>
      %108 = arith.mulf %107, %104 : vector<16x8xf32>
      %109 = arith.addf %105, %108 : vector<16x8xf32>
      %cst_65 = arith.constant -1.000000e+04 : f32
      %cst_66 = arith.constant 1.000000e+04 : f32
      %110 = vector.broadcast %cst_65 : f32 to vector<16x8xf32>
      %111 = arith.maximumf %110, %109 : vector<16x8xf32>
      %112 = vector.broadcast %cst_66 : f32 to vector<16x8xf32>
      %113 = arith.minimumf %112, %111 : vector<16x8xf32>
      %c1_i32_67 = arith.constant 1 : i32
      %114 = arith.addi %arg8, %c1_i32_67 : i32
      %115 = arith.index_cast %114 : i32 to index
      %c0_68 = arith.constant 0 : index
      %c0_69 = arith.constant 0 : index
      %116 = vector.load %arg4[%115, %c0_68, %c0_69] : memref<9x16x8xf32, #tpu.memory_space<vmem>>, vector<1x16x8xf32>
      %117 = vector.shape_cast %116 : vector<1x16x8xf32> to vector<16x8xf32>
      %118 = vector.shape_cast %113 : vector<16x8xf32> to vector<1x16x8xf32>
      tpu.vector_store %arg4[%115, %c0_68, %c0_69], %118 {strides = array<i32>} : memref<9x16x8xf32, #tpu.memory_space<vmem>>, vector<1x16x8xf32>,
      scf.yield %113 : vector<16x8xf32>
    }
    %c8_i32_45 = arith.constant 8 : i32
    %c0_i32_46 = arith.constant 0 : i32
    %c8_i32_47 = arith.constant 8 : i32
    %79 = arith.addi %c0_i32_46, %c8_i32_47 : i32
    %c1_i32_48 = arith.constant 1 : i32
    %80 = scf.for %arg8 = %c0_i32_46 to %79 step %c1_i32_48 iter_args(%arg9 = %2) -> (vector<16x8xf32>)  : i32 {
      %c7_i32 = arith.constant 7 : i32
      %84 = arith.subi %c7_i32, %arg8 : i32
      %85 = arith.index_cast %84 : i32 to index
      %c0_55 = arith.constant 0 : index
      %c0_56 = arith.constant 0 : index
      %86 = vector.load %arg6[%85, %c0_55, %c0_56] : memref<8x16x16xf32, #tpu.memory_space<vmem>>, vector<1x16x16xf32>
      %87 = vector.shape_cast %86 : vector<1x16x16xf32> to vector<16x16xf32>
      %c104 = arith.constant 104 : index
      %c0_57 = arith.constant 0 : index
      %88 = vector.load %arg2[%c104, %c0_57] : memref<408x128xf32, #tpu.memory_space<vmem>>, vector<8x16xf32>
      %cst_58 = arith.constant dense<0.000000e+00> : vector<16x16xf32>
      %89 = tpu.matmul %arg9, %88, %cst_58 {dimension_numbers = #tpu.dot_dimension_numbers<[1], [0], [0], [1], [0, 0, 1, 1], [], []>} : vector<16x8xf32>, vector<8x16xf32>, vector<16x16xf32> -> vector<16x16xf32>
      %90 = arith.addf %87, %89 : vector<16x16xf32>
      %91 = arith.negf %90 : vector<16x16xf32>
      %92 = math.exp %91 : vector<16x16xf32>
      %cst_59 = arith.constant 1.000000e+00 : f32
      %93 = vector.broadcast %cst_59 : f32 to vector<16x16xf32>
      %94 = arith.addf %93, %92 : vector<16x16xf32>
      %95 = arith.divf %93, %94 : vector<16x16xf32>
      %96 = vector.extract_strided_slice %95 {offsets = [0, 0], sizes = [16, 8], strides = [1, 1]} : vector<16x16xf32> to vector<16x8xf32>
      %97 = vector.extract_strided_slice %95 {offsets = [0, 8], sizes = [16, 8], strides = [1, 1]} : vector<16x16xf32> to vector<16x8xf32>
      %98 = arith.index_cast %84 : i32 to index
      %c0_60 = arith.constant 0 : index
      %c0_61 = arith.constant 0 : index
      %99 = vector.load %arg7[%98, %c0_60, %c0_61] : memref<8x16x8xf32, #tpu.memory_space<vmem>>, vector<1x16x8xf32>
      %100 = vector.shape_cast %99 : vector<1x16x8xf32> to vector<16x8xf32>
      %101 = arith.mulf %96, %arg9 : vector<16x8xf32>
      %c128 = arith.constant 128 : index
      %c0_62 = arith.constant 0 : index
      %102 = vector.load %arg2[%c128, %c0_62] : memref<408x128xf32, #tpu.memory_space<vmem>>, vector<8x8xf32>
      %cst_63 = arith.constant dense<0.000000e+00> : vector<16x8xf32>
      %103 = tpu.matmul %101, %102, %cst_63 {dimension_numbers = #tpu.dot_dimension_numbers<[1], [0], [0], [1], [0, 0, 1, 1], [], []>} : vector<16x8xf32>, vector<8x8xf32>, vector<16x8xf32> -> vector<16x8xf32>
      %104 = arith.addf %100, %103 : vector<16x8xf32>
      %105 = math.tanh %104 : vector<16x8xf32>
      %106 = arith.mulf %97, %arg9 : vector<16x8xf32>
      %cst_64 = arith.constant 1.000000e+00 : f32
      %107 = vector.broadcast %cst_64 : f32 to vector<16x8xf32>
      %108 = arith.subf %107, %97 : vector<16x8xf32>
      %109 = arith.mulf %108, %105 : vector<16x8xf32>
      %110 = arith.addf %106, %109 : vector<16x8xf32>
      %cst_65 = arith.constant -1.000000e+04 : f32
      %cst_66 = arith.constant 1.000000e+04 : f32
      %111 = vector.broadcast %cst_65 : f32 to vector<16x8xf32>
      %112 = arith.maximumf %111, %110 : vector<16x8xf32>
      %113 = vector.broadcast %cst_66 : f32 to vector<16x8xf32>
      %114 = arith.minimumf %113, %112 : vector<16x8xf32>
      %115 = arith.index_cast %84 : i32 to index
      %c0_67 = arith.constant 0 : index
      %c0_68 = arith.constant 0 : index
      %116 = vector.load %arg5[%115, %c0_67, %c0_68] : memref<9x16x8xf32, #tpu.memory_space<vmem>>, vector<1x16x8xf32>
      %117 = vector.shape_cast %116 : vector<1x16x8xf32> to vector<16x8xf32>
      %118 = vector.shape_cast %114 : vector<16x8xf32> to vector<1x16x8xf32>
      tpu.vector_store %arg5[%115, %c0_67, %c0_68], %118 {strides = array<i32>} : memref<9x16x8xf32, #tpu.memory_space<vmem>>, vector<1x16x8xf32>,
      scf.yield %114 : vector<16x8xf32>
    }
    %c8_i32_49 = arith.constant 8 : i32
    %cst_50 = arith.constant 0.000000e+00 : f32
    %81 = vector.broadcast %cst_50 : f32 to vector<16x8xf32>
    %c0_i32_51 = arith.constant 0 : i32
    %c8_i32_52 = arith.constant 8 : i32
    %82 = arith.addi %c0_i32_51, %c8_i32_52 : i32
    %c1_i32_53 = arith.constant 1 : i32
    %83:2 = scf.for %arg8 = %c0_i32_51 to %82 step %c1_i32_53 iter_args(%arg9 = %49, %arg10 = %81) -> (vector<16x16xf32>, vector<16x8xf32>)  : i32 {
      %84 = arith.index_cast %arg8 : i32 to index
      %c0_55 = arith.constant 0 : index
      %c0_56 = arith.constant 0 : index
      %85 = vector.load %arg4[%84, %c0_55, %c0_56] : memref<9x16x8xf32, #tpu.memory_space<vmem>>, vector<1x16x8xf32>
      %86 = vector.shape_cast %85 : vector<1x16x8xf32> to vector<16x8xf32>
      %c1_i32_57 = arith.constant 1 : i32
      %87 = arith.addi %arg8, %c1_i32_57 : i32
      %88 = arith.index_cast %87 : i32 to index
      %c0_58 = arith.constant 0 : index
      %c0_59 = arith.constant 0 : index
      %89 = vector.load %arg5[%88, %c0_58, %c0_59] : memref<9x16x8xf32, #tpu.memory_space<vmem>>, vector<1x16x8xf32>
      %90 = vector.shape_cast %89 : vector<1x16x8xf32> to vector<16x8xf32>
      %91 = tpu.transpose %86, [1, 0] : vector<16x8xf32> -> vector<8x16xf32>
      %cst_60 = arith.constant dense<0.000000e+00> : vector<16x16xf32>
      %92 = tpu.matmul %86, %91, %cst_60 {dimension_numbers = #tpu.dot_dimension_numbers<[1], [0], [0], [1], [0, 0, 1, 1], [], []>} : vector<16x8xf32>, vector<8x16xf32>, vector<16x16xf32> -> vector<16x16xf32>
      %93 = tpu.transpose %90, [1, 0] : vector<16x8xf32> -> vector<8x16xf32>
      %cst_61 = arith.constant dense<0.000000e+00> : vector<16x16xf32>
      %94 = tpu.matmul %90, %93, %cst_61 {dimension_numbers = #tpu.dot_dimension_numbers<[1], [0], [0], [1], [0, 0, 1, 1], [], []>} : vector<16x8xf32>, vector<8x16xf32>, vector<16x16xf32> -> vector<16x16xf32>
      %95 = arith.addf %92, %94 : vector<16x16xf32>
      %96 = arith.negf %95 : vector<16x16xf32>
      %97 = math.exp %96 : vector<16x16xf32>
      %cst_62 = arith.constant 1.000000e+00 : f32
      %98 = vector.broadcast %cst_62 : f32 to vector<16x16xf32>
      %99 = arith.addf %98, %97 : vector<16x16xf32>
      %100 = arith.divf %98, %99 : vector<16x16xf32>
      %101 = tpu.concatenate %100, %arg9 in 1 : vector<16x16xf32>, vector<16x16xf32> -> vector<16x32xf32>
      %c144 = arith.constant 144 : index
      %c0_63 = arith.constant 0 : index
      %102 = vector.load %arg2[%c144, %c0_63] : memref<408x128xf32, #tpu.memory_space<vmem>>, vector<32x32xf32>
      %cst_64 = arith.constant dense<0.000000e+00> : vector<16x32xf32>
      %103 = tpu.matmul %101, %102, %cst_64 {dimension_numbers = #tpu.dot_dimension_numbers<[1], [0], [0], [1], [0, 0, 1, 1], [], []>} : vector<16x32xf32>, vector<32x32xf32>, vector<16x32xf32> -> vector<16x32xf32>
      %c176 = arith.constant 176 : index
      %c0_65 = arith.constant 0 : index
      %104 = vector.load %arg2[%c176, %c0_65] : memref<408x128xf32, #tpu.memory_space<vmem>>, vector<1x32xf32>
      %105 = vector.broadcast %104 : vector<1x32xf32> to vector<16x32xf32>
      %106 = arith.addf %103, %105 : vector<16x32xf32>
      %107 = arith.negf %106 : vector<16x32xf32>
      %108 = math.exp %107 : vector<16x32xf32>
      %cst_66 = arith.constant 1.000000e+00 : f32
      %109 = vector.broadcast %cst_66 : f32 to vector<16x32xf32>
      %110 = arith.addf %109, %108 : vector<16x32xf32>
      %111 = arith.divf %109, %110 : vector<16x32xf32>
      %112 = vector.extract_strided_slice %111 {offsets = [0, 0], sizes = [16, 16], strides = [1, 1]} : vector<16x32xf32> to vector<16x16xf32>
      %113 = vector.extract_strided_slice %111 {offsets = [0, 16], sizes = [16, 16], strides = [1, 1]} : vector<16x32xf32> to vector<16x16xf32>
      %114 = arith.mulf %112, %arg9 : vector<16x16xf32>
      %115 = tpu.concatenate %100, %114 in 1 : vector<16x16xf32>, vector<16x16xf32> -> vector<16x32xf32>
      %c184 = arith.constant 184 : index
      %c0_67 = arith.constant 0 : index
      %116 = vector.load %arg2[%c184, %c0_67] : memref<408x128xf32, #tpu.memory_space<vmem>>, vector<32x16xf32>
      %cst_68 = arith.constant dense<0.000000e+00> : vector<16x16xf32>
      %117 = tpu.matmul %115, %116, %cst_68 {dimension_numbers = #tpu.dot_dimension_numbers<[1], [0], [0], [1], [0, 0, 1, 1], [], []>} : vector<16x32xf32>, vector<32x16xf32>, vector<16x16xf32> -> vector<16x16xf32>
      %c216 = arith.constant 216 : index
      %c0_69 = arith.constant 0 : index
      %118 = vector.load %arg2[%c216, %c0_69] : memref<408x128xf32, #tpu.memory_space<vmem>>, vector<1x16xf32>
      %119 = vector.broadcast %118 : vector<1x16xf32> to vector<16x16xf32>
      %120 = arith.addf %117, %119 : vector<16x16xf32>
      %121 = math.tanh %120 : vector<16x16xf32>
      %122 = arith.mulf %113, %arg9 : vector<16x16xf32>
      %cst_70 = arith.constant 1.000000e+00 : f32
      %123 = vector.broadcast %cst_70 : f32 to vector<16x16xf32>
      %124 = arith.subf %123, %113 : vector<16x16xf32>
      %125 = arith.mulf %124, %121 : vector<16x16xf32>
      %126 = arith.addf %122, %125 : vector<16x16xf32>
      %c360 = arith.constant 360 : index
      %c0_71 = arith.constant 0 : index
      %127 = vector.load %arg2[%c360, %c0_71] : memref<408x128xf32, #tpu.memory_space<vmem>>, vector<16x16xf32>
      %128 = arith.addf %126, %127 : vector<16x16xf32>
      %c376 = arith.constant 376 : index
      %c0_72 = arith.constant 0 : index
      %129 = vector.load %arg2[%c376, %c0_72] : memref<408x128xf32, #tpu.memory_space<vmem>>, vector<16x16xf32>
      %130 = arith.subf %128, %129 : vector<16x16xf32>
      %cst_73 = arith.constant 1.000000e-03 : f32
      %131 = vector.broadcast %cst_73 : f32 to vector<16x16xf32>
      %132 = arith.divf %130, %131 : vector<16x16xf32>
      %133 = arith.negf %132 : vector<16x16xf32>
      %134 = math.exp %133 : vector<16x16xf32>
      %cst_74 = arith.constant 1.000000e+00 : f32
      %135 = vector.broadcast %cst_74 : f32 to vector<16x16xf32>
      %136 = arith.addf %135, %134 : vector<16x16xf32>
      %137 = arith.divf %135, %136 : vector<16x16xf32>
      %138 = tpu.concatenate %86, %90, %arg10 in 1 : vector<16x8xf32>, vector<16x8xf32>, vector<16x8xf32> -> vector<16x24xf32>
      %cst_75 = arith.constant dense<0.000000e+00> : vector<16x24xf32>
      %139 = tpu.matmul %137, %138, %cst_75 {dimension_numbers = #tpu.dot_dimension_numbers<[1], [0], [0], [1], [0, 0, 1, 1], [], []>} : vector<16x16xf32>, vector<16x24xf32>, vector<16x24xf32> -> vector<16x24xf32>
      %c224 = arith.constant 224 : index
      %c0_76 = arith.constant 0 : index
      %140 = vector.load %arg2[%c224, %c0_76] : memref<408x128xf32, #tpu.memory_space<vmem>>, vector<24x16xf32>
      %cst_77 = arith.constant dense<0.000000e+00> : vector<16x16xf32>
      %141 = tpu.matmul %139, %140, %cst_77 {dimension_numbers = #tpu.dot_dimension_numbers<[1], [0], [0], [1], [0, 0, 1, 1], [], []>} : vector<16x24xf32>, vector<24x16xf32>, vector<16x16xf32> -> vector<16x16xf32>
      %c248 = arith.constant 248 : index
      %c0_78 = arith.constant 0 : index
      %142 = vector.load %arg2[%c248, %c0_78] : memref<408x128xf32, #tpu.memory_space<vmem>>, vector<1x16xf32>
      %143 = vector.broadcast %142 : vector<1x16xf32> to vector<16x16xf32>
      %144 = arith.addf %141, %143 : vector<16x16xf32>
      %145 = arith.negf %144 : vector<16x16xf32>
      %146 = math.exp %145 : vector<16x16xf32>
      %cst_79 = arith.constant 1.000000e+00 : f32
      %147 = vector.broadcast %cst_79 : f32 to vector<16x16xf32>
      %148 = arith.addf %147, %146 : vector<16x16xf32>
      %149 = arith.divf %147, %148 : vector<16x16xf32>
      %150 = vector.extract_strided_slice %149 {offsets = [0, 0], sizes = [16, 8], strides = [1, 1]} : vector<16x16xf32> to vector<16x8xf32>
      %151 = vector.extract_strided_slice %149 {offsets = [0, 8], sizes = [16, 8], strides = [1, 1]} : vector<16x16xf32> to vector<16x8xf32>
      %152 = arith.mulf %150, %arg10 : vector<16x8xf32>
      %153 = tpu.concatenate %86, %90, %152 in 1 : vector<16x8xf32>, vector<16x8xf32>, vector<16x8xf32> -> vector<16x24xf32>
      %cst_80 = arith.constant dense<0.000000e+00> : vector<16x24xf32>
      %154 = tpu.matmul %137, %153, %cst_80 {dimension_numbers = #tpu.dot_dimension_numbers<[1], [0], [0], [1], [0, 0, 1, 1], [], []>} : vector<16x16xf32>, vector<16x24xf32>, vector<16x24xf32> -> vector<16x24xf32>
      %c256 = arith.constant 256 : index
      %c0_81 = arith.constant 0 : index
      %155 = vector.load %arg2[%c256, %c0_81] : memref<408x128xf32, #tpu.memory_space<vmem>>, vector<24x8xf32>
      %cst_82 = arith.constant dense<0.000000e+00> : vector<16x8xf32>
      %156 = tpu.matmul %154, %155, %cst_82 {dimension_numbers = #tpu.dot_dimension_numbers<[1], [0], [0], [1], [0, 0, 1, 1], [], []>} : vector<16x24xf32>, vector<24x8xf32>, vector<16x8xf32> -> vector<16x8xf32>
      %c280 = arith.constant 280 : index
      %c0_83 = arith.constant 0 : index
      %157 = vector.load %arg2[%c280, %c0_83] : memref<408x128xf32, #tpu.memory_space<vmem>>, vector<1x8xf32>
      %158 = vector.broadcast %157 : vector<1x8xf32> to vector<16x8xf32>
      %159 = arith.addf %156, %158 : vector<16x8xf32>
      %160 = math.tanh %159 : vector<16x8xf32>
      %161 = arith.mulf %151, %arg10 : vector<16x8xf32>
      %cst_84 = arith.constant 1.000000e+00 : f32
      %162 = vector.broadcast %cst_84 : f32 to vector<16x8xf32>
      %163 = arith.subf %162, %151 : vector<16x8xf32>
      %164 = arith.mulf %163, %160 : vector<16x8xf32>
      %165 = arith.addf %161, %164 : vector<16x8xf32>
      %c288 = arith.constant 288 : index
      %c0_85 = arith.constant 0 : index
      %166 = vector.load %arg2[%c288, %c0_85] : memref<408x128xf32, #tpu.memory_space<vmem>>, vector<8x16xf32>
      %cst_86 = arith.constant dense<0.000000e+00> : vector<16x16xf32>
      %167 = tpu.matmul %165, %166, %cst_86 {dimension_numbers = #tpu.dot_dimension_numbers<[1], [0], [0], [1], [0, 0, 1, 1], [], []>} : vector<16x8xf32>, vector<8x16xf32>, vector<16x16xf32> -> vector<16x16xf32>
      %c296 = arith.constant 296 : index
      %c0_87 = arith.constant 0 : index
      %168 = vector.load %arg2[%c296, %c0_87] : memref<408x128xf32, #tpu.memory_space<vmem>>, vector<1x16xf32>
      %169 = vector.broadcast %168 : vector<1x16xf32> to vector<16x16xf32>
      %170 = arith.addf %167, %169 : vector<16x16xf32>
      %171 = vector.extract_strided_slice %170 {offsets = [0, 0], sizes = [16, 8], strides = [1, 1]} : vector<16x16xf32> to vector<16x8xf32>
      %172 = vector.extract_strided_slice %170 {offsets = [0, 8], sizes = [16, 8], strides = [1, 1]} : vector<16x16xf32> to vector<16x8xf32>
      %cst_88 = arith.constant 5.000000e-01 : f32
      %173 = vector.broadcast %cst_88 : f32 to vector<16x8xf32>
      %174 = arith.mulf %173, %172 : vector<16x8xf32>
      %175 = math.exp %174 : vector<16x8xf32>
      %c392 = arith.constant 392 : index
      %c0_89 = arith.constant 0 : index
      %176 = vector.load %arg2[%c392, %c0_89] : memref<408x128xf32, #tpu.memory_space<vmem>>, vector<16x8xf32>
      %177 = arith.mulf %175, %176 : vector<16x8xf32>
      %178 = arith.addf %171, %177 : vector<16x8xf32>
      %c304 = arith.constant 304 : index
      %c0_90 = arith.constant 0 : index
      %179 = vector.load %arg2[%c304, %c0_90] : memref<408x128xf32, #tpu.memory_space<vmem>>, vector<8x16xf32>
      %cst_91 = arith.constant dense<0.000000e+00> : vector<16x16xf32>
      %180 = tpu.matmul %178, %179, %cst_91 {dimension_numbers = #tpu.dot_dimension_numbers<[1], [0], [0], [1], [0, 0, 1, 1], [], []>} : vector<16x8xf32>, vector<8x16xf32>, vector<16x16xf32> -> vector<16x16xf32>
      %c312 = arith.constant 312 : index
      %c0_92 = arith.constant 0 : index
      %181 = vector.load %arg2[%c312, %c0_92] : memref<408x128xf32, #tpu.memory_space<vmem>>, vector<1x16xf32>
      %182 = vector.broadcast %181 : vector<1x16xf32> to vector<16x16xf32>
      %183 = arith.addf %180, %182 : vector<16x16xf32>
      %cst_93 = arith.constant dense<0.000000e+00> : vector<16x16xf32>
      %184 = tpu.matmul %137, %183, %cst_93 {dimension_numbers = #tpu.dot_dimension_numbers<[1], [0], [0], [1], [0, 0, 1, 1], [], []>} : vector<16x16xf32>, vector<16x16xf32>, vector<16x16xf32> -> vector<16x16xf32>
      %185 = arith.negf %184 : vector<16x16xf32>
      %186 = math.exp %185 : vector<16x16xf32>
      %cst_94 = arith.constant 1.000000e+00 : f32
      %187 = vector.broadcast %cst_94 : f32 to vector<16x16xf32>
      %188 = arith.addf %187, %186 : vector<16x16xf32>
      %189 = arith.divf %187, %188 : vector<16x16xf32>
      %c320 = arith.constant 320 : index
      %c0_95 = arith.constant 0 : index
      %190 = vector.load %arg2[%c320, %c0_95] : memref<408x128xf32, #tpu.memory_space<vmem>>, vector<16x8xf32>
      %cst_96 = arith.constant dense<0.000000e+00> : vector<16x8xf32>
      %191 = tpu.matmul %189, %190, %cst_96 {dimension_numbers = #tpu.dot_dimension_numbers<[1], [0], [0], [1], [0, 0, 1, 1], [], []>} : vector<16x16xf32>, vector<16x8xf32>, vector<16x8xf32> -> vector<16x8xf32>
      %c336 = arith.constant 336 : index
      %c0_97 = arith.constant 0 : index
      %192 = vector.load %arg2[%c336, %c0_97] : memref<408x128xf32, #tpu.memory_space<vmem>>, vector<1x8xf32>
      %193 = vector.broadcast %192 : vector<1x8xf32> to vector<16x8xf32>
      %194 = arith.addf %191, %193 : vector<16x8xf32>
      %cst_98 = arith.constant dense<0.000000e+00> : vector<16x8xf32>
      %195 = tpu.matmul %137, %194, %cst_98 {dimension_numbers = #tpu.dot_dimension_numbers<[1], [0], [0], [1], [0, 0, 1, 1], [], []>} : vector<16x16xf32>, vector<16x8xf32>, vector<16x8xf32> -> vector<16x8xf32>
      %196 = arith.negf %195 : vector<16x8xf32>
      %197 = math.exp %196 : vector<16x8xf32>
      %cst_99 = arith.constant 1.000000e+00 : f32
      %198 = vector.broadcast %cst_99 : f32 to vector<16x8xf32>
      %199 = arith.addf %198, %197 : vector<16x8xf32>
      %200 = arith.divf %198, %199 : vector<16x8xf32>
      %c344 = arith.constant 344 : index
      %c0_100 = arith.constant 0 : index
      %201 = vector.load %arg2[%c344, %c0_100] : memref<408x128xf32, #tpu.memory_space<vmem>>, vector<8x1xf32>
      %cst_101 = arith.constant dense<0.000000e+00> : vector<16x1xf32>
      %202 = tpu.matmul %200, %201, %cst_101 {dimension_numbers = #tpu.dot_dimension_numbers<[1], [0], [0], [1], [0, 0, 1, 1], [], []>} : vector<16x8xf32>, vector<8x1xf32>, vector<16x1xf32> -> vector<16x1xf32>
      %c352 = arith.constant 352 : index
      %c0_102 = arith.constant 0 : index
      %203 = vector.load %arg2[%c352, %c0_102] : memref<408x128xf32, #tpu.memory_space<vmem>>, vector<1x1xf32>
      %204 = vector.broadcast %203 : vector<1x1xf32> to vector<16x1xf32>
      %205 = arith.addf %202, %204 : vector<16x1xf32>
      %cst_103 = arith.constant 0.000000e+00 : f32
      %206 = vector.broadcast %cst_103 : f32 to vector<16x1xf32>
      %207 = arith.minimumf %205, %206 : vector<16x1xf32>
      %208 = math.absf %205 : vector<16x1xf32>
      %cst_104 = arith.constant 0.000000e+00 : f32
      %209 = vector.broadcast %cst_104 : f32 to vector<16x1xf32>
      %210 = arith.subf %209, %208 : vector<16x1xf32>
      %211 = math.exp %210 : vector<16x1xf32>
      %cst_105 = arith.constant 1.000000e+00 : f32
      %212 = vector.broadcast %cst_105 : f32 to vector<16x1xf32>
      %213 = arith.addf %212, %211 : vector<16x1xf32>
      %214 = math.log %213 : vector<16x1xf32>
      %215 = arith.subf %207, %214 : vector<16x1xf32>
      %216 = vector.shape_cast %215 : vector<16x1xf32> to vector<1x16xf32>
      %c0_106 = arith.constant 0 : index
      %217 = arith.index_cast %arg8 : i32 to index
      %c0_107 = arith.constant 0 : index
      %218 = vector.load %arg3[%c0_106, %217, %c0_107] : memref<1x8x16xf32, #tpu.memory_space<vmem>>, vector<1x1x16xf32>
      %219 = vector.shape_cast %218 : vector<1x1x16xf32> to vector<1x16xf32>
      %220 = vector.shape_cast %216 : vector<1x16xf32> to vector<1x1x16xf32>
      tpu.vector_store %arg3[%c0_106, %217, %c0_107], %220 {strides = array<i32>} : memref<1x8x16xf32, #tpu.memory_space<vmem>>, vector<1x1x16xf32>,
      scf.yield %126, %165 : vector<16x16xf32>, vector<16x8xf32>
    }
    %c8_i32_54 = arith.constant 8 : i32
    return
  }
  func.func @transform_0(%arg0: i32) -> (i32, i32, i32) {
    %c0_i32 = arith.constant 0 : i32
    %c0_i32_0 = arith.constant 0 : i32
    %c0_i32_1 = arith.constant 0 : i32
    return %arg0, %c0_i32, %c0_i32_0 : i32, i32, i32
  }
  func.func @transform_1(%arg0: i32) -> (i32, i32) {
    %c0_i32 = arith.constant 0 : i32
    %c0_i32_0 = arith.constant 0 : i32
    %c0_i32_1 = arith.constant 0 : i32
    return %c0_i32, %c0_i32_0 : i32, i32
  }
  func.func @transform_2(%arg0: i32) -> (i32, i32, i32) {
    %c0_i32 = arith.constant 0 : i32
    %c0_i32_0 = arith.constant 0 : i32
    %c0_i32_1 = arith.constant 0 : i32
    return %arg0, %c0_i32, %c0_i32_0 : i32, i32, i32
  }
}

</mosaic_0001>

<bundles_post_ra>
// kernel: tpu_custom_call.1
= control target key start
LH: loop header
LB: loop body
LE: loop exit
PB: predicated region body
PF: predicated region fallthrough
CT: control target
= control target key end

     0   :  { %7 = vsyncpa [#allocation7], 0  ;;  %s4087_s0 = inlined_call_operand.hbm [shape: f32[2,8,16], index: 0, kind: input, shape index: {}]   ;;  %s4088_s1 = inlined_call_operand.hbm [shape: f32[408,128], index: 1, kind: input, shape index: {}]   ;;  %s4089_s2 = inlined_call_operand.hbm [shape: f32[2,8,16], index: 2, kind: output, shape index: {}]  }
   0x1   :  { %9 = vsyncpa [#allocation7 + $0x1], 0 }
   0x2   :  { %10 = vsyncpa [#allocation10], 0 }
   0x3   :  { %11 = vsyncpa [#allocation8], 0 }
   0x4   :  { %13 = vsyncpa [#allocation8 + $0x1], 0  ;;  %s3294_s9 = smov 0   ;;  %s3296_s10 = smov 0  }
   0x5   :  { %s3298_s11 = smov 0   ;;  %s3300_s12 = smov 0  }
   0x6 LB: > { %s108_s15 = sshll.u32 %s4088_s1, 4  ;;  %s3318_s16 = sadd.s32 4294967295, %s3190_s12   ;;  %s3190_s12 = sphi %s3300_s12, %s4105_s12   ;;  %s3186_s11 = sphi %s3298_s11, %s4104_s11   ;;  %s3182_s10 = sphi %s3296_s10, %s4103_s10   ;;  %s3178_s9 = sphi %s3294_s9, %s4102_s9   ;;  %s109_s15 = int_to_ptr.hbm [resolvable:$true] %s108_s15 }
   0x7   : > { %p2465_p0 = scmp.ge.s32.totalorder %s3190_s12, 1  ;;  %p40_p1 = scmp.eq.s32.totalorder %s3318_s16, 0 }
   0x8   : > { %p97_p2 = scmp.lt.s32.totalorder %s3190_s12, 3  ;;  %s3260_s18 = smov [#allocation9]  }
   0x9   : > { %s110_s19 = sshll.u32 %s3260_s18, 4  ;;  %s3261_s20 = smov 128   ;;  %s111_s19 = int_to_ptr.vmem [resolvable:$true] %s110_s19 }
   0xa   : > { %p3323_p3 = pnand %p2465_p0, %p97_p2  ;;  %s3262_s21 = smov 8  }
   0xb   : > { %s2464_s22 = sadd.s32 4294967294, %s3190_s12   ;;  %s3334_s23 = sadd.s32 1, %s3190_s12  }
   0xc   : > { %p2602_p4 = pneg %p3323_p3  ;;  %s26_s24 = sadd.s32 1, %s3186_s11 }
   0xd   : > { %s23_s25 = ssub.s32 %s3190_s12, %s3334_s23  ;;  %p33_p7 = scmp.ne.s32.totalorder %s3186_s11, %s3182_s10 }
   0xe   : > { %p2603_p6 = pnand %p2602_p4, %p40_p1  ;;  %p24_p8 = scmp.eq.s32.totalorder %s23_s25, 0 }
   0xf   : > { %p34_p9 = scmp.eq.s32.totalorder %s3190_s12, 0  ;;  %p39_p10 = scmp.ne.s32.totalorder %s3182_s10, %s3178_s9 }
  0x10   : > { %2605 = dma.hbm_to_vmem [thread:$0]  (!%p2603_p6), %s109_s15, 6528, %s111_s19, [#allocation10], %s3261_s20, %s3261_s20, %s3262_s21  }
  0x11   : > { %p84_p11 = scmp.eq.s32.totalorder %s3318_s16, 1  ;;  %p3350_p12 = por %p40_p1, %p39_p10 }
  0x12   : > { %s3346_s26 = scalar_select %p24_p8, %s3186_s11, %s26_s24  }
  0x13   : > { %p3354_p13 = por %p84_p11, %p33_p7  ;;  %p90_p0 = scmp.eq.s32.totalorder %s2464_s22, 1 }
  0x14   : > { %p35_p2 = por %p34_p9, %p33_p7  ;;  %s124_s29 = sand.u32 1, %s3186_s11  }
  0x15   : > { %p3359_p4 = por %p90_p0, %p39_p10  ;;  %p2615_p6 = scmp.lt.s32.totalorder %s3190_s12, 2 }
  0x16   : > { %s2468_s3 = sshll.u32 %s124_s29, 3  ;;  %s2469_s4 = sshll.u32 %s3190_s12, 3 }
  0x17   : > { %s132_s7 = scalar_lea.hbm %s4087_s0, %s2469_s4  ;;  %s128_s13 = scalar_lea.vmem [#allocation6], %s2468_s3 }
  0x18   : > { %s134_s8 = sshll.u32 %s132_s7, 4  ;;  %s136_s14 = sshll.u32 %s128_s13, 4  ;;  %s135_s8 = int_to_ptr.hbm [resolvable:$true] %s134_s8  ;;  %s137_s14 = int_to_ptr.vmem [resolvable:$true] %s136_s14 }
  0x19   : > { %p3368_p8 = pnand %p2615_p6, %p35_p2  ;;  %s125_s18 = scalar_lea.sflag [#allocation7], %s124_s29 }
  0x1a   : > { %s3022_s19 = sshra.s32 %s135_s8, 4  ;;  %s3029_s24 = scalar_lea.hbm %s4087_s0, 16  ;;  %s3023_s19 = int_to_ptr.hbm [resolvable:$true] %s3022_s19 }
  0x1b   : > { %s3024_s20 = scalar_lea.hbm %s3023_s19, 8  ;;  %p3026_p9 = pneg %p3368_p8 }
  0x1c   : > { %p3025_p7 = scmp.ne.s32.totalorder %s3023_s19, %s3024_s20  ;;  %p3030_p0 = scmp.lt.s32.totalorder %s3023_s19, %s4087_s0 }
  0x1d   : > { %p3031_p2 = scmp.lt.s32.totalorder %s3029_s24, %s3024_s20 }
  0x1e   : > { %p3027_p10 = pnand %p3026_p9, %p3025_p7 }
  0x1f   : > { %p3032_p6 = por %p3031_p2, %p3030_p0 }
  0x20   : > { %p3028_p11 = pneg %p3027_p10 }
  0x22   : > { %p3033_p5 = pnand %p3032_p6, %p3028_p11 }
  0x24   : > { %3036 = shalt.err (!%p3033_p5)
}
  0x25   : > { %2609 = dma.hbm_to_vmem [thread:$0]  (!%p3368_p8), %s135_s8, 128, %s137_s14, %s125_s18  }
  0x26   : > { %145 = sbr.rel (%p3323_p3) target bundleno = 6044 (0x179c), region = 28  ;;  %s3385_s29 = sand.u32 (!%p3323_p3), 1, %s3182_s10  }
  0x27   : > { %s2471_s4 = sshll.u32 (!%p3323_p3), %s3385_s29, 3  ;;  %s148_s5 = scalar_lea.sflag (!%p3323_p3), [#allocation7], %s3385_s29 }
  0x28   : > { %s151_s6 = scalar_lea.vmem (!%p3323_p3), [#allocation6], %s2471_s4 }
  0x2b   : > { %3165 = dma.done.wait (%p3350_p12), %s148_s5, 128  }
  0x2c   : > { %3167 = vsyncadd (%p3350_p12), %s148_s5, 4294967168 }
  0x2d   : > { %3169 = dma.done.wait (%p40_p1), [#allocation10], 6528  }
  0x2e   : > { %3171 = vsyncadd (%p40_p1), [#allocation10], 4294960768  ;;  %v214_v0 = vlaneseq  ;;  %v186_v2 = vld [vmem:[#allocation9 + $0x8] sm:$0xff]  ;;  %v185_v3 = vld [vmem:[#allocation9] sm:$0xff]  ;;  %vm189_vm0 = vcmask 130048   ;;  %vm179_vm1 = vcmask 64512  }
  0x2f   : > { %207 = vmatpush.msra.mxu0 %v186_v2  ;;  %v3405_v4 = vld [vmem:[%s151_s6] sm:$0xff]  ;;  %v3263_v15 = vmov 0.0   ;;  %v3430_v20 = vld [vmem:[#allocation9 + $0x28] ss:$0 sm:$0xff]  ;;  %v3432_v21 = vld [vmem:[#allocation9 + $0x40] ss:$0 sm:$0xff] }
  0x30   : > { %v3400_v1 = vshrl.u32 %v214_v0, 7  ;;  %v2818_v5 = vld [vmem:[#allocation9 + $0x10] ss:$0 sm:$0xff]  ;;  %180 = vst.msk [vmem:[#allocation2] sm:$0xff] %vm179_vm1, %v3263_v15  ;;  %v3426_v18 = vld [vmem:[#allocation9 + $0x18] ss:$0 sm:$0xff] }
  0x31   : > { %208 = vmatpush.msra.mxu0 %v185_v3  ;;  %181 = vst.msk [vmem:[#allocation2 + $0x8] sm:$0xff] %vm179_vm1, %v3263_v15  ;;  %v3428_v19 = vld [vmem:[#allocation9 + $0x30] ss:$0 sm:$0xff]  ;;  %s3532_s17 = scalar_lea.vmem [#allocation11], %s2471_s4  ;;  %s3538_s27 = smov 0  }
  0x32   : > { %2809 = vset.pattern.permute.xlu2 %v3400_v1  ;;  %2807 = vset.pattern.permute.xlu1 %v3400_v1  ;;  %v3410_v11 = vadd.s32 8, %v3400_v1  ;;  %183 = vst.msk [vmem:[#allocation3 + $0x80] sm:$0xff] %vm179_vm1, %v3263_v15 }
  0x33   : > { %2805 = vset.pattern.permute.xlu0 %v3400_v1  ;;  %2474 = vmatmul.msk.f32.vlgmr.msra.gmra.mxu0 %vm189_vm0, %v3405_v4  ;;  %184 = vst.msk [vmem:[#allocation3 + $0x88] sm:$0xff] %vm179_vm1, %v3263_v15 }
  0xb0   : > { %v210_v6 = vpop.f32.mrf.mxu0 }
  0xb1   : > { %v211_v7 = vadd.f32 %v2818_v5, %v210_v6 }
  0xb3   : > { %v239_v8 = vperm.slane %v211_v7, 2  ;;  %v226_v9 = vperm.slane %v211_v7, 1  ;;  %v213_v10 = vperm.slane %v211_v7, 0  ;;  %v252_v12 = vperm.slane %v211_v7, 3 }
  0xb4   : > { %v265_v13 = vperm.slane %v211_v7, 4  ;;  %v278_v14 = vperm.slane %v211_v7, 5  ;;  %v291_v16 = vperm.slane %v211_v7, 6  ;;  %v304_v17 = vperm.slane %v211_v7, 7 }
  0xb5   : > { %244 = vperm.xlu2 %2809, %v239_v8   ;;  %231 = vperm.xlu1 %2807, %v226_v9  }
  0xb6   : > { %218 = vperm.xlu0 %2805, %v213_v10  }
  0xbd   : > { %2810 = vset.pattern.permute.xlu2 %v3410_v11  ;;  %2808 = vset.pattern.permute.xlu1 %v3410_v11 }
  0xbe   : > { %2806 = vset.pattern.permute.xlu0 %v3410_v11 }
  0xc5   : > { %250 = vperm.xlu2 %2810, %v239_v8   ;;  %237 = vperm.xlu1 %2808, %v226_v9  }
  0xc6   : > { %224 = vperm.xlu0 %2806, %v213_v10  }
  0xcd   : > { %263 = vperm.xlu2 %2810, %v252_v12   ;;  %2811 = vset.pattern.permute.xlu1 %v3400_v1 }
  0xce   : > { %2812 = vset.pattern.permute.xlu0 %v3400_v1 }
  0xd5   : > { %2814 = vset.pattern.permute.xlu2 %v3400_v1  ;;  %257 = vperm.xlu1 %2811, %v252_v12  }
  0xd6   : > { %270 = vperm.xlu0 %2812, %v265_v13  }
  0xdd   : > { %283 = vperm.xlu2 %2814, %v278_v14   ;;  %2813 = vset.pattern.permute.xlu1 %v3410_v11 }
  0xde   : > { %2815 = vset.pattern.permute.xlu0 %v3410_v11 }
  0xe5   : > { %296 = vperm.xlu2 %2814, %v291_v16   ;;  %276 = vperm.xlu1 %2813, %v265_v13  }
  0xe6   : > { %302 = vperm.xlu0 %2815, %v291_v16  }
  0xed   : > { %2817 = vset.pattern.permute.xlu2 %v3410_v11  ;;  %289 = vperm.xlu1 %2813, %v278_v14  }
  0xf5   : > { %315 = vperm.xlu2 %2817, %v304_v17   ;;  %2816 = vset.pattern.permute.xlu1 %v3400_v1 }
  0xfd   : > { %309 = vperm.xlu1 %2816, %v304_v17  }
 0x10f   : > { %v245_v22 = vpop.permute.xlu2 %244 }
 0x110   : > { %v323_v23 = vmul.f32 %v3426_v18, %v245_v22  ;;  %v375_v24 = vmul.f32 %v3428_v19, %v245_v22 }
 0x112   : > { %v341_v25 = vadd.f32 %v3430_v20, %v323_v23  ;;  %v393_v26 = vadd.f32 %v3432_v21, %v375_v24 }
 0x114   : > { %357 = vst.msk [vmem:[#allocation4 + $0x20] sm:$0xff] %vm189_vm0, %v341_v25 }
 0x115   : > { %409 = vst.msk [vmem:[#allocation5 + $0x20] sm:$0xff] %vm179_vm1, %v393_v26 }
 0x11f   : > { %v251_v27 = vpop.permute.xlu2 %250 }
 0x120   : > { %v324_v28 = vmul.f32 %v3426_v18, %v251_v27  ;;  %v376_v29 = vmul.f32 %v3428_v19, %v251_v27 }
 0x122   : > { %v342_v30 = vadd.f32 %v3430_v20, %v324_v28  ;;  %v394_v31 = vadd.f32 %v3432_v21, %v376_v29 }
 0x124   : > { %358 = vst.msk [vmem:[#allocation4 + $0x28] sm:$0xff] %vm189_vm0, %v342_v30 }
 0x125   : > { %410 = vst.msk [vmem:[#allocation5 + $0x28] sm:$0xff] %vm179_vm1, %v394_v31 }
 0x127   : > { %v264_v32 = vpop.permute.xlu2 %263  ;;  %v232_v33 = vpop.permute.xlu1 %231 }
 0x128   : > { %v326_v34 = vmul.f32 %v3426_v18, %v264_v32  ;;  %v378_v35 = vmul.f32 %v3428_v19, %v264_v32  ;;  %v321_v36 = vmul.f32 %v3426_v18, %v232_v33  ;;  %v373_v37 = vmul.f32 %v3428_v19, %v232_v33  ;;  %v219_v38 = vpop.permute.xlu0 %218 }
 0x129   : > { %v319_v39 = vmul.f32 %v3426_v18, %v219_v38  ;;  %v371_v40 = vmul.f32 %v3428_v19, %v219_v38 }
 0x12a   : > { %v344_v41 = vadd.f32 %v3430_v20, %v326_v34  ;;  %v396_v42 = vadd.f32 %v3432_v21, %v378_v35  ;;  %v339_v43 = vadd.f32 %v3430_v20, %v321_v36  ;;  %v391_v44 = vadd.f32 %v3432_v21, %v373_v37 }
 0x12b   : > { %v337_v45 = vadd.f32 %v3430_v20, %v319_v39  ;;  %v389_v46 = vadd.f32 %v3432_v21, %v371_v40 }
 0x12c   : > { %360 = vst.msk [vmem:[#allocation4 + $0x38] sm:$0xff] %vm189_vm0, %v344_v41 }
 0x12d   : > { %412 = vst.msk [vmem:[#allocation5 + $0x38] sm:$0xff] %vm179_vm1, %v396_v42 }
 0x12e   : > { %355 = vst.msk [vmem:[#allocation4 + $0x10] sm:$0xff] %vm189_vm0, %v339_v43 }
 0x12f   : > { %407 = vst.msk [vmem:[#allocation5 + $0x10] sm:$0xff] %vm179_vm1, %v391_v44 }
 0x130   : > { %353 = vst.msk [vmem:[#allocation4] sm:$0xff] %vm189_vm0, %v337_v45 }
 0x131   : > { %405 = vst.msk [vmem:[#allocation5] sm:$0xff] %vm179_vm1, %v389_v46  ;;  %v3534_v46 = vmov 0.0  }
 0x137   : > { %v284_v47 = vpop.permute.xlu2 %283  ;;  %v238_v48 = vpop.permute.xlu1 %237 }
 0x138   : > { %v329_v49 = vmul.f32 %v3426_v18, %v284_v47  ;;  %v381_v50 = vmul.f32 %v3428_v19, %v284_v47  ;;  %v322_v51 = vmul.f32 %v3426_v18, %v238_v48  ;;  %v374_v52 = vmul.f32 %v3428_v19, %v238_v48  ;;  %v225_v53 = vpop.permute.xlu0 %224 }
 0x139   : > { %v320_v54 = vmul.f32 %v3426_v18, %v225_v53  ;;  %v372_v55 = vmul.f32 %v3428_v19, %v225_v53  ;;  %v3536_v47 = vmov 0.0  }
 0x13a   : > { %v347_v56 = vadd.f32 %v3430_v20, %v329_v49  ;;  %v399_v57 = vadd.f32 %v3432_v21, %v381_v50  ;;  %v340_v58 = vadd.f32 %v3430_v20, %v322_v51  ;;  %v392_v59 = vadd.f32 %v3432_v21, %v374_v52 }
 0x13b   : > { %v338_v60 = vadd.f32 %v3430_v20, %v320_v54  ;;  %v390_v61 = vadd.f32 %v3432_v21, %v372_v55 }
 0x13c   : > { %363 = vst.msk [vmem:[#allocation4 + $0x50] sm:$0xff] %vm189_vm0, %v347_v56 }
 0x13d   : > { %415 = vst.msk [vmem:[#allocation5 + $0x50] sm:$0xff] %vm179_vm1, %v399_v57 }
 0x13e   : > { %356 = vst.msk [vmem:[#allocation4 + $0x18] sm:$0xff] %vm189_vm0, %v340_v58 }
 0x13f   : > { %408 = vst.msk [vmem:[#allocation5 + $0x18] sm:$0xff] %vm179_vm1, %v392_v59  ;;  %v297_v62 = vpop.permute.xlu2 %296 }
 0x140   : > { %354 = vst.msk [vmem:[#allocation4 + $0x8] sm:$0xff] %vm189_vm0, %v338_v60  ;;  %v331_v63 = vmul.f32 %v3426_v18, %v297_v62  ;;  %v383_v2 = vmul.f32 %v3428_v19, %v297_v62 }
 0x141   : > { %406 = vst.msk [vmem:[#allocation5 + $0x8] sm:$0xff] %vm179_vm1, %v390_v61 }
 0x142   : > { %v349_v3 = vadd.f32 %v3430_v20, %v331_v63  ;;  %v401_v5 = vadd.f32 %v3432_v21, %v383_v2 }
 0x144   : > { %365 = vst.msk [vmem:[#allocation4 + $0x60] sm:$0xff] %vm189_vm0, %v349_v3 }
 0x145   : > { %417 = vst.msk [vmem:[#allocation5 + $0x60] sm:$0xff] %vm179_vm1, %v401_v5 }
 0x147   : > { %v258_v6 = vpop.permute.xlu1 %257 }
 0x148   : > { %v325_v7 = vmul.f32 %v3426_v18, %v258_v6  ;;  %v377_v8 = vmul.f32 %v3428_v19, %v258_v6  ;;  %v271_v9 = vpop.permute.xlu0 %270 }
 0x149   : > { %v327_v10 = vmul.f32 %v3426_v18, %v271_v9  ;;  %v379_v12 = vmul.f32 %v3428_v19, %v271_v9 }
 0x14a   : > { %v343_v13 = vadd.f32 %v3430_v20, %v325_v7  ;;  %v395_v14 = vadd.f32 %v3432_v21, %v377_v8 }
 0x14b   : > { %v345_v15 = vadd.f32 %v3430_v20, %v327_v10  ;;  %v397_v16 = vadd.f32 %v3432_v21, %v379_v12 }
 0x14c   : > { %359 = vst.msk [vmem:[#allocation4 + $0x30] sm:$0xff] %vm189_vm0, %v343_v13 }
 0x14d   : > { %411 = vst.msk [vmem:[#allocation5 + $0x30] sm:$0xff] %vm179_vm1, %v395_v14 }
 0x14e   : > { %361 = vst.msk [vmem:[#allocation4 + $0x40] sm:$0xff] %vm189_vm0, %v345_v15 }
 0x14f   : > { %413 = vst.msk [vmem:[#allocation5 + $0x40] sm:$0xff] %vm179_vm1, %v397_v16  ;;  %v316_v17 = vpop.permute.xlu2 %315 }
 0x150   : > { %v334_v22 = vmul.f32 %v3426_v18, %v316_v17  ;;  %v386_v23 = vmul.f32 %v3428_v19, %v316_v17 }
 0x152   : > { %v352_v24 = vadd.f32 %v3430_v20, %v334_v22  ;;  %v404_v25 = vadd.f32 %v3432_v21, %v386_v23 }
 0x154   : > { %368 = vst.msk [vmem:[#allocation4 + $0x78] sm:$0xff] %vm189_vm0, %v352_v24 }
 0x155   : > { %420 = vst.msk [vmem:[#allocation5 + $0x78] sm:$0xff] %vm179_vm1, %v404_v25 }
 0x157   : > { %v277_v26 = vpop.permute.xlu1 %276 }
 0x158   : > { %v328_v27 = vmul.f32 %v3426_v18, %v277_v26  ;;  %v380_v28 = vmul.f32 %v3428_v19, %v277_v26  ;;  %v303_v29 = vpop.permute.xlu0 %302 }
 0x159   : > { %v332_v30 = vmul.f32 %v3426_v18, %v303_v29  ;;  %v384_v31 = vmul.f32 %v3428_v19, %v303_v29 }
 0x15a   : > { %v346_v32 = vadd.f32 %v3430_v20, %v328_v27  ;;  %v398_v33 = vadd.f32 %v3432_v21, %v380_v28 }
 0x15b   : > { %v350_v34 = vadd.f32 %v3430_v20, %v332_v30  ;;  %v402_v35 = vadd.f32 %v3432_v21, %v384_v31 }
 0x15c   : > { %362 = vst.msk [vmem:[#allocation4 + $0x48] sm:$0xff] %vm189_vm0, %v346_v32 }
 0x15d   : > { %414 = vst.msk [vmem:[#allocation5 + $0x48] sm:$0xff] %vm179_vm1, %v398_v33 }
 0x15e   : > { %366 = vst.msk [vmem:[#allocation4 + $0x68] sm:$0xff] %vm189_vm0, %v350_v34 }
 0x15f   : > { %418 = vst.msk [vmem:[#allocation5 + $0x68] sm:$0xff] %vm179_vm1, %v402_v35  ;;  %v290_v36 = vpop.permute.xlu1 %289 }
 0x160   : > { %v330_v37 = vmul.f32 %v3426_v18, %v290_v36  ;;  %v382_v38 = vmul.f32 %v3428_v19, %v290_v36 }
 0x162   : > { %v348_v39 = vadd.f32 %v3430_v20, %v330_v37  ;;  %v400_v40 = vadd.f32 %v3432_v21, %v382_v38 }
 0x164   : > { %364 = vst.msk [vmem:[#allocation4 + $0x58] sm:$0xff] %vm189_vm0, %v348_v39 }
 0x165   : > { %416 = vst.msk [vmem:[#allocation5 + $0x58] sm:$0xff] %vm179_vm1, %v400_v40 }
 0x16f   : > { %v310_v41 = vpop.permute.xlu1 %309 }
 0x170   : > { %v333_v42 = vmul.f32 %v3426_v18, %v310_v41  ;;  %v385_v43 = vmul.f32 %v3428_v19, %v310_v41 }
 0x172   : > { %v351_v44 = vadd.f32 %v3430_v20, %v333_v42  ;;  %v403_v45 = vadd.f32 %v3432_v21, %v385_v43 }
 0x174   : > { %367 = vst.msk [vmem:[#allocation4 + $0x70] sm:$0xff] %vm189_vm0, %v351_v44 }
 0x175   : > { %419 = vst.msk [vmem:[#allocation5 + $0x70] sm:$0xff] %vm179_vm1, %v403_v45 }
 0x176 LB: >> { %v433_v18 = vld [vmem:[#allocation9 + $0x20] sm:$0xff]  ;;  %s3264_s7 = smov 120   ;;  %v514_v21 = vld [vmem:[#allocation9 + $0x38] sm:$0xff]  ;;  %s3556_s8 = sshll.u32 %s3202_s27, 4  ;;  %s3202_s27 = sphi %s3538_s27, %s426_s27   ;;  %v3198_v47 = vphi %v3536_v47, %v4098_v47   ;;  %v3194_v46 = vphi %v3534_v46, %v4097_v46  }
 0x177   : >> { %2580 = vmatpush.msra.mxu2 %v433_v18  ;;  %459 = vmatpush.msra.mxu0 %v433_v18  ;;  %s430_s13 = scalar_lea.vmem [#allocation4], %s3556_s8  ;;  %s507_s14 = scalar_lea.vmem [#allocation5], %s3556_s8 }
 0x178   : >> { %438 = vrot.lane.b32.xlu0 %v3194_v46, %s3264_s7  ;;  %2581 = vmatpush.msra.mxu3 %v514_v21  ;;  %s3265_s15 = smov 8   ;;  %s2335_s18 = scalar_lea.vmem [#allocation2], %s3556_s8 }
 0x179   : >> { %536 = vmatpush.msra.mxu1 %v514_v21  ;;  %s426_s27 = sadd.s32 1, %s3202_s27  }
 0x17a   : >> { %p423_p1 = scmp.ge.s32.totalorder %s426_s27, 8  }
 0x17b   : >> { %v432_v48 = vld [vmem:[%s430_s13 + $0x8] sm:$0xff]  ;;  %v431_v50 = vld [vmem:[%s430_s13] sm:$0xff]  ;;  %s3588_s19 = smov (%p423_p1), 0  }
 0x17c   : >> { %v508_v26 = vld [vmem:[%s507_s14] sm:$0xff]  ;;  %v509_v29 = vld [vmem:[%s507_s14 + $0x8] sm:$0xff] }
 0x180   : >> { %436 = vrot.lane.b32.xlu0 %v3198_v47, %s3264_s7 }
 0x1ea   : >> { %v439_v19 = vpop.permute.xlu0 %438 }
 0x1eb   : >> { %2477 = vmatmul.msk.f32.vlgmr.msra.gmra.mxu2 %vm179_vm1, %v439_v19 }
 0x1f2   : >> { %v437_v20 = vpop.permute.xlu0 %436 }
 0x1f3   : >> { %2476 = vmatmul.msk.f32.vlgmr.msra.gmra.mxu0 %vm179_vm1, %v437_v20 }
 0x26e   : >> { %v464_v49 = vpop.f32.mrf.mxu2 }
 0x26f   : >> { %v468_v51 = vadd.f32 %v464_v49, %v432_v48 }
 0x270   : >> { %v461_v52 = vpop.f32.mrf.mxu0 }
 0x271   : >> { %v2479_v53 = vmul.f32 -1.442695, %v468_v51  ;;  %v467_v54 = vadd.f32 %v461_v52, %v431_v50 }
 0x273   : >> { %2823 = vpow2.f32 %v2479_v53  ;;  %v2478_v55 = vmul.f32 -1.442695, %v467_v54 }
 0x275   : >> { %2825 = vpow2.f32 %v2478_v55 }
 0x279   : >> { %v2824_v56 = vpop.eup %2823 }
 0x27a   : >> { %v476_v57 = vadd.f32 1.0, %v2824_v56 }
 0x27b   : >> { %v2826_v58 = vpop.eup %2825 }
 0x27c   : >> { %2827 = vrcp.f32 %v476_v57  ;;  %v475_v59 = vadd.f32 1.0, %v2826_v58  ;;  %v503_v3 = vand.u32 2147483648, %v476_v57  ;;  %v501_v6 = vand.u32 2147483647, %v476_v57 }
 0x27d   : >> { %vm497_vm3 = vweird.f32 %v476_v57 }
 0x27e   : >> { %2829 = vrcp.f32 %v475_v59  ;;  %v488_v8 = vand.u32 2147483648, %v475_v59  ;;  %v486_v12 = vand.u32 2147483647, %v475_v59  ;;  %v504_v13 = vor.u32 1.1754944e-38, %v503_v3 }
 0x27f   : >> { %vm502_vm6 = vcmp.eq.f32.partialorder %v501_v6, 8.507059e+37  ;;  %vm482_vm7 = vweird.f32 %v475_v59 }
 0x280   : >> { %v489_v17 = vor.u32 1.1754944e-38, %v488_v8  ;;  %vm487_vm9 = vcmp.eq.f32.partialorder %v486_v12, 8.507059e+37 }
 0x282   : >> { %v2828_v60 = vpop.eup %2827 }
 0x283   : >> { %v493_v61 = vmul.f32 %v2828_v60, %v476_v57  ;;  %vm498_vm2 = vweird.f32 %v2828_v60 }
 0x284   : >> { %v2830_v62 = vpop.eup %2829  ;;  %vm499_vm5 = vmor %vm497_vm3, %vm498_vm2 }
 0x285   : >> { %v494_v63 = vsub.f32 1.0, %v493_v61  ;;  %v478_v2 = vmul.f32 %v2830_v62, %v475_v59  ;;  %vm483_vm4 = vweird.f32 %v2830_v62 }
 0x286   : >> { %vm484_vm8 = vmor %vm482_vm7, %vm483_vm4 }
 0x287   : >> { %v495_v5 = vmul.f32 %v2828_v60, %v494_v63  ;;  %v479_v7 = vsub.f32 1.0, %v478_v2 }
 0x289   : >> { %v496_v9 = vadd.f32 %v2828_v60, %v495_v5  ;;  %v480_v10 = vmul.f32 %v2830_v62, %v479_v7 }
 0x28b   : >> { %v500_v14 = vsel %vm499_vm5, %v2828_v60, %v496_v9  ;;  %v481_v15 = vadd.f32 %v2830_v62, %v480_v10 }
 0x28c   : >> { %v505_v16 = vsel %vm502_vm6, %v504_v13, %v500_v14 }
 0x28d   : >> { %v513_v22 = vmul.f32 %v505_v16, %v439_v19  ;;  %v485_v23 = vsel %vm484_vm8, %v2830_v62, %v481_v15  ;;  %v551_v40 = vsub.f32 1.0, %v505_v16  ;;  %v549_v42 = vmul.f32 %v3194_v46, %v505_v16 }
 0x28e   : >> { %v490_v24 = vsel %vm487_vm9, %v489_v17, %v485_v23 }
 0x28f   : >> { %2481 = vmatmul.msk.f32.vlgmr.msra.gmra.mxu3 %vm179_vm1, %v513_v22  ;;  %v512_v25 = vmul.f32 %v490_v24, %v437_v20  ;;  %v550_v34 = vsub.f32 1.0, %v490_v24  ;;  %v548_v37 = vmul.f32 %v3198_v47, %v490_v24  ;;  %v3586_v20 = vmov (%p423_p1), 0.0  }
 0x291   : >> { %2480 = vmatmul.msk.f32.vlgmr.msra.gmra.mxu1 %vm179_vm1, %v512_v25 }
 0x30e   : >> { %v538_v27 = vpop.f32.mrf.mxu1 }
 0x30f   : >> { %v544_v28 = vadd.f32 %v538_v27, %v508_v26 }
 0x311   : >> { %2831 = vtanh.f32 %v544_v28 }
 0x312   : >> { %v541_v30 = vpop.f32.mrf.mxu3 }
 0x313   : >> { %v545_v31 = vadd.f32 %v541_v30, %v509_v29 }
 0x315   : >> { %2833 = vtanh.f32 %v545_v31 }
 0x317   : >> { %v2832_v32 = vpop.eup %2831 }
 0x318   : >> { %554 = vrot.lane.b32.xlu1 %v2832_v32, %s3265_s15 }
 0x31b   : >> { %v2834_v33 = vpop.eup %2833 }
 0x320   : >> { %556 = vrot.lane.b32.xlu1 %v2834_v33, %s3265_s15 }
 0x38a   : >> { %v555_v35 = vpop.permute.xlu1 %554 }
 0x38b   : >> { %v560_v36 = vmul.f32 %v555_v35, %v550_v34 }
 0x38d   : >> { %v562_v38 = vadd.f32 %v560_v36, %v548_v37 }
 0x38f   : >> { %v3563_v47 = vclamps-f32 %v562_v38, 10000.0  }
 0x391   : >> { %v4095_v39 = vmov %v3563_v47 }
 0x392   : >> { %571 = vrot.lane.b32.xlu2 %v4095_v39, %s3264_s7  ;;  %v557_v41 = vpop.permute.xlu1 %556  ;;  %v4098_v47 = vmov %v4095_v39 }
 0x393   : >> { %v561_v43 = vmul.f32 %v557_v41, %v551_v40  ;;  %v3584_v47 = vmov (%p423_p1), 0.0  }
 0x395   : >> { %v563_v44 = vadd.f32 %v561_v43, %v549_v42 }
 0x397   : >> { %v3568_v46 = vclamps-f32 %v563_v44, 10000.0  }
 0x399   : >> { %v4096_v45 = vmov %v3568_v46 }
 0x39a   : >> { %573 = vrot.lane.b32.xlu2 %v4096_v45, %s3264_s7  ;;  %v4097_v46 = vmov %v4096_v45 }
 0x3ec   : >> { %v572_v18 = vpop.permute.xlu2 %571 }
 0x3ed   : >> { %2485 = vst.msk [vmem:[%s2335_s18 + $0x10] sm:$0xff] %vm179_vm1, %v572_v18 }
 0x3f1   : > { %425 = sbr.rel (!%p423_p1) target bundleno = 374 (0x176), region = 128 }
 0x3f4   : >> { %v574_v19 = vpop.permute.xlu2 %573 }
 0x3f5   : >> { %2486 = vst.msk [vmem:[%s2335_s18 + $0x18] sm:$0xff] %vm179_vm1, %v574_v19 }
 0x3f6 LB: >> { %v594_v21 = vld [vmem:[#allocation9 + $0x20] sm:$0xff]  ;;  %s3266_s20 = smov 120   ;;  %v675_v49 = vld [vmem:[#allocation9 + $0x38] sm:$0xff]  ;;  %s589_s21 = ssub.s32 7, %s3214_s19  ;;  %s3214_s19 = sphi %s3588_s19, %s586_s19   ;;  %v3210_v20 = vphi %v3586_v20, %v4100_v20   ;;  %v3206_v47 = vphi %v3584_v47, %v4099_v47  }
 0x3f7   : >> { %2582 = vmatpush.msra.mxu2 %v594_v21  ;;  %620 = vmatpush.msra.mxu0 %v594_v21  ;;  %s3606_s22 = sshll.u32 %s589_s21, 4  ;;  %s3267_s3 = smov 8  }
 0x3f8   : >> { %599 = vrot.lane.b32.xlu0 %v3206_v47, %s3266_s20  ;;  %2583 = vmatpush.msra.mxu3 %v675_v49  ;;  %s591_s24 = scalar_lea.vmem [#allocation4], %s3606_s22  ;;  %s668_s25 = scalar_lea.vmem [#allocation5], %s3606_s22 }
 0x3f9   : >> { %697 = vmatpush.msra.mxu1 %v675_v49  ;;  %v593_v50 = vld [vmem:[%s591_s24 + $0x8] sm:$0xff]  ;;  %v592_v52 = vld [vmem:[%s591_s24] sm:$0xff]  ;;  %s737_s4 = scalar_lea.vmem [#allocation3], %s3606_s22  ;;  %s586_s19 = sadd.s32 1, %s3214_s19  }
 0x3fa   : >> { %v669_v28 = vld [vmem:[%s668_s25] sm:$0xff]  ;;  %v670_v31 = vld [vmem:[%s668_s25 + $0x8] sm:$0xff]  ;;  %p583_p3 = scmp.ge.s32.totalorder %s586_s19, 8  }
 0x3fb   : > { %2850 = vset.pattern.permute.xlu1 (%p583_p3), %v3410_v11  ;;  %2849 = vset.pattern.permute.xlu0 (%p583_p3), %v3400_v1  ;;  %s3268_s5 = smov (%p583_p3), 120   ;;  %s3764_s6 = smov (%p583_p3), 0  }
 0x3fc   : > { %2847 = vset.pattern.permute.xlu2 (%p583_p3), %v3400_v1 }
 0x400   : >> { %597 = vrot.lane.b32.xlu0 %v3210_v20, %s3266_s20 }
 0x408   : > { %777 = vrot.lane.b32.xlu0 (%p583_p3), %v4096_v45, %s3268_s5 }
 0x46a   : >> { %v600_v46 = vpop.permute.xlu0 %599 }
 0x46b   : >> { %2489 = vmatmul.msk.f32.vlgmr.msra.gmra.mxu2 %vm179_vm1, %v600_v46 }
 0x472   : >> { %v598_v48 = vpop.permute.xlu0 %597 }
 0x473   : >> { %2488 = vmatmul.msk.f32.vlgmr.msra.gmra.mxu0 %vm179_vm1, %v598_v48 }
 0x4ee   : >> { %v625_v51 = vpop.f32.mrf.mxu2 }
 0x4ef   : >> { %v629_v53 = vadd.f32 %v625_v51, %v593_v50  ;;  %v844_v50 = vld [vmem:[#allocation9 + $0x48] sm:$0xff] (%p583_p3) }
 0x4f0   : >> { %v622_v54 = vpop.f32.mrf.mxu0 }
 0x4f1   : >> { %v2491_v55 = vmul.f32 -1.442695, %v629_v53  ;;  %v628_v56 = vadd.f32 %v622_v54, %v592_v52 }
 0x4f3   : >> { %2835 = vpow2.f32 %v2491_v55  ;;  %v2490_v57 = vmul.f32 -1.442695, %v628_v56 }
 0x4f5   : >> { %2837 = vpow2.f32 %v2490_v57 }
 0x4f9   : >> { %v2836_v58 = vpop.eup %2835 }
 0x4fa   : >> { %v637_v59 = vadd.f32 1.0, %v2836_v58 }
 0x4fb   : >> { %v2838_v60 = vpop.eup %2837 }
 0x4fc   : >> { %2839 = vrcp.f32 %v637_v59  ;;  %v636_v61 = vadd.f32 1.0, %v2838_v60  ;;  %v664_v6 = vand.u32 2147483648, %v637_v59  ;;  %v662_v8 = vand.u32 2147483647, %v637_v59 }
 0x4fd   : >> { %vm658_vm11 = vweird.f32 %v637_v59 }
 0x4fe   : >> { %2841 = vrcp.f32 %v636_v61  ;;  %v649_v10 = vand.u32 2147483648, %v636_v61  ;;  %v647_v14 = vand.u32 2147483647, %v636_v61  ;;  %v665_v15 = vor.u32 1.1754944e-38, %v664_v6 }
 0x4ff   : >> { %vm663_vm14 = vcmp.eq.f32.partialorder %v662_v8, 8.507059e+37  ;;  %vm643_vm15 = vweird.f32 %v636_v61 }
 0x500   : >> { %v650_v23 = vor.u32 1.1754944e-38, %v649_v10  ;;  %vm648_vm3 = vcmp.eq.f32.partialorder %v647_v14, 8.507059e+37 }
 0x502   : >> { %v2840_v62 = vpop.eup %2839 }
 0x503   : >> { %v654_v63 = vmul.f32 %v2840_v62, %v637_v59  ;;  %vm659_vm10 = vweird.f32 %v2840_v62 }
 0x504   : >> { %v2842_v2 = vpop.eup %2841  ;;  %vm660_vm13 = vmor %vm658_vm11, %vm659_vm10 }
 0x505   : >> { %v655_v3 = vsub.f32 1.0, %v654_v63  ;;  %v639_v5 = vmul.f32 %v2842_v2, %v636_v61  ;;  %vm644_vm12 = vweird.f32 %v2842_v2  ;;  %v3654_v63 = vld [vmem:[#allocation9 + $0x78] ss:$0 sm:$0xff] (%p583_p3) }
 0x506   : >> { %vm645_vm2 = vmor %vm643_vm15, %vm644_vm12 }
 0x507   : >> { %v656_v7 = vmul.f32 %v2840_v62, %v655_v3  ;;  %v640_v9 = vsub.f32 1.0, %v639_v5  ;;  %v3658_v3 = vld [vmem:[#allocation9 + $0x88] ss:$0 sm:$0xff] (%p583_p3) }
 0x509   : >> { %v657_v12 = vadd.f32 %v2840_v62, %v656_v7  ;;  %v641_v13 = vmul.f32 %v2842_v2, %v640_v9 }
 0x50b   : >> { %v661_v16 = vsel %vm660_vm13, %v2840_v62, %v657_v12  ;;  %v642_v17 = vadd.f32 %v2842_v2, %v641_v13  ;;  %v3652_v62 = vld [vmem:[#allocation9 + $0x60] ss:$0 sm:$0xff] (%p583_p3) }
 0x50c   : >> { %v666_v22 = vsel %vm663_vm14, %v665_v15, %v661_v16 }
 0x50d   : >> { %v674_v24 = vmul.f32 %v666_v22, %v600_v46  ;;  %v646_v25 = vsel %vm645_vm2, %v2842_v2, %v642_v17  ;;  %v712_v43 = vsub.f32 1.0, %v666_v22  ;;  %v710_v18 = vmul.f32 %v3206_v47, %v666_v22  ;;  %v3656_v2 = vld [vmem:[#allocation9 + $0x70] ss:$0 sm:$0xff] (%p583_p3) }
 0x50e   : >> { %v651_v26 = vsel %vm648_vm3, %v650_v23, %v646_v25 }
 0x50f   : >> { %2493 = vmatmul.msk.f32.vlgmr.msra.gmra.mxu3 %vm179_vm1, %v674_v24  ;;  %v673_v27 = vmul.f32 %v651_v26, %v598_v48  ;;  %v711_v36 = vsub.f32 1.0, %v651_v26  ;;  %v709_v40 = vmul.f32 %v3210_v20, %v651_v26 }
 0x511   : >> { %2492 = vmatmul.msk.f32.vlgmr.msra.gmra.mxu1 %vm179_vm1, %v673_v27 }
 0x58e   : >> { %v699_v29 = vpop.f32.mrf.mxu1 }
 0x58f   : >> { %v705_v30 = vadd.f32 %v699_v29, %v669_v28 }
 0x591   : >> { %2843 = vtanh.f32 %v705_v30 }
 0x592   : >> { %v702_v32 = vpop.f32.mrf.mxu3 }
 0x593   : >> { %v706_v33 = vadd.f32 %v702_v32, %v670_v31 }
 0x595   : >> { %2845 = vtanh.f32 %v706_v33 }
 0x597   : >> { %v2844_v34 = vpop.eup %2843 }
 0x598   : >> { %715 = vrot.lane.b32.xlu1 %v2844_v34, %s3267_s3 }
 0x59b   : >> { %v2846_v35 = vpop.eup %2845 }
 0x5a0   : >> { %717 = vrot.lane.b32.xlu1 %v2846_v35, %s3267_s3 }
 0x5a8   : > { %775 = vrot.lane.b32.xlu1 (%p583_p3), %v4095_v39, %s3268_s5 }
 0x60a   : >> { %v716_v37 = vpop.permute.xlu1 %715 }
 0x60b   : >> { %v721_v38 = vmul.f32 %v716_v37, %v711_v36 }
 0x60d   : >> { %v723_v41 = vadd.f32 %v721_v38, %v709_v40 }
 0x60f   : >> { %v2494_v42 = vclamps-f32 %v723_v41, 10000.0  }
 0x611   : >> { %731 = vrot.lane.b32.xlu2 %v2494_v42, %s3266_s20  ;;  %v4100_v20 = vmov %v2494_v42  ;;  %742 = vrot.lane.b32.xlu1 (%p583_p3), %v2494_v42, %s3268_s5 }
 0x612   : >> { %v718_v44 = vpop.permute.xlu1 %717  ;;  %v845_v20 = vld [vmem:[#allocation9 + $0x50] sm:$0xff] (%p583_p3) }
 0x613   : >> { %v722_v19 = vmul.f32 %v718_v44, %v712_v43  ;;  %862 = vmatpush.msra.mxu2 (%p583_p3), %v845_v20 }
 0x615   : >> { %v724_v21 = vadd.f32 %v722_v19, %v710_v18  ;;  %863 = vmatpush.msra.mxu2 (%p583_p3), %v844_v50 }
 0x616   : > { %2506 = vmatmul.msk.f32.vlgmr.msra.gmra.mxu2 (%p583_p3), %vm189_vm0, %v3405_v4  ;;  %v2859_v4 = vld [vmem:[#allocation9 + $0x58] ss:$0 sm:$0xff] (%p583_p3) }
 0x617   : >> { %v2495_v46 = vclamps-f32 %v724_v21, 10000.0  }
 0x619   : >> { %733 = vrot.lane.b32.xlu2 %v2495_v46, %s3266_s20  ;;  %v4099_v47 = vmov %v2495_v46  ;;  %744 = vrot.lane.b32.xlu0 (%p583_p3), %v2495_v46, %s3268_s5 }
 0x61a   : > { %v778_v47 = vpop.permute.xlu0 (%p583_p3), %777  ;;  %v776_v51 = vpop.permute.xlu1 (%p583_p3), %775 }
 0x61b   : > { %2500 = vmatpush.xpose.msk.msra.mxu1 (%p583_p3), %vm179_vm1, %v778_v47 }
 0x61f   : > { %2501 = vmatpush.xpose.msk.msra.mxu1 (%p583_p3), %vm179_vm1, %v776_v51 }
 0x622   : > { %2502 = vmatmul.msk.f32.vlgmr.msra.gmra.mxu1 (%p583_p3), %vm179_vm1, %v776_v51 }
 0x62a   : > { %2503 = vmatmul.msk.f32.gmra.mxu1 (%p583_p3), %vm179_vm1, %v778_v47 }
 0x66b   : >> { %v732_v48 = vpop.permute.xlu2 %731 }
 0x66c   : >> { %738 = vst.msk [vmem:[%s737_s4] sm:$0xff] %vm179_vm1, %v732_v48 }
 0x670   : > { %585 = sbr.rel (!%p583_p3) target bundleno = 1014 (0x3f6), region = 139 }
 0x673   : >> { %v734_v49 = vpop.permute.xlu2 %733 }
 0x674   : >> { %739 = vst.msk [vmem:[%s737_s4 + $0x8] sm:$0xff] %vm179_vm1, %v734_v49 }
 0x683   : > { %v743_v39 = vpop.permute.xlu1 %742 }
 0x68b   : > { %v745_v52 = vpop.permute.xlu0 %744 }
 0x68c   : > { %2496 = vmatpush.xpose.msk.msra.mxu0 %vm179_vm1, %v745_v52  ;;  %2584 = vmatpush.xpose.msk.msra.mxu3 %vm179_vm1, %v745_v52 }
 0x690   : > { %2497 = vmatpush.xpose.msk.msra.mxu0 %vm179_vm1, %v743_v39  ;;  %2585 = vmatpush.xpose.msk.msra.mxu3 %vm179_vm1, %v743_v39 }
 0x693   : > { %2498 = vmatmul.msk.f32.vlgmr.msra.gmra.mxu0 %vm179_vm1, %v743_v39  ;;  %2499 = vmatmul.msk.f32.vlgmr.msra.gmra.mxu3 %vm179_vm1, %v745_v52 }
 0x699   : > { %v865_v45 = vpop.f32.mrf.mxu2 }
 0x69a   : > { %v866_v53 = vadd.f32 %v2859_v4, %v865_v45 }
 0x69c   : > { %v868_v54 = vperm.slane %v866_v53, 0  ;;  %v881_v55 = vperm.slane %v866_v53, 1  ;;  %v894_v56 = vperm.slane %v866_v53, 2  ;;  %v907_v57 = vperm.slane %v866_v53, 3 }
 0x69d   : > { %v920_v58 = vperm.slane %v866_v53, 4  ;;  %v933_v59 = vperm.slane %v866_v53, 5  ;;  %v946_v60 = vperm.slane %v866_v53, 6  ;;  %v959_v61 = vperm.slane %v866_v53, 7 }
 0x69e   : > { %873 = vperm.xlu2 %2847, %v868_v54   ;;  %892 = vperm.xlu1 %2850, %v881_v55  }
 0x69f   : > { %886 = vperm.xlu0 %2849, %v881_v55   ;;  %v800_v14 = vpop.f32.mrf.mxu1 }
 0x6a6   : > { %2848 = vset.pattern.permute.xlu2 %v3410_v11  ;;  %905 = vperm.xlu1 %2850, %v894_v56  }
 0x6a7   : > { %2852 = vset.pattern.permute.xlu0 %v3410_v11  ;;  %v803_v32 = vpop.f32.mrf.mxu1 }
 0x6ae   : > { %879 = vperm.xlu2 %2848, %v868_v54   ;;  %2853 = vset.pattern.permute.xlu1 %v3400_v1 }
 0x6af   : > { %918 = vperm.xlu0 %2852, %v907_v57  }
 0x6b6   : > { %2851 = vset.pattern.permute.xlu2 %v3400_v1  ;;  %925 = vperm.xlu1 %2853, %v920_v58  }
 0x6b7   : > { %2855 = vset.pattern.permute.xlu0 %v3400_v1 }
 0x6be   : > { %899 = vperm.xlu2 %2851, %v894_v56   ;;  %938 = vperm.xlu1 %2853, %v933_v59  }
 0x6bf   : > { %951 = vperm.xlu0 %2855, %v946_v60  }
 0x6c6   : > { %912 = vperm.xlu2 %2851, %v907_v57   ;;  %2856 = vset.pattern.permute.xlu1 %v3410_v11 }
 0x6c7   : > { %2858 = vset.pattern.permute.xlu0 %v3410_v11 }
 0x6ce   : > { %2854 = vset.pattern.permute.xlu2 %v3410_v11  ;;  %957 = vperm.xlu1 %2856, %v946_v60  }
 0x6d6   : > { %931 = vperm.xlu2 %2854, %v920_v58   ;;  %970 = vperm.xlu1 %2856, %v959_v61  }
 0x6de   : > { %944 = vperm.xlu2 %2854, %v933_v59  }
 0x6e6   : > { %2857 = vset.pattern.permute.xlu2 %v3400_v1 }
 0x6ee   : > { %964 = vperm.xlu2 %2857, %v959_v61  }
 0x6f8   : > { %v874_v5 = vpop.permute.xlu2 %873 }
 0x6f9   : > { %v974_v6 = vmul.f32 %v3652_v62, %v874_v5  ;;  %v1026_v11 = vmul.f32 %v3654_v63, %v874_v5 }
 0x6fb   : > { %v992_v7 = vadd.f32 %v3656_v2, %v974_v6  ;;  %v1044_v8 = vadd.f32 %v3658_v3, %v1026_v11 }
 0x6fd   : > { %1008 = vst.msk [vmem:[#allocation4] sm:$0xff] %vm189_vm0, %v992_v7 }
 0x6fe   : > { %1060 = vst.msk [vmem:[#allocation5] sm:$0xff] %vm179_vm1, %v1044_v8 }
 0x708   : > { %v880_v1 = vpop.permute.xlu2 %879 }
 0x709   : > { %v975_v9 = vmul.f32 %v3652_v62, %v880_v1  ;;  %v1027_v10 = vmul.f32 %v3654_v63, %v880_v1 }
 0x70b   : > { %v993_v12 = vadd.f32 %v3656_v2, %v975_v9  ;;  %v1045_v13 = vadd.f32 %v3658_v3, %v1027_v10 }
 0x70d   : > { %1009 = vst.msk [vmem:[#allocation4 + $0x8] sm:$0xff] %vm189_vm0, %v993_v12 }
 0x70e   : > { %1061 = vst.msk [vmem:[#allocation5 + $0x8] sm:$0xff] %vm179_vm1, %v1045_v13 }
 0x710   : > { %v893_v15 = vpop.permute.xlu1 %892  ;;  %v767_v25 = vpop.f32.mrf.mxu0 }
 0x711   : > { %v977_v16 = vmul.f32 %v3652_v62, %v893_v15  ;;  %v1029_v17 = vmul.f32 %v3654_v63, %v893_v15  ;;  %v887_v22 = vpop.permute.xlu0 %886  ;;  %v801_v28 = vadd.f32 %v800_v14, %v767_v25 }
 0x712   : > { %v976_v23 = vmul.f32 %v3652_v62, %v887_v22  ;;  %v1028_v24 = vmul.f32 %v3654_v63, %v887_v22 }
 0x713   : > { %v995_v26 = vadd.f32 %v3656_v2, %v977_v16  ;;  %v1047_v27 = vadd.f32 %v3658_v3, %v1029_v17  ;;  %v2504_v31 = vmul.f32 -1.442695, %v801_v28 }
 0x714   : > { %v994_v29 = vadd.f32 %v3656_v2, %v976_v23  ;;  %v1046_v30 = vadd.f32 %v3658_v3, %v1028_v24 }
 0x715   : > { %1011 = vst.msk [vmem:[#allocation4 + $0x18] sm:$0xff] %vm189_vm0, %v995_v26  ;;  %2864 = vpow2.f32 %v2504_v31 }
 0x716   : > { %1063 = vst.msk [vmem:[#allocation5 + $0x18] sm:$0xff] %vm179_vm1, %v1047_v27  ;;  %v770_v40 = vpop.f32.mrf.mxu3 }
 0x717   : > { %1010 = vst.msk [vmem:[#allocation4 + $0x10] sm:$0xff] %vm189_vm0, %v994_v29  ;;  %v804_v41 = vadd.f32 %v803_v32, %v770_v40 }
 0x718   : > { %1062 = vst.msk [vmem:[#allocation5 + $0x10] sm:$0xff] %vm179_vm1, %v1046_v30  ;;  %v900_v33 = vpop.permute.xlu2 %899  ;;  %v906_v34 = vpop.permute.xlu1 %905 }
 0x719   : > { %v978_v35 = vmul.f32 %v3652_v62, %v900_v33  ;;  %v1030_v36 = vmul.f32 %v3654_v63, %v900_v33  ;;  %v979_v37 = vmul.f32 %v3652_v62, %v906_v34  ;;  %v1031_v38 = vmul.f32 %v3654_v63, %v906_v34 }
 0x71a   : > { %v2505_v19 = vmul.f32 -1.442695, %v804_v41 }
 0x71b   : > { %v996_v42 = vadd.f32 %v3656_v2, %v978_v35  ;;  %v1048_v43 = vadd.f32 %v3658_v3, %v1030_v36  ;;  %v997_v44 = vadd.f32 %v3656_v2, %v979_v37  ;;  %v1049_v18 = vadd.f32 %v3658_v3, %v1031_v38  ;;  %v2865_v21 = vpop.eup %2864 }
 0x71c   : > { %v812_v46 = vadd.f32 1.0, %v2865_v21  ;;  %2866 = vpow2.f32 %v2505_v19 }
 0x71d   : > { %1012 = vst.msk [vmem:[#allocation4 + $0x20] sm:$0xff] %vm189_vm0, %v996_v42 }
 0x71e   : > { %1064 = vst.msk [vmem:[#allocation5 + $0x20] sm:$0xff] %vm179_vm1, %v1048_v43  ;;  %2868 = vrcp.f32 %v812_v46  ;;  %vm819_vm4 = vweird.f32 %v812_v46  ;;  %v823_v57 = vand.u32 2147483647, %v812_v46  ;;  %v825_v58 = vand.u32 2147483648, %v812_v46 }
 0x71f   : > { %1013 = vst.msk [vmem:[#allocation4 + $0x28] sm:$0xff] %vm189_vm0, %v997_v44 }
 0x720   : > { %1065 = vst.msk [vmem:[#allocation5 + $0x28] sm:$0xff] %vm179_vm1, %v1049_v18  ;;  %v913_v48 = vpop.permute.xlu2 %912  ;;  %v826_v8 = vor.u32 1.1754944e-38, %v825_v58  ;;  %vm824_vm7 = vcmp.eq.f32.partialorder %v823_v57, 8.507059e+37 }
 0x721   : > { %v980_v49 = vmul.f32 %v3652_v62, %v913_v48  ;;  %v1032_v20 = vmul.f32 %v3654_v63, %v913_v48  ;;  %v919_v50 = vpop.permute.xlu0 %918 }
 0x722   : > { %v981_v47 = vmul.f32 %v3652_v62, %v919_v50  ;;  %v1033_v51 = vmul.f32 %v3654_v63, %v919_v50  ;;  %v2867_v4 = vpop.eup %2866 }
 0x723   : > { %v998_v52 = vadd.f32 %v3656_v2, %v980_v49  ;;  %v1050_v39 = vadd.f32 %v3658_v3, %v1032_v20  ;;  %v813_v54 = vadd.f32 1.0, %v2867_v4 }
 0x724   : > { %v999_v45 = vadd.f32 %v3656_v2, %v981_v47  ;;  %v1051_v53 = vadd.f32 %v3658_v3, %v1033_v51  ;;  %v2869_v55 = vpop.eup %2868 }
 0x725   : > { %1014 = vst.msk [vmem:[#allocation4 + $0x30] sm:$0xff] %vm189_vm0, %v998_v52  ;;  %v815_v56 = vmul.f32 %v2869_v55, %v812_v46  ;;  %2870 = vrcp.f32 %v813_v54  ;;  %vm820_vm5 = vweird.f32 %v2869_v55  ;;  %v838_v15 = vand.u32 2147483647, %v813_v54 }
 0x726   : > { %1066 = vst.msk [vmem:[#allocation5 + $0x30] sm:$0xff] %vm179_vm1, %v1050_v39  ;;  %vm821_vm6 = vmor %vm819_vm4, %vm820_vm5  ;;  %v840_v16 = vand.u32 2147483648, %v813_v54  ;;  %vm834_vm9 = vweird.f32 %v813_v54 }
 0x727   : > { %1015 = vst.msk [vmem:[#allocation4 + $0x38] sm:$0xff] %vm189_vm0, %v999_v45  ;;  %v816_v60 = vsub.f32 1.0, %v815_v56  ;;  %vm839_vm11 = vcmp.eq.f32.partialorder %v838_v15, 8.507059e+37  ;;  %v3760_v56 = vmov 0.0  }
 0x728   : > { %1067 = vst.msk [vmem:[#allocation5 + $0x38] sm:$0xff] %vm179_vm1, %v1051_v53  ;;  %v926_v59 = vpop.permute.xlu1 %925  ;;  %v841_v36 = vor.u32 1.1754944e-38, %v840_v16 }
 0x729   : > { %v982_v61 = vmul.f32 %v3652_v62, %v926_v59  ;;  %v1034_v5 = vmul.f32 %v3654_v63, %v926_v59  ;;  %v817_v6 = vmul.f32 %v2869_v55, %v816_v60 }
 0x72b   : > { %v1000_v11 = vadd.f32 %v3656_v2, %v982_v61  ;;  %v1052_v7 = vadd.f32 %v3658_v3, %v1034_v5  ;;  %v2871_v1 = vpop.eup %2870  ;;  %v818_v9 = vadd.f32 %v2869_v55, %v817_v6 }
 0x72c   : > { %v830_v10 = vmul.f32 %v2871_v1, %v813_v54  ;;  %vm835_vm8 = vweird.f32 %v2871_v1 }
 0x72d   : > { %1016 = vst.msk [vmem:[#allocation4 + $0x40] sm:$0xff] %vm189_vm0, %v1000_v11  ;;  %v822_v12 = vsel %vm821_vm6, %v2869_v55, %v818_v9  ;;  %vm836_vm10 = vmor %vm834_vm9, %vm835_vm8 }
 0x72e   : > { %1068 = vst.msk [vmem:[#allocation5 + $0x40] sm:$0xff] %vm179_vm1, %v1052_v7  ;;  %v3714_v13 = vsel %vm824_vm7, %v826_v8, %v822_v12   ;;  %v831_v14 = vsub.f32 1.0, %v830_v10 }
 0x730   : > { %v932_v17 = vpop.permute.xlu2 %931  ;;  %v939_v22 = vpop.permute.xlu1 %938  ;;  %v832_v28 = vmul.f32 %v2871_v1, %v831_v14 }
 0x731   : > { %v983_v23 = vmul.f32 %v3652_v62, %v932_v17  ;;  %v1035_v24 = vmul.f32 %v3654_v63, %v932_v17  ;;  %v984_v25 = vmul.f32 %v3652_v62, %v939_v22  ;;  %v1036_v26 = vmul.f32 %v3654_v63, %v939_v22  ;;  %v952_v27 = vpop.permute.xlu0 %951 }
 0x732   : > { %v986_v29 = vmul.f32 %v3652_v62, %v952_v27  ;;  %v1038_v30 = vmul.f32 %v3654_v63, %v952_v27  ;;  %v833_v34 = vadd.f32 %v2871_v1, %v832_v28 }
 0x733   : > { %v1001_v31 = vadd.f32 %v3656_v2, %v983_v23  ;;  %v1053_v32 = vadd.f32 %v3658_v3, %v1035_v24  ;;  %v1002_v33 = vadd.f32 %v3656_v2, %v984_v25  ;;  %v1054_v35 = vadd.f32 %v3658_v3, %v1036_v26 }
 0x734   : > { %v1004_v37 = vadd.f32 %v3656_v2, %v986_v29  ;;  %v837_v38 = vsel %vm836_vm10, %v2871_v1, %v833_v34  ;;  %v1056_v40 = vadd.f32 %v3658_v3, %v1038_v30 }
 0x735   : > { %1017 = vst.msk [vmem:[#allocation4 + $0x48] sm:$0xff] %vm189_vm0, %v1001_v31  ;;  %v3730_v41 = vsel %vm839_vm11, %v841_v36, %v837_v38  }
 0x736   : > { %1069 = vst.msk [vmem:[#allocation5 + $0x48] sm:$0xff] %vm179_vm1, %v1053_v32 }
 0x737   : > { %1018 = vst.msk [vmem:[#allocation4 + $0x50] sm:$0xff] %vm189_vm0, %v1002_v33 }
 0x738   : > { %1070 = vst.msk [vmem:[#allocation5 + $0x50] sm:$0xff] %vm179_vm1, %v1054_v35  ;;  %v945_v42 = vpop.permute.xlu2 %944 }
 0x739   : > { %1020 = vst.msk [vmem:[#allocation4 + $0x60] sm:$0xff] %vm189_vm0, %v1004_v37  ;;  %v985_v43 = vmul.f32 %v3652_v62, %v945_v42  ;;  %v1037_v44 = vmul.f32 %v3654_v63, %v945_v42 }
 0x73a   : > { %1072 = vst.msk [vmem:[#allocation5 + $0x60] sm:$0xff] %vm179_vm1, %v1056_v40 }
 0x73b   : > { %v1003_v18 = vadd.f32 %v3656_v2, %v985_v43  ;;  %v1055_v19 = vadd.f32 %v3658_v3, %v1037_v44 }
 0x73d   : > { %1019 = vst.msk [vmem:[#allocation4 + $0x58] sm:$0xff] %vm189_vm0, %v1003_v18 }
 0x73e   : > { %1071 = vst.msk [vmem:[#allocation5 + $0x58] sm:$0xff] %vm179_vm1, %v1055_v19 }
 0x740   : > { %v958_v21 = vpop.permute.xlu1 %957 }
 0x741   : > { %v987_v46 = vmul.f32 %v3652_v62, %v958_v21  ;;  %v1039_v48 = vmul.f32 %v3654_v63, %v958_v21 }
 0x743   : > { %v1005_v49 = vadd.f32 %v3656_v2, %v987_v46  ;;  %v1057_v20 = vadd.f32 %v3658_v3, %v1039_v48 }
 0x745   : > { %1021 = vst.msk [vmem:[#allocation4 + $0x68] sm:$0xff] %vm189_vm0, %v1005_v49 }
 0x746   : > { %1073 = vst.msk [vmem:[#allocation5 + $0x68] sm:$0xff] %vm179_vm1, %v1057_v20 }
 0x748   : > { %v965_v50 = vpop.permute.xlu2 %964  ;;  %v971_v47 = vpop.permute.xlu1 %970 }
 0x749   : > { %v988_v51 = vmul.f32 %v3652_v62, %v965_v50  ;;  %v1040_v52 = vmul.f32 %v3654_v63, %v965_v50  ;;  %v989_v39 = vmul.f32 %v3652_v62, %v971_v47  ;;  %v1041_v4 = vmul.f32 %v3654_v63, %v971_v47 }
 0x74a   : > { %v3762_v62 = vmov 0.0  }
 0x74b   : > { %v1006_v45 = vadd.f32 %v3656_v2, %v988_v51  ;;  %v1058_v53 = vadd.f32 %v3658_v3, %v1040_v52  ;;  %v1007_v54 = vadd.f32 %v3656_v2, %v989_v39  ;;  %v1059_v55 = vadd.f32 %v3658_v3, %v1041_v4 }
 0x74d   : > { %1022 = vst.msk [vmem:[#allocation4 + $0x70] sm:$0xff] %vm189_vm0, %v1006_v45 }
 0x74e   : > { %1074 = vst.msk [vmem:[#allocation5 + $0x70] sm:$0xff] %vm179_vm1, %v1058_v53 }
 0x74f   : > { %1023 = vst.msk [vmem:[#allocation4 + $0x78] sm:$0xff] %vm189_vm0, %v1007_v54 }
 0x750   : > { %1075 = vst.msk [vmem:[#allocation5 + $0x78] sm:$0xff] %vm179_vm1, %v1059_v55 }
 0x751 LB: >> { %v1088_v63 = vld [vmem:[#allocation9 + $0x68] sm:$0xff]  ;;  %s3269_s27 = smov 120   ;;  %v1169_v57 = vld [vmem:[#allocation9 + $0x80] sm:$0xff]  ;;  %s3782_s7 = sshll.u32 %s3226_s6, 4  ;;  %s3226_s6 = sphi %s3764_s6, %s1081_s6   ;;  %v3222_v62 = vphi %v3762_v62, %v2514_v62   ;;  %v3218_v56 = vphi %v3760_v56, %v2515_v56  }
 0x752   : >> { %2586 = vmatpush.msra.mxu2 %v1088_v63  ;;  %1114 = vmatpush.msra.mxu0 %v1088_v63  ;;  %s1085_s8 = scalar_lea.vmem [#allocation4], %s3782_s7  ;;  %s1162_s13 = scalar_lea.vmem [#allocation5], %s3782_s7 }
 0x753   : >> { %1093 = vrot.lane.b32.xlu0 %v3218_v56, %s3269_s27  ;;  %2587 = vmatpush.msra.mxu3 %v1169_v57  ;;  %s3270_s14 = smov 8   ;;  %s2348_s15 = scalar_lea.vmem [#allocation2], %s3782_s7 }
 0x754   : >> { %1191 = vmatpush.msra.mxu1 %v1169_v57  ;;  %s1081_s6 = sadd.s32 1, %s3226_s6  }
 0x755   : >> { %p1078_p5 = scmp.ge.s32.totalorder %s1081_s6, 8  }
 0x756   : >> { %v1087_v58 = vld [vmem:[%s1085_s8 + $0x8] sm:$0xff]  ;;  %v1086_v60 = vld [vmem:[%s1085_s8] sm:$0xff]  ;;  %v3802_v55 = vmov (%p1078_p5), 0.0   ;;  %v3804_v63 = vmov (%p1078_p5), 0.0   ;;  %s3806_s18 = smov (%p1078_p5), 0  }
 0x757   : >> { %v1163_v40 = vld [vmem:[%s1162_s13] sm:$0xff]  ;;  %v1164_v44 = vld [vmem:[%s1162_s13 + $0x8] sm:$0xff] }
 0x75b   : >> { %1091 = vrot.lane.b32.xlu0 %v3222_v62, %s3269_s27 }
 0x7c5   : >> { %v1094_v2 = vpop.permute.xlu0 %1093 }
 0x7c6   : >> { %2509 = vmatmul.msk.f32.vlgmr.msra.gmra.mxu2 %vm179_vm1, %v1094_v2 }
 0x7cd   : >> { %v1092_v3 = vpop.permute.xlu0 %1091 }
 0x7ce   : >> { %2508 = vmatmul.msk.f32.vlgmr.msra.gmra.mxu0 %vm179_vm1, %v1092_v3 }
 0x849   : >> { %v1119_v59 = vpop.f32.mrf.mxu2 }
 0x84a   : >> { %v1123_v61 = vadd.f32 %v1119_v59, %v1087_v58 }
 0x84b   : >> { %v1116_v5 = vpop.f32.mrf.mxu0 }
 0x84c   : >> { %v2511_v6 = vmul.f32 -1.442695, %v1123_v61  ;;  %v1122_v11 = vadd.f32 %v1116_v5, %v1086_v60 }
 0x84e   : >> { %2872 = vpow2.f32 %v2511_v6  ;;  %v2510_v7 = vmul.f32 -1.442695, %v1122_v11 }
 0x850   : >> { %2874 = vpow2.f32 %v2510_v7 }
 0x854   : >> { %v2873_v8 = vpop.eup %2872 }
 0x855   : >> { %v1131_v1 = vadd.f32 1.0, %v2873_v8 }
 0x856   : >> { %v2875_v9 = vpop.eup %2874 }
 0x857   : >> { %2876 = vrcp.f32 %v1131_v1  ;;  %v1130_v10 = vadd.f32 1.0, %v2875_v9  ;;  %v1158_v22 = vand.u32 2147483648, %v1131_v1  ;;  %v1156_v24 = vand.u32 2147483647, %v1131_v1 }
 0x858   : >> { %vm1152_vm13 = vweird.f32 %v1131_v1 }
 0x859   : >> { %2878 = vrcp.f32 %v1130_v10  ;;  %v1143_v26 = vand.u32 2147483648, %v1130_v10  ;;  %v1141_v29 = vand.u32 2147483647, %v1130_v10  ;;  %v1159_v30 = vor.u32 1.1754944e-38, %v1158_v22 }
 0x85a   : >> { %vm1157_vm2 = vcmp.eq.f32.partialorder %v1156_v24, 8.507059e+37  ;;  %vm1137_vm3 = vweird.f32 %v1130_v10 }
 0x85b   : >> { %v1144_v34 = vor.u32 1.1754944e-38, %v1143_v26  ;;  %vm1142_vm5 = vcmp.eq.f32.partialorder %v1141_v29, 8.507059e+37 }
 0x85d   : >> { %v2877_v12 = vpop.eup %2876 }
 0x85e   : >> { %v1148_v14 = vmul.f32 %v2877_v12, %v1131_v1  ;;  %vm1153_vm12 = vweird.f32 %v2877_v12 }
 0x85f   : >> { %v2879_v15 = vpop.eup %2878  ;;  %vm1154_vm15 = vmor %vm1152_vm13, %vm1153_vm12 }
 0x860   : >> { %v1149_v16 = vsub.f32 1.0, %v1148_v14  ;;  %v1133_v17 = vmul.f32 %v2879_v15, %v1130_v10  ;;  %vm1138_vm14 = vweird.f32 %v2879_v15 }
 0x861   : >> { %vm1139_vm4 = vmor %vm1137_vm3, %vm1138_vm14 }
 0x862   : >> { %v1150_v23 = vmul.f32 %v2877_v12, %v1149_v16  ;;  %v1134_v25 = vsub.f32 1.0, %v1133_v17 }
 0x864   : >> { %v1151_v27 = vadd.f32 %v2877_v12, %v1150_v23  ;;  %v1135_v28 = vmul.f32 %v2879_v15, %v1134_v25 }
 0x866   : >> { %v1155_v31 = vsel %vm1154_vm15, %v2877_v12, %v1151_v27  ;;  %v1136_v32 = vadd.f32 %v2879_v15, %v1135_v28 }
 0x867   : >> { %v1160_v33 = vsel %vm1157_vm2, %v1159_v30, %v1155_v31 }
 0x868   : >> { %v1168_v35 = vmul.f32 %v1160_v33, %v1094_v2  ;;  %v1140_v36 = vsel %vm1139_vm4, %v2879_v15, %v1136_v32  ;;  %v1206_v51 = vsub.f32 1.0, %v1160_v33  ;;  %v1204_v39 = vmul.f32 %v3218_v56, %v1160_v33 }
 0x869   : >> { %v1145_v37 = vsel %vm1142_vm5, %v1144_v34, %v1140_v36 }
 0x86a   : >> { %2513 = vmatmul.msk.f32.vlgmr.msra.gmra.mxu3 %vm179_vm1, %v1168_v35  ;;  %v1167_v38 = vmul.f32 %v1145_v37, %v1092_v3  ;;  %v1205_v48 = vsub.f32 1.0, %v1145_v37  ;;  %v1203_v50 = vmul.f32 %v3222_v62, %v1145_v37 }
 0x86c   : >> { %2512 = vmatmul.msk.f32.vlgmr.msra.gmra.mxu1 %vm179_vm1, %v1167_v38 }
 0x8e9   : >> { %v1193_v42 = vpop.f32.mrf.mxu1 }
 0x8ea   : >> { %v1199_v43 = vadd.f32 %v1193_v42, %v1163_v40 }
 0x8ec   : >> { %2880 = vtanh.f32 %v1199_v43 }
 0x8ed   : >> { %v1196_v18 = vpop.f32.mrf.mxu3 }
 0x8ee   : >> { %v1200_v19 = vadd.f32 %v1196_v18, %v1164_v44 }
 0x8f0   : >> { %2882 = vtanh.f32 %v1200_v19 }
 0x8f2   : >> { %v2881_v21 = vpop.eup %2880 }
 0x8f3   : >> { %1209 = vrot.lane.b32.xlu1 %v2881_v21, %s3270_s14 }
 0x8f6   : >> { %v2883_v46 = vpop.eup %2882 }
 0x8fb   : >> { %1211 = vrot.lane.b32.xlu1 %v2883_v46, %s3270_s14 }
 0x965   : >> { %v1210_v49 = vpop.permute.xlu1 %1209 }
 0x966   : >> { %v1215_v20 = vmul.f32 %v1210_v49, %v1205_v48 }
 0x968   : >> { %v1217_v47 = vadd.f32 %v1215_v20, %v1203_v50 }
 0x96a   : >> { %v2514_v62 = vclamps-f32 %v1217_v47, 10000.0  }
 0x96c   : >> { %1226 = vrot.lane.b32.xlu2 %v2514_v62, %s3269_s27 }
 0x96d   : >> { %v1212_v52 = vpop.permute.xlu1 %1211 }
 0x96e   : >> { %v1216_v4 = vmul.f32 %v1212_v52, %v1206_v51 }
 0x970   : >> { %v1218_v45 = vadd.f32 %v1216_v4, %v1204_v39 }
 0x972   : >> { %v2515_v56 = vclamps-f32 %v1218_v45, 10000.0  }
 0x974   : >> { %1228 = vrot.lane.b32.xlu2 %v2515_v56, %s3269_s27 }
 0x9c6   : >> { %v1227_v53 = vpop.permute.xlu2 %1226 }
 0x9c7   : >> { %2517 = vst.msk [vmem:[%s2348_s15 + $0x10] sm:$0xff] %vm179_vm1, %v1227_v53 }
 0x9cb   : > { %1080 = sbr.rel (!%p1078_p5) target bundleno = 1873 (0x751), region = 150 }
 0x9ce   : >> { %v1229_v54 = vpop.permute.xlu2 %1228 }
 0x9cf   : >> { %2518 = vst.msk [vmem:[%s2348_s15 + $0x18] sm:$0xff] %vm179_vm1, %v1229_v54 }
 0x9d0 LB: >> { %v1249_v62 = vld [vmem:[#allocation9 + $0x68] sm:$0xff]  ;;  %s3271_s19 = smov 120   ;;  %v1330_v3 = vld [vmem:[#allocation9 + $0x80] sm:$0xff]  ;;  %s1244_s20 = ssub.s32 7, %s3238_s18  ;;  %s3238_s18 = sphi %s3806_s18, %s1241_s18   ;;  %v3234_v63 = vphi %v3804_v63, %v2526_v63   ;;  %v3230_v55 = vphi %v3802_v55, %v2527_v55  }
 0x9d1   : >> { %2588 = vmatpush.msra.mxu2 %v1249_v62  ;;  %1275 = vmatpush.msra.mxu0 %v1249_v62  ;;  %s3824_s21 = sshll.u32 %s1244_s20, 4  ;;  %s3272_s25 = smov 8  }
 0x9d2   : >> { %1254 = vrot.lane.b32.xlu0 %v3230_v55, %s3271_s19  ;;  %2589 = vmatpush.msra.mxu3 %v1330_v3  ;;  %s1246_s22 = scalar_lea.vmem [#allocation4], %s3824_s21  ;;  %s1323_s24 = scalar_lea.vmem [#allocation5], %s3824_s21 }
 0x9d3   : >> { %1352 = vmatpush.msra.mxu1 %v1330_v3  ;;  %v1248_v57 = vld [vmem:[%s1246_s22 + $0x8] sm:$0xff]  ;;  %v1247_v59 = vld [vmem:[%s1246_s22] sm:$0xff]  ;;  %s1392_s3 = scalar_lea.vmem [#allocation3], %s3824_s21  ;;  %s1241_s18 = sadd.s32 1, %s3238_s18  }
 0x9d4   : >> { %v1324_v38 = vld [vmem:[%s1323_s24] sm:$0xff]  ;;  %v1325_v43 = vld [vmem:[%s1323_s24 + $0x8] sm:$0xff]  ;;  %p1238_p12 = scmp.ge.s32.totalorder %s1241_s18, 8  }
 0x9d5   : > { %v3844_v54 = vmov (%p1238_p12), 0.0   ;;  %v3846_v62 = vmov (%p1238_p12), 0.0   ;;  %s3854_s4 = smov (%p1238_p12), 0  }
 0x9da   : >> { %1252 = vrot.lane.b32.xlu0 %v3234_v63, %s3271_s19 }
 0xa44   : >> { %v1255_v56 = vpop.permute.xlu0 %1254 }
 0xa45   : >> { %2521 = vmatmul.msk.f32.vlgmr.msra.gmra.mxu2 %vm179_vm1, %v1255_v56 }
 0xa4c   : >> { %v1253_v2 = vpop.permute.xlu0 %1252 }
 0xa4d   : >> { %2520 = vmatmul.msk.f32.vlgmr.msra.gmra.mxu0 %vm179_vm1, %v1253_v2 }
 0xac8   : >> { %v1280_v58 = vpop.f32.mrf.mxu2 }
 0xac9   : >> { %v1284_v60 = vadd.f32 %v1280_v58, %v1248_v57 }
 0xaca   : >> { %v1277_v61 = vpop.f32.mrf.mxu0 }
 0xacb   : >> { %v2523_v5 = vmul.f32 -1.442695, %v1284_v60  ;;  %v1283_v6 = vadd.f32 %v1277_v61, %v1247_v59 }
 0xacd   : >> { %2884 = vpow2.f32 %v2523_v5  ;;  %v2522_v11 = vmul.f32 -1.442695, %v1283_v6 }
 0xacf   : >> { %2886 = vpow2.f32 %v2522_v11 }
 0xad3   : >> { %v2885_v7 = vpop.eup %2884 }
 0xad4   : >> { %v1292_v8 = vadd.f32 1.0, %v2885_v7 }
 0xad5   : >> { %v2887_v1 = vpop.eup %2886 }
 0xad6   : >> { %2888 = vrcp.f32 %v1292_v8  ;;  %v1291_v9 = vadd.f32 1.0, %v2887_v1  ;;  %v1319_v17 = vand.u32 2147483648, %v1292_v8  ;;  %v1317_v23 = vand.u32 2147483647, %v1292_v8 }
 0xad7   : >> { %vm1313_vm7 = vweird.f32 %v1292_v8 }
 0xad8   : >> { %2890 = vrcp.f32 %v1291_v9  ;;  %v1304_v25 = vand.u32 2147483648, %v1291_v9  ;;  %v1302_v28 = vand.u32 2147483647, %v1291_v9  ;;  %v1320_v29 = vor.u32 1.1754944e-38, %v1319_v17 }
 0xad9   : >> { %vm1318_vm10 = vcmp.eq.f32.partialorder %v1317_v23, 8.507059e+37  ;;  %vm1298_vm11 = vweird.f32 %v1291_v9 }
 0xada   : >> { %v1305_v33 = vor.u32 1.1754944e-38, %v1304_v25  ;;  %vm1303_vm13 = vcmp.eq.f32.partialorder %v1302_v28, 8.507059e+37 }
 0xadc   : >> { %v2889_v10 = vpop.eup %2888 }
 0xadd   : >> { %v1309_v12 = vmul.f32 %v2889_v10, %v1292_v8  ;;  %vm1314_vm6 = vweird.f32 %v2889_v10 }
 0xade   : >> { %v2891_v14 = vpop.eup %2890  ;;  %vm1315_vm9 = vmor %vm1313_vm7, %vm1314_vm6 }
 0xadf   : >> { %v1310_v15 = vsub.f32 1.0, %v1309_v12  ;;  %v1294_v16 = vmul.f32 %v2891_v14, %v1291_v9  ;;  %vm1299_vm8 = vweird.f32 %v2891_v14 }
 0xae0   : >> { %vm1300_vm12 = vmor %vm1298_vm11, %vm1299_vm8 }
 0xae1   : >> { %v1311_v22 = vmul.f32 %v2889_v10, %v1310_v15  ;;  %v1295_v24 = vsub.f32 1.0, %v1294_v16 }
 0xae3   : >> { %v1312_v26 = vadd.f32 %v2889_v10, %v1311_v22  ;;  %v1296_v27 = vmul.f32 %v2891_v14, %v1295_v24 }
 0xae5   : >> { %v1316_v30 = vsel %vm1315_vm9, %v2889_v10, %v1312_v26  ;;  %v1297_v31 = vadd.f32 %v2891_v14, %v1296_v27 }
 0xae6   : >> { %v1321_v32 = vsel %vm1318_vm10, %v1320_v29, %v1316_v30 }
 0xae7   : >> { %v1329_v34 = vmul.f32 %v1321_v32, %v1255_v56  ;;  %v1301_v35 = vsel %vm1300_vm12, %v2891_v14, %v1297_v31  ;;  %v1367_v47 = vsub.f32 1.0, %v1321_v32  ;;  %v1365_v52 = vmul.f32 %v3230_v55, %v1321_v32 }
 0xae8   : >> { %v1306_v36 = vsel %vm1303_vm13, %v1305_v33, %v1301_v35 }
 0xae9   : >> { %2525 = vmatmul.msk.f32.vlgmr.msra.gmra.mxu3 %vm179_vm1, %v1329_v34  ;;  %v1328_v37 = vmul.f32 %v1306_v36, %v1253_v2  ;;  %v1366_v46 = vsub.f32 1.0, %v1306_v36  ;;  %v1364_v20 = vmul.f32 %v3234_v63, %v1306_v36 }
 0xaeb   : >> { %2524 = vmatmul.msk.f32.vlgmr.msra.gmra.mxu1 %vm179_vm1, %v1328_v37 }
 0xb68   : >> { %v1354_v40 = vpop.f32.mrf.mxu1 }
 0xb69   : >> { %v1360_v42 = vadd.f32 %v1354_v40, %v1324_v38 }
 0xb6b   : >> { %2892 = vtanh.f32 %v1360_v42 }
 0xb6c   : >> { %v1357_v44 = vpop.f32.mrf.mxu3 }
 0xb6d   : >> { %v1361_v18 = vadd.f32 %v1357_v44, %v1325_v43 }
 0xb6f   : >> { %2894 = vtanh.f32 %v1361_v18 }
 0xb71   : >> { %v2893_v19 = vpop.eup %2892 }
 0xb72   : >> { %1370 = vrot.lane.b32.xlu1 %v2893_v19, %s3272_s25 }
 0xb75   : >> { %v2895_v21 = vpop.eup %2894 }
 0xb7a   : >> { %1372 = vrot.lane.b32.xlu1 %v2895_v21, %s3272_s25 }
 0xbe4   : >> { %v1371_v48 = vpop.permute.xlu1 %1370 }
 0xbe5   : >> { %v1376_v49 = vmul.f32 %v1371_v48, %v1366_v46 }
 0xbe7   : >> { %v1378_v50 = vadd.f32 %v1376_v49, %v1364_v20 }
 0xbe9   : >> { %v2526_v63 = vclamps-f32 %v1378_v50, 10000.0  }
 0xbeb   : >> { %1386 = vrot.lane.b32.xlu2 %v2526_v63, %s3271_s19 }
 0xbec   : >> { %v1373_v51 = vpop.permute.xlu1 %1372 }
 0xbed   : >> { %v1377_v39 = vmul.f32 %v1373_v51, %v1367_v47 }
 0xbef   : >> { %v1379_v4 = vadd.f32 %v1377_v39, %v1365_v52 }
 0xbf1   : >> { %v2527_v55 = vclamps-f32 %v1379_v4, 10000.0  }
 0xbf3   : >> { %1388 = vrot.lane.b32.xlu2 %v2527_v55, %s3271_s19 }
 0xc45   : >> { %v1387_v45 = vpop.permute.xlu2 %1386 }
 0xc46   : >> { %1393 = vst.msk [vmem:[%s1392_s3] sm:$0xff] %vm179_vm1, %v1387_v45 }
 0xc4a   : > { %1240 = sbr.rel (!%p1238_p12) target bundleno = 2512 (0x9d0), region = 161 }
 0xc4d   : >> { %v1389_v53 = vpop.permute.xlu2 %1388 }
 0xc4e   : >> { %1394 = vst.msk [vmem:[%s1392_s3 + $0x8] sm:$0xff] %vm179_vm1, %v1389_v53 }
 0xc4f LB: >> { %s2528_s5 = sshll.u32 %s3258_s4, 4  ;;  %s3273_s6 = smov 16   ;;  %v1523_v3 = vld [vmem:[#allocation9 + $0xa8] sm:$0xff]  ;;  %v1522_v57 = vld [vmem:[#allocation9 + $0xa0] sm:$0xff]  ;;  %v1521_v58 = vld [vmem:[#allocation9 + $0x98] sm:$0xff]  ;;  %vm1526_vm4 = vcmask 261120   ;;  %s3258_s4 = sphi %s3854_s4, %s1400_s4   ;;  %v3254_v13 = vphi %v3714_v13, %v4020_v13   ;;  %v3250_v41 = vphi %v3730_v41, %v2272_v41   ;;  %v3246_v62 = vphi %v3846_v62, %v4001_v62   ;;  %v3242_v54 = vphi %v3844_v54, %v4006_v54  }
 0xc50   : >> { %1512 = vrot.lane.b32.xlu0 %v3254_v13, %s3273_s6  ;;  %s2359_s27 = scalar_lea.vmem [#allocation3], %s2528_s5  ;;  %s1406_s7 = scalar_lea.vmem [#allocation2], %s2528_s5  ;;  %v1520_v59 = vld [vmem:[#allocation9 + $0x90] sm:$0xff]  ;;  %v1608_v50 = vld [vmem:[#allocation9 + $0xc8] sm:$0xff]  ;;  %v1607_v52 = vld [vmem:[#allocation9 + $0xc0] sm:$0xff] }
 0xc51   : >> { %v3876_v63 = vld [vmem:[%s1406_s7 + $0x8] sm:$0xff]  ;;  %v3888_v2 = vld [vmem:[%s1406_s7] sm:$0xff]  ;;  %s3275_s8 = smov 8   ;;  %s3276_s13 = smov 112  }
 0xc52   : >> { %2536 = vmatpush.xpose.msk.msra.mxu1 %vm179_vm1, %v3876_v63  ;;  %2592 = vmatpush.xpose.msk.msra.mxu3 %vm179_vm1, %v3876_v63  ;;  %v2914_v18 = vld [vmem:[#allocation9 + $0xb0] ss:$0 sm:$0xff]  ;;  %s3277_s14 = smov 120   ;;  %s2264_s15 = scalar_lea.vmem %s3532_s17, %s3258_s4 [#allocation11] }
 0xc53   : >> { %v1609_v20 = vld [vmem:[#allocation9 + $0xd0] sm:$0xff]  ;;  %s1400_s4 = sadd.s32 1, %s3258_s4  }
 0xc54   : >> { %p1397_p8 = scmp.ge.s32.totalorder %s1400_s4, 8  }
 0xc55   : >> { %v3874_v55 = vld [vmem:[%s2359_s27 + $0x18] sm:$0xff]  ;;  %v3886_v56 = vld [vmem:[%s2359_s27 + $0x10] sm:$0xff]  ;;  %s2577_s18 = sshll.u32 (%p1397_p8), %s3318_s16, 3  ;;  %s2288_s22 = sshll.u32 (%p1397_p8), %s3532_s17, 4  ;;  %s2289_s22 = int_to_ptr.vmem [resolvable:$true] %s2288_s22 }
 0xc56   : >> { %2532 = vmatpush.xpose.msk.msra.mxu0 %vm179_vm1, %v3874_v55  ;;  %2590 = vmatpush.xpose.msk.msra.mxu2 %vm179_vm1, %v3874_v55  ;;  %s2286_s21 = scalar_lea.hbm (%p1397_p8), %s4089_s2, %s2577_s18  ;;  %s2276_s25 = scalar_lea.sflag (%p1397_p8), [#allocation8], %s3385_s29 }
 0xc57   : >> { %2537 = vmatpush.xpose.msk.msra.mxu1 %vm179_vm1, %v3888_v2  ;;  %2593 = vmatpush.xpose.msk.msra.mxu3 %vm179_vm1, %v3888_v2  ;;  %s2290_s24 = sshll.u32 (%p1397_p8), %s2286_s21, 4  ;;  %s3072_s16 = scalar_lea.hbm (%p1397_p8), %s4089_s2, 16  ;;  %s2291_s24 = int_to_ptr.hbm [resolvable:$true] %s2290_s24 }
 0xc58   : >> { %1514 = vrot.lane.b32.xlu0 %v3250_v41, %s3273_s6  ;;  %s3066_s3 = sshra.s32 (%p1397_p8), %s2291_s24, 4  ;;  %s3067_s3 = int_to_ptr.hbm [resolvable:$true] %s3066_s3 }
 0xc59   : > { %s3068_s5 = scalar_lea.hbm (%p1397_p8), %s3067_s3, 8  ;;  %p3073_p11 = scmp.lt.s32.totalorder (%p1397_p8), %s3067_s3, %s4089_s2 }
 0xc5a   : >> { %2533 = vmatpush.xpose.msk.msra.mxu0 %vm179_vm1, %v3886_v56  ;;  %2591 = vmatpush.xpose.msk.msra.mxu2 %vm179_vm1, %v3886_v56  ;;  %p3069_p7 = scmp.ne.s32.totalorder (%p1397_p8), %s3067_s3, %s3068_s5  ;;  %p3074_p0 = scmp.lt.s32.totalorder (%p1397_p8), %s3072_s16, %s3068_s5 }
 0xc5b   : >> { %2538 = vmatmul.msk.f32.vlgmr.msra.gmra.mxu1 %vm179_vm1, %v3888_v2  ;;  %2539 = vmatmul.msk.f32.vlgmr.msra.gmra.mxu3 %vm179_vm1, %v3876_v63 }
 0xc5c   : >> { %1630 = vmatpush.msrb.mxu3 %v1609_v20  ;;  %p3070_p9 = pnand (%p1397_p8), %p3069_p7, %p3354_p13  ;;  %p3075_p2 = por (%p1397_p8), %p3074_p0, %p3073_p11 }
 0xc5d   : >> { %2534 = vmatmul.msk.f32.vlgmr.msra.gmra.mxu0 %vm179_vm1, %v3886_v56  ;;  %2535 = vmatmul.msk.f32.vlgmr.msra.gmra.mxu2 %vm179_vm1, %v3874_v55 }
 0xc5e   : >> { %1545 = vmatpush.msrb.mxu2 %v1523_v3  ;;  %1631 = vmatpush.msrb.mxu3 %v1608_v50  ;;  %p3071_p10 = pneg (%p1397_p8), %p3070_p9 }
 0xc60   : >> { %1546 = vmatpush.msrb.mxu2 %v1522_v57  ;;  %1632 = vmatpush.msrb.mxu3 %v1607_v52  ;;  %p3076_p6 = pnand (%p1397_p8), %p3075_p2, %p3071_p10 }
 0xc62   : >> { %1547 = vmatpush.msrb.mxu2 %v1521_v58 }
 0xc64   : >> { %1548 = vmatpush.msrb.mxu2 %v1520_v59 }
 0xcc2   : >> { %v3908_v26 = vpop.permute.xlu0 %1512 }
 0xcca   : >> { %v3916_v42 = vpop.permute.xlu0 %1514 }
 0xcd8   : >> { %v1466_v61 = vpop.f32.mrf.mxu1 }
 0xcda   : >> { %v1437_v60 = vpop.f32.mrf.mxu0 }
 0xcdb   : >> { %v1467_v5 = vadd.f32 %v1466_v61, %v1437_v60 }
 0xcdd   : >> { %v2540_v6 = vmul.f32 -1.442695, %v1467_v5 }
 0xcde   : >> { %v1469_v7 = vpop.f32.mrf.mxu3 }
 0xcdf   : >> { %2922 = vpow2.f32 %v2540_v6 }
 0xce0   : >> { %v1440_v11 = vpop.f32.mrf.mxu2 }
 0xce1   : >> { %v1470_v8 = vadd.f32 %v1469_v7, %v1440_v11 }
 0xce3   : >> { %v2541_v1 = vmul.f32 -1.442695, %v1470_v8 }
 0xce5   : >> { %v2923_v9 = vpop.eup %2922  ;;  %2924 = vpow2.f32 %v2541_v1 }
 0xce6   : >> { %v1478_v10 = vadd.f32 1.0, %v2923_v9 }
 0xce8   : >> { %2926 = vrcp.f32 %v1478_v10  ;;  %v1491_v22 = vand.u32 2147483648, %v1478_v10  ;;  %v1489_v24 = vand.u32 2147483647, %v1478_v10  ;;  %vm1485_vm15 = vweird.f32 %v1478_v10 }
 0xcea   : >> { %v1492_v29 = vor.u32 1.1754944e-38, %v1491_v22  ;;  %vm1490_vm3 = vcmp.eq.f32.partialorder %v1489_v24, 8.507059e+37  ;;  %v1671_v24 = vld [vmem:[#allocation9 + $0x178] sm:$0xff] }
 0xceb   : >> { %v2925_v12 = vpop.eup %2924  ;;  %1675 = vrot.lane.b32.xlu0 %v1671_v24, %s3273_s6 }
 0xcec   : >> { %v1479_v14 = vadd.f32 1.0, %v2925_v12 }
 0xcee   : >> { %v2927_v15 = vpop.eup %2926  ;;  %2928 = vrcp.f32 %v1479_v14  ;;  %v1506_v33 = vand.u32 2147483648, %v1479_v14  ;;  %v1504_v36 = vand.u32 2147483647, %v1479_v14  ;;  %vm1500_vm6 = vweird.f32 %v1479_v14 }
 0xcef   : >> { %v1481_v16 = vmul.f32 %v2927_v15, %v1478_v10  ;;  %vm1486_vm14 = vweird.f32 %v2927_v15 }
 0xcf0   : >> { %vm1487_vm2 = vmor %vm1485_vm15, %vm1486_vm14  ;;  %v1507_v38 = vor.u32 1.1754944e-38, %v1506_v33  ;;  %vm1505_vm8 = vcmp.eq.f32.partialorder %v1504_v36, 8.507059e+37 }
 0xcf1   : >> { %v1482_v17 = vsub.f32 1.0, %v1481_v16 }
 0xcf3   : >> { %v1483_v23 = vmul.f32 %v2927_v15, %v1482_v17 }
 0xcf4   : >> { %v2929_v25 = vpop.eup %2928 }
 0xcf5   : >> { %v1484_v27 = vadd.f32 %v2927_v15, %v1483_v23  ;;  %v1496_v28 = vmul.f32 %v2929_v25, %v1479_v14  ;;  %vm1501_vm5 = vweird.f32 %v2929_v25 }
 0xcf6   : >> { %vm1502_vm7 = vmor %vm1500_vm6, %vm1501_vm5 }
 0xcf7   : >> { %v1488_v30 = vsel %vm1487_vm2, %v2927_v15, %v1484_v27  ;;  %v1497_v31 = vsub.f32 1.0, %v1496_v28 }
 0xcf8   : >> { %v3910_v32 = vsel %vm1490_vm3, %v1492_v29, %v1488_v30  ;;  %v2915_v30 = vld [vmem:[#allocation9 + $0xd8] ss:$0 sm:$0xff] }
 0xcf9   : >> { %v1518_v34 = vsel %vm189_vm0, %v3910_v32, %v3908_v26  ;;  %v1498_v35 = vmul.f32 %v2929_v25, %v1497_v31 }
 0xcfa   : >> { %2542 = vmatmul.msk.f32.vlgmr.msrb.gmra.mxu2 %vm1526_vm4, %v1518_v34 }
 0xcfb   : >> { %v1499_v37 = vadd.f32 %v2929_v25, %v1498_v35 }
 0xcfd   : >> { %v1503_v40 = vsel %vm1502_vm7, %v2929_v25, %v1499_v37 }
 0xcfe   : >> { %v3918_v43 = vsel %vm1505_vm8, %v1507_v38, %v1503_v40  ;;  %v1660_v38 = vld [vmem:[#allocation9 + $0x170] sm:$0xff]  ;;  %v3274_v40 = vmov 0.001  }
 0xcff   : >> { %v1519_v44 = vsel %vm189_vm0, %v3918_v43, %v3916_v42 }
 0xd02   : >> { %2543 = vmatmul.msk.f32.gmra.mxu2 %vm1526_vm4, %v1519_v44 }
 0xd5d   : >> { %v1676_v52 = vpop.permute.xlu0 %1675 }
 0xd7d   : >> { %v1550_v19 = vpop.f32.mrf.mxu2 }
 0xd7e   : >> { %v1551_v21 = vadd.f32 %v2914_v18, %v1550_v19 }
 0xd80   : >> { %v2544_v46 = vmul.f32 -1.442695, %v1551_v21 }
 0xd82   : >> { %2930 = vpow2.f32 %v2544_v46 }
 0xd85   : >> { %v1553_v48 = vpop.f32.mrf.mxu2 }
 0xd86   : >> { %v1554_v49 = vadd.f32 %v2914_v18, %v1553_v48  ;;  %v2896_v48 = vpack.i.bf16 %v3242_v54, %v3874_v55 }
 0xd88   : >> { %v2931_v47 = vpop.eup %2930  ;;  %v2545_v51 = vmul.f32 -1.442695, %v1554_v49 }
 0xd89   : >> { %v1562_v39 = vadd.f32 1.0, %v2931_v47 }
 0xd8a   : >> { %2932 = vpow2.f32 %v2545_v51 }
 0xd8b   : >> { %2934 = vrcp.f32 %v1562_v39  ;;  %v1575_v58 = vand.u32 2147483648, %v1562_v39  ;;  %v1573_v60 = vand.u32 2147483647, %v1562_v39  ;;  %vm1569_vm10 = vweird.f32 %v1562_v39 }
 0xd8d   : >> { %v1576_v6 = vor.u32 1.1754944e-38, %v1575_v58  ;;  %vm1574_vm12 = vcmp.eq.f32.partialorder %v1573_v60, 8.507059e+37  ;;  %v2901_v58 = vpack.i.bf16 %v3246_v62, %v3886_v56 }
 0xd90   : >> { %v2933_v4 = vpop.eup %2932 }
 0xd91   : >> { %v2935_v45 = vpop.eup %2934  ;;  %v1563_v53 = vadd.f32 1.0, %v2933_v4 }
 0xd92   : >> { %v1565_v3 = vmul.f32 %v2935_v45, %v1562_v39  ;;  %vm1570_vm9 = vweird.f32 %v2935_v45 }
 0xd93   : >> { %2936 = vrcp.f32 %v1563_v53  ;;  %vm1571_vm11 = vmor %vm1569_vm10, %vm1570_vm9  ;;  %v1590_v10 = vand.u32 2147483648, %v1563_v53  ;;  %v1588_v14 = vand.u32 2147483647, %v1563_v53  ;;  %vm1584_vm14 = vweird.f32 %v1563_v53 }
 0xd94   : >> { %v1566_v57 = vsub.f32 1.0, %v1565_v3 }
 0xd95   : >> { %v1591_v16 = vor.u32 1.1754944e-38, %v1590_v10  ;;  %vm1589_vm2 = vcmp.eq.f32.partialorder %v1588_v14, 8.507059e+37 }
 0xd96   : >> { %v1567_v59 = vmul.f32 %v2935_v45, %v1566_v57 }
 0xd98   : >> { %v1568_v61 = vadd.f32 %v2935_v45, %v1567_v59 }
 0xd99   : >> { %v2937_v5 = vpop.eup %2936 }
 0xd9a   : >> { %v1580_v11 = vmul.f32 %v2937_v5, %v1563_v53  ;;  %v1572_v7 = vsel %vm1571_vm11, %v2935_v45, %v1568_v61  ;;  %vm1585_vm13 = vweird.f32 %v2937_v5 }
 0xd9b   : >> { %v1577_v8 = vsel %vm1574_vm12, %v1576_v6, %v1572_v7  ;;  %vm1586_vm15 = vmor %vm1584_vm14, %vm1585_vm13  ;;  %vm1786_vm12 = vcmask 195584  }
 0xd9c   : >> { %v1581_v1 = vsub.f32 1.0, %v1580_v11  ;;  %v1594_v9 = vmul.f32 %v3254_v13, %v1577_v8  ;;  %v1606_v13 = vld [vmem:[#allocation9 + $0xb8] sm:$0xff]  ;;  %v1645_v21 = vsub.f32 1.0, %v1577_v8  ;;  %v1643_v20 = vmul.f32 %v1577_v8, %v3908_v26 }
 0xd9d   : >> { %1633 = vmatpush.msrb.mxu3 %v1606_v13 }
 0xd9e   : >> { %1598 = vrot.lane.b32.xlu1 %v1594_v9, %s3273_s6  ;;  %v1582_v12 = vmul.f32 %v2937_v5, %v1581_v1 }
 0xda0   : >> { %v1583_v15 = vadd.f32 %v2937_v5, %v1582_v12 }
 0xda2   : >> { %v1587_v17 = vsel %vm1586_vm15, %v2937_v5, %v1583_v15 }
 0xda3   : >> { %v3926_v22 = vsel %vm1589_vm2, %v1591_v16, %v1587_v17 }
 0xda4   : >> { %v1595_v23 = vmul.f32 %v3250_v41, %v3926_v22  ;;  %v1672_v41 = vld [vmem:[#allocation9 + $0x180] sm:$0xff]  ;;  %v1646_v26 = vsub.f32 1.0, %v3926_v22  ;;  %v1644_v5 = vmul.f32 %v3926_v22, %v3916_v42 }
 0xda5   : >> { %1677 = vrot.lane.b32.xlu0 %v1672_v41, %s3273_s6 }
 0xda6   : >> { %1600 = vrot.lane.b32.xlu1 %v1595_v23, %s3273_s6 }
 0xe10   : >> { %v1599_v25 = vpop.permute.xlu1 %1598 }
 0xe11   : >> { %v1604_v27 = vsel %vm189_vm0, %v3910_v32, %v1599_v25  ;;  %v1659_v32 = vld [vmem:[#allocation9 + $0x168] sm:$0xff] }
 0xe12   : >> { %2546 = vmatmul.msk.f32.vlgmr.msrb.gmra.mxu3 %vm1526_vm4, %v1604_v27 }
 0xe17   : >> { %v1678_v1 = vpop.permute.xlu0 %1677 }
 0xe18   : >> { %v1601_v28 = vpop.permute.xlu1 %1600 }
 0xe19   : >> { %v1605_v29 = vsel %vm189_vm0, %v3918_v43, %v1601_v28 }
 0xe1a   : >> { %2547 = vmatmul.msk.f32.gmra.mxu3 %vm1526_vm4, %v1605_v29 }
 0xe95   : >> { %v1635_v31 = vpop.f32.mrf.mxu3 }
 0xe96   : >> { %v1636_v33 = vadd.f32 %v2915_v30, %v1635_v31 }
 0xe98   : >> { %2938 = vtanh.f32 %v1636_v33 }
 0xe9d   : >> { %v1638_v34 = vpop.f32.mrf.mxu3 }
 0xe9e   : >> { %v2939_v35 = vpop.eup %2938  ;;  %v1639_v36 = vadd.f32 %v2915_v30, %v1638_v34 }
 0xe9f   : >> { %1649 = vrot.lane.b32.xlu2 %v2939_v35, %s3273_s6 }
 0xea0   : >> { %2940 = vtanh.f32 %v1639_v36 }
 0xea1   : >> { %2942 = vrcp.f32 %v3274_v40 }
 0xea6   : >> { %v2941_v37 = vpop.eup %2940 }
 0xea7   : >> { %1663 = vrot.lane.b32.xlu2 %v1659_v32, %s3273_s6  ;;  %1651 = vrot.lane.b32.xlu1 %v2941_v37, %s3273_s6  ;;  %v2943_v43 = vpop.eup %2942 }
 0xea8   : >> { %v1684_v44 = vmul.f32 0.001, %v2943_v43  ;;  %vm1688_vm3 = vweird.f32 %v2943_v43 }
 0xeaa   : >> { %v1685_v18 = vsub.f32 1.0, %v1684_v44 }
 0xeac   : >> { %v1686_v46 = vmul.f32 %v2943_v43, %v1685_v18 }
 0xeae   : >> { %v1687_v50 = vadd.f32 %v2943_v43, %v1686_v46  ;;  %v1783_v46 = vld [vmem:[#allocation9 + $0xf0] sm:$0xff] }
 0xeaf   : >> { %1665 = vrot.lane.b32.xlu2 %v1660_v38, %s3273_s6  ;;  %2897 = vrot.lane.b32.xlu1 %v2896_v48, %s3275_s8  ;;  %v1782_v48 = vld [vmem:[#allocation9 + $0xe8] sm:$0xff] }
 0xeb0   : >> { %v1689_v4 = vsel %vm1688_vm3, %v2943_v43, %v1687_v50  ;;  %1806 = vmatpush.msrb.mxu1 %v1783_v46 }
 0xeb2   : >> { %1807 = vmatpush.msrb.mxu1 %v1782_v48 }
 0xeb7   : >> { %2902 = vrot.lane.b32.xlu2 %v2901_v58, %s3275_s8 }
 0xebf   : >> { %1856 = vrot.lane.b32.xlu2 %v3242_v54, %s3277_s14 }
 0xef9   : >> { %v1650_v19 = vpop.permute.xlu2 %1649 }
 0xefa   : >> { %v1655_v49 = vmul.f32 %v1650_v19, %v1645_v21 }
 0xefc   : >> { %v3947_v47 = vadd.f32 %v1655_v49, %v1643_v20 }
 0xf01   : >> { %v1664_v51 = vpop.permute.xlu2 %1663 }
 0xf02   : >> { %v1669_v39 = vadd.f32 %v1664_v51, %v3947_v47  ;;  %v2916_v51 = vld [vmem:[#allocation9 + $0xf8] ss:$0 sm:$0xff] }
 0xf04   : >> { %v1681_v45 = vsub.f32 %v1669_v39, %v1676_v52 }
 0xf06   : >> { %v1690_v53 = vmul.f32 %v1689_v4, %v1681_v45 }
 0xf08   : >> { %v2548_v3 = vmul.f32 -1.442695, %v1690_v53 }
 0xf09   : >> { %v1666_v11 = vpop.permute.xlu2 %1665 }
 0xf0a   : >> { %2944 = vpow2.f32 %v2548_v3 }
 0xf10   : >> { %v2945_v55 = vpop.eup %2944 }
 0xf11   : >> { %v1698_v57 = vadd.f32 1.0, %v2945_v55  ;;  %v2903_v36 = vpop.permute.xlu2 %2902 }
 0xf12   : >> { %v2904_v40 = vunpack.i.l.bf16 %v2903_v36  ;;  %v2905_v43 = vunpack.i.h.bf16 %v2903_v36 }
 0xf13   : >> { %2946 = vrcp.f32 %v1698_v57  ;;  %v1711_v9 = vand.u32 2147483648, %v1698_v57  ;;  %v1709_v12 = vand.u32 2147483647, %v1698_v57  ;;  %vm1705_vm5 = vweird.f32 %v1698_v57 }
 0xf14   : >> { %v3969_v19 = vsel %vm179_vm1, %v3888_v2, %v2904_v40  ;;  %v1781_v2 = vld [vmem:[#allocation9 + $0xe0] sm:$0xff]  ;;  %v2917_v40 = vld [vmem:[#allocation9 + $0x118] ss:$0 sm:$0xff] }
 0xf15   : >> { %v1712_v16 = vor.u32 1.1754944e-38, %v1711_v9  ;;  %vm1710_vm7 = vcmp.eq.f32.partialorder %v1709_v12, 8.507059e+37  ;;  %v1746_v21 = vsel %vm189_vm0, %v3969_v19, %v2905_v43  ;;  %1808 = vmatpush.msrb.mxu1 %v1781_v2 }
 0xf19   : >> { %v2947_v59 = vpop.eup %2946  ;;  %v1652_v60 = vpop.permute.xlu1 %1651 }
 0xf1a   : >> { %v1656_v61 = vmul.f32 %v1652_v60, %v1646_v26  ;;  %v1701_v6 = vmul.f32 %v2947_v59, %v1698_v57  ;;  %vm1706_vm4 = vweird.f32 %v2947_v59 }
 0xf1b   : >> { %vm1707_vm6 = vmor %vm1705_vm5, %vm1706_vm4 }
 0xf1c   : >> { %v3956_v7 = vadd.f32 %v1656_v61, %v1644_v5  ;;  %v1702_v8 = vsub.f32 1.0, %v1701_v6 }
 0xf1e   : >> { %v1670_v56 = vadd.f32 %v1666_v11, %v3956_v7  ;;  %v1703_v10 = vmul.f32 %v2947_v59, %v1702_v8 }
 0xf20   : >> { %v1682_v14 = vsub.f32 %v1670_v56, %v1678_v1  ;;  %v1704_v15 = vadd.f32 %v2947_v59, %v1703_v10 }
 0xf21   : >> { %v2898_v32 = vpop.permute.xlu1 %2897 }
 0xf22   : >> { %v1691_v17 = vmul.f32 %v1689_v4, %v1682_v14  ;;  %v1708_v23 = vsel %vm1707_vm6, %v2947_v59, %v1704_v15  ;;  %v2900_v37 = vunpack.i.h.bf16 %v2898_v32  ;;  %v2899_v38 = vunpack.i.l.bf16 %v2898_v32  ;;  %v1895_v32 = vld [vmem:[#allocation9 + $0x100] sm:$0xff] }
 0xf23   : >> { %v1713_v42 = vsel %vm1710_vm7, %v1712_v16, %v1708_v23 }
 0xf24   : >> { %v2549_v22 = vmul.f32 -1.442695, %v1691_v17  ;;  %1750 = vrot.lane.b32.xlu0 %v1713_v42, %s3276_s13  ;;  %v3963_v44 = vsel %vm179_vm1, %v3876_v63, %v2899_v38 }
 0xf25   : >> { %v1747_v18 = vsel %vm189_vm0, %v3963_v44, %v2900_v37 }
 0xf26   : >> { %2948 = vpow2.f32 %v2549_v22  ;;  %1772 = vmatpush.msrb.mxu0 %v1747_v18  ;;  %v1857_v22 = vpop.permute.xlu2 %1856 }
 0xf28   : >> { %1773 = vmatpush.msrb.mxu0 %v1746_v21 }
 0xf2c   : >> { %v2949_v13 = vpop.eup %2948  ;;  %1854 = vrot.lane.b32.xlu0 %v3246_v62, %s3277_s14 }
 0xf2d   : >> { %v1699_v24 = vadd.f32 1.0, %v2949_v13 }
 0xf2f   : >> { %2950 = vrcp.f32 %v1699_v24  ;;  %v1726_v29 = vand.u32 2147483648, %v1699_v24  ;;  %v1724_v30 = vand.u32 2147483647, %v1699_v24  ;;  %vm1720_vm9 = vweird.f32 %v1699_v24 }
 0xf31   : >> { %v1727_v33 = vor.u32 1.1754944e-38, %v1726_v29  ;;  %vm1725_vm11 = vcmp.eq.f32.partialorder %v1724_v30, 8.507059e+37  ;;  %v1896_v30 = vld [vmem:[#allocation9 + $0x108] sm:$0xff] }
 0xf35   : >> { %v2951_v25 = vpop.eup %2950 }
 0xf36   : >> { %v1716_v27 = vmul.f32 %v2951_v25, %v1699_v24  ;;  %vm1721_vm8 = vweird.f32 %v2951_v25 }
 0xf37   : >> { %vm1722_vm10 = vmor %vm1720_vm9, %vm1721_vm8 }
 0xf38   : >> { %v1717_v28 = vsub.f32 1.0, %v1716_v27 }
 0xf3a   : >> { %v1718_v41 = vmul.f32 %v2951_v25, %v1717_v28 }
 0xf3c   : >> { %v1719_v31 = vadd.f32 %v2951_v25, %v1718_v41  ;;  %v1897_v41 = vld [vmem:[#allocation9 + $0x110] sm:$0xff] }
 0xf3d   : >> { %1919 = vmatpush.msra.mxu3 %v1897_v41 }
 0xf3e   : >> { %v1723_v34 = vsel %vm1722_vm10, %v2951_v25, %v1719_v31 }
 0xf3f   : >> { %v1728_v35 = vsel %vm1725_vm11, %v1727_v33, %v1723_v34  ;;  %1920 = vmatpush.msra.mxu3 %v1896_v30 }
 0xf40   : >> { %1752 = vrot.lane.b32.xlu1 %v1728_v35, %s3276_s13 }
 0xf41   : >> { %1921 = vmatpush.msra.mxu3 %v1895_v32 }
 0xf96   : >> { %v3973_v49 = vpop.permute.xlu0 %1750 }
 0xf97   : >> { %2550 = vmatmul.msk.f32.vlgmr.msrb.gmra.mxu0 %vm189_vm0, %v3973_v49 }
 0xf9e   : >> { %v1855_v23 = vpop.permute.xlu0 %1854 }
 0xfb2   : >> { %v3977_v63 = vpop.permute.xlu1 %1752 }
 0xfb3   : >> { %2551 = vmatmul.msk.f32.gmra.mxu0 %vm189_vm0, %v3977_v63 }
0x1014   : >> { %v1775_v20 = vpop.f32.mrf.mxu0 }
0x1015   : >> { %2552 = vmatmul.msk.f32.vlgmr.msrb.gmra.mxu1 %vm1786_vm12, %v1775_v20 }
0x1030   : >> { %v1778_v50 = vpop.f32.mrf.mxu0 }
0x1031   : >> { %2553 = vmatmul.msk.f32.gmra.mxu1 %vm1786_vm12, %v1778_v50 }
0x1092   : >> { %v1810_v52 = vpop.f32.mrf.mxu1 }
0x1093   : >> { %v1811_v39 = vadd.f32 %v2916_v51, %v1810_v52 }
0x1095   : >> { %v2554_v4 = vmul.f32 -1.442695, %v1811_v39 }
0x1097   : >> { %2952 = vpow2.f32 %v2554_v4 }
0x109d   : >> { %v2953_v45 = vpop.eup %2952 }
0x109e   : >> { %v1822_v53 = vadd.f32 1.0, %v2953_v45 }
0x10a0   : >> { %2954 = vrcp.f32 %v1822_v53  ;;  %v1835_v1 = vand.u32 2147483648, %v1822_v53  ;;  %vm1829_vm14 = vweird.f32 %v1822_v53  ;;  %v1833_v9 = vand.u32 2147483647, %v1822_v53 }
0x10a2   : >> { %v1836_v16 = vor.u32 1.1754944e-38, %v1835_v1  ;;  %vm1834_vm3 = vcmp.eq.f32.partialorder %v1833_v9, 8.507059e+37 }
0x10a6   : >> { %v2955_v58 = vpop.eup %2954 }
0x10a7   : >> { %v1825_v26 = vmul.f32 %v2955_v58, %v1822_v53  ;;  %vm1830_vm13 = vweird.f32 %v2955_v58  ;;  %v1989_v53 = vld [vmem:[#allocation9 + $0x188] sm:$0xff] }
0x10a8   : >> { %vm1831_vm15 = vmor %vm1829_vm14, %vm1830_vm13 }
0x10a9   : >> { %v1826_v61 = vsub.f32 1.0, %v1825_v26 }
0x10ab   : >> { %v1827_v5 = vmul.f32 %v2955_v58, %v1826_v61 }
0x10ad   : >> { %v1828_v11 = vadd.f32 %v2955_v58, %v1827_v5 }
0x10ae   : >> { %v1813_v3 = vpop.f32.mrf.mxu1 }
0x10af   : >> { %v1814_v55 = vadd.f32 %v2916_v51, %v1813_v3  ;;  %v1832_v12 = vsel %vm1831_vm15, %v2955_v58, %v1828_v11  ;;  %v1947_v51 = vld [vmem:[#allocation9 + $0x120] sm:$0xff]  ;;  %v1990_v3 = vld [vmem:[#allocation9 + $0x190] sm:$0xff]  ;;  %v2918_v58 = vld [vmem:[#allocation9 + $0x128] ss:$0 sm:$0xff] }
0x10b0   : >> { %v1837_v42 = vsel %vm1834_vm3, %v1836_v16, %v1832_v12  ;;  %1975 = vmatpush.msra.mxu0 %v1947_v51 }
0x10b1   : >> { %v2555_v57 = vmul.f32 -1.442695, %v1814_v55  ;;  %v1860_v27 = vmul.f32 %v1855_v23, %v1837_v42  ;;  %v1933_v48 = vsub.f32 1.0, %v1837_v42  ;;  %v1931_v20 = vmul.f32 %v3246_v62, %v1837_v42 }
0x10b3   : >> { %2956 = vpow2.f32 %v2555_v57 }
0x10b9   : >> { %v2957_v59 = vpop.eup %2956 }
0x10ba   : >> { %v1823_v60 = vadd.f32 1.0, %v2957_v59 }
0x10bc   : >> { %2958 = vrcp.f32 %v1823_v60  ;;  %v1850_v10 = vand.u32 2147483648, %v1823_v60  ;;  %v1848_v15 = vand.u32 2147483647, %v1823_v60  ;;  %vm1844_vm4 = vweird.f32 %v1823_v60 }
0x10be   : >> { %v1851_v13 = vor.u32 1.1754944e-38, %v1850_v10  ;;  %vm1849_vm6 = vcmp.eq.f32.partialorder %v1848_v15, 8.507059e+37  ;;  %v2011_v15 = vld [vmem:[#allocation9 + $0x130] sm:$0xff] }
0x10bf   : >> { %2035 = vmatpush.msra.mxu1 %v2011_v15 }
0x10c2   : >> { %v2959_v6 = vpop.eup %2958 }
0x10c3   : >> { %v1840_v8 = vmul.f32 %v2959_v6, %v1823_v60  ;;  %vm1845_vm2 = vweird.f32 %v2959_v6 }
0x10c4   : >> { %vm1846_vm5 = vmor %vm1844_vm4, %vm1845_vm2 }
0x10c5   : >> { %v1841_v56 = vsub.f32 1.0, %v1840_v8 }
0x10c7   : >> { %v1842_v14 = vmul.f32 %v2959_v6, %v1841_v56 }
0x10c9   : >> { %v1843_v17 = vadd.f32 %v2959_v6, %v1842_v14 }
0x10cb   : >> { %v1847_v24 = vsel %vm1846_vm5, %v2959_v6, %v1843_v17 }
0x10cc   : >> { %v1852_v25 = vsel %vm1849_vm6, %v1851_v13, %v1847_v24  ;;  %v2919_v24 = vld [vmem:[#allocation9 + $0x138] ss:$0 sm:$0xff] }
0x10cd   : >> { %v1861_v28 = vmul.f32 %v1857_v22, %v1852_v25  ;;  %v1934_v52 = vsub.f32 1.0, %v1852_v25  ;;  %v1932_v4 = vmul.f32 %v3242_v54, %v1852_v25 }
0x10cf   : >> { %v2906_v29 = vpack.i.bf16 %v1860_v27, %v1861_v28 }
0x10d1   : >> { %2907 = vrot.lane.b32.xlu1 %v2906_v29, %s3273_s6  ;;  %v2104_v29 = vld [vmem:[#allocation9 + $0x140] sm:$0xff] }
0x1143   : >> { %v2908_v31 = vpop.permute.xlu1 %2907 }
0x1144   : >> { %v2910_v33 = vunpack.i.h.bf16 %v2908_v31  ;;  %v2909_v34 = vunpack.i.l.bf16 %v2908_v31 }
0x1146   : >> { %v1871_v35 = vsel %vm189_vm0, %v3963_v44, %v2909_v34  ;;  %v1870_v36 = vsel %vm189_vm0, %v3969_v19, %v2910_v33 }
0x1147   : >> { %1886 = vmatpush.msra.mxu2 %v1871_v35 }
0x1149   : >> { %1887 = vmatpush.msra.mxu2 %v1870_v36 }
0x114a   : >> { %2556 = vmatmul.msk.f32.vlgmr.msra.gmra.mxu2 %vm189_vm0, %v3973_v49 }
0x1152   : >> { %2557 = vmatmul.msk.f32.gmra.mxu2 %vm189_vm0, %v3977_v63 }
0x11cd   : >> { %v1889_v37 = vpop.f32.mrf.mxu2 }
0x11ce   : >> { %2558 = vmatmul.msk.f32.vlgmr.msra.gmra.mxu3 %vm1786_vm12, %v1889_v37 }
0x11d5   : >> { %v1892_v38 = vpop.f32.mrf.mxu2 }
0x11d6   : >> { %2559 = vmatmul.msk.f32.gmra.mxu3 %vm1786_vm12, %v1892_v38 }
0x1251   : >> { %v1923_v43 = vpop.f32.mrf.mxu3 }
0x1252   : >> { %v1924_v44 = vadd.f32 %v2917_v40, %v1923_v43 }
0x1254   : >> { %2960 = vtanh.f32 %v1924_v44 }
0x1259   : >> { %v1926_v18 = vpop.f32.mrf.mxu3 }
0x125a   : >> { %v2961_v19 = vpop.eup %2960  ;;  %v1927_v21 = vadd.f32 %v2917_v40, %v1926_v18 }
0x125b   : >> { %1937 = vrot.lane.b32.xlu2 %v2961_v19, %s3275_s8 }
0x125c   : >> { %2962 = vtanh.f32 %v1927_v21 }
0x1262   : >> { %v2963_v46 = vpop.eup %2962 }
0x1263   : >> { %1939 = vrot.lane.b32.xlu0 %v2963_v46, %s3275_s8 }
0x126b   : >> { %1993 = vrot.lane.b32.xlu0 %v1989_v53, %s3275_s8 }
0x12b5   : >> { %v1938_v2 = vpop.permute.xlu2 %1937 }
0x12b6   : >> { %v1943_v50 = vmul.f32 %v1938_v2, %v1933_v48 }
0x12b8   : >> { %v4001_v62 = vadd.f32 %v1943_v50, %v1931_v20  }
0x12ba   : >> { %1952 = vrot.lane.b32.xlu1 %v4001_v62, %s3277_s14 }
0x12c2   : >> { %1995 = vrot.lane.b32.xlu1 %v1990_v3, %s3275_s8 }
0x12d5   : >> { %v1940_v39 = vpop.permute.xlu0 %1939 }
0x12d6   : >> { %v1944_v45 = vmul.f32 %v1940_v39, %v1934_v52 }
0x12d8   : >> { %v4006_v54 = vadd.f32 %v1944_v45, %v1932_v4  }
0x12da   : >> { %1954 = vrot.lane.b32.xlu2 %v4006_v54, %s3277_s14 }
0x12dd   : >> { %v1994_v8 = vpop.permute.xlu0 %1993 }
0x132c   : >> { %v1953_v55 = vpop.permute.xlu1 %1952 }
0x132d   : >> { %2560 = vmatmul.msk.f32.vlgmr.msra.gmra.mxu0 %vm179_vm1, %v1953_v55 }
0x1334   : >> { %v1955_v57 = vpop.permute.xlu2 %1954  ;;  %v1996_v10 = vpop.permute.xlu1 %1995 }
0x1335   : >> { %2561 = vmatmul.msk.f32.gmra.mxu0 %vm179_vm1, %v1955_v57  ;;  %v2920_v57 = vld [vmem:[#allocation9 + $0x150] ss:$0 sm:$0xff] }
0x13aa   : >> { %v1977_v26 = vpop.f32.mrf.mxu0 }
0x13ab   : >> { %v1978_v59 = vadd.f32 %v2918_v58, %v1977_v26 }
0x13ad   : >> { %v1983_v60 = vmul.f32 0.5, %v1978_v59 }
0x13af   : >> { %v1985_v61 = vmul.f32 1.442695, %v1983_v60  ;;  %v2198_v60 = vld [vmem:[#allocation9 + $0x158] sm:$0xff] }
0x13b0   : >> { %2222 = vmatpush.msrb.mxu1 %v2198_v60 }
0x13b1   : >> { %2964 = vpow2.f32 %v1985_v61 }
0x13b2   : >> { %v1980_v5 = vpop.f32.mrf.mxu0 }
0x13b3   : >> { %v1981_v6 = vadd.f32 %v2918_v58, %v1980_v5 }
0x13b5   : >> { %v1984_v11 = vmul.f32 0.5, %v1981_v6 }
0x13b7   : >> { %v2965_v1 = vpop.eup %2964  ;;  %v1987_v9 = vmul.f32 1.442695, %v1984_v11 }
0x13b8   : >> { %v1999_v56 = vmul.f32 %v2965_v1, %v1994_v8 }
0x13b9   : >> { %2966 = vpow2.f32 %v1987_v9 }
0x13ba   : >> { %2003 = vrot.lane.b32.xlu2 %v1999_v56, %s3277_s14 }
0x13bf   : >> { %v2967_v12 = vpop.eup %2966 }
0x13c0   : >> { %v2000_v14 = vmul.f32 %v2967_v12, %v1996_v10 }
0x13c2   : >> { %2005 = vrot.lane.b32.xlu0 %v2000_v14, %s3277_s14 }
0x13ca   : >> { %2269 = vrot.lane.b32.xlu0 %v3947_v47, %s3276_s13  ;;  %v2105_v47 = vld [vmem:[#allocation9 + $0x148] sm:$0xff] }
0x13cb   : >> { %2128 = vmatpush.msrb.mxu3 %v2105_v47 }
0x13cd   : >> { %2129 = vmatpush.msrb.mxu3 %v2104_v29 }
0x1414   : >> { %v2004_v16 = vpop.permute.xlu2 %2003 }
0x1415   : >> { %v2009_v17 = vadd.f32 %v2004_v16, %v1978_v59 }
0x1417   : >> { %2562 = vmatmul.msk.f32.vlgmr.msra.gmra.mxu1 %vm179_vm1, %v2009_v17 }
0x1434   : >> { %v2006_v23 = vpop.permute.xlu0 %2005 }
0x1435   : >> { %v2010_v42 = vadd.f32 %v2006_v23, %v1981_v6 }
0x1437   : >> { %2563 = vmatmul.msk.f32.gmra.mxu1 %vm179_vm1, %v2010_v42 }
0x143c   : >> { %v4020_v13 = vpop.permute.xlu0 %2269  }
0x1494   : >> { %v2037_v22 = vpop.f32.mrf.mxu1 }
0x1495   : >> { %v2038_v28 = vadd.f32 %v2919_v24, %v2037_v22 }
0x14b4   : >> { %v2040_v25 = vpop.f32.mrf.mxu1 }
0x14b5   : >> { %v2041_v27 = vadd.f32 %v2919_v24, %v2040_v25 }
0x14b7   : >> { %2057 = vmatpush.msrb.mxu2 %v2041_v27 }
0x14b9   : >> { %2058 = vmatpush.msrb.mxu2 %v2038_v28 }
0x14ba   : >> { %2564 = vmatmul.msk.f32.vlgmr.msrb.gmra.mxu2 %vm189_vm0, %v3973_v49 }
0x14c2   : >> { %2565 = vmatmul.msk.f32.gmra.mxu2 %vm189_vm0, %v3977_v63 }
0x153d   : >> { %v2060_v41 = vpop.f32.mrf.mxu2 }
0x153e   : >> { %v2566_v30 = vmul.f32 -1.442695, %v2060_v41 }
0x1540   : >> { %2968 = vpow2.f32 %v2566_v30 }
0x1545   : >> { %v2063_v31 = vpop.f32.mrf.mxu2 }
0x1546   : >> { %v2969_v33 = vpop.eup %2968  ;;  %v2567_v34 = vmul.f32 -1.442695, %v2063_v31 }
0x1547   : >> { %v2072_v35 = vadd.f32 1.0, %v2969_v33  ;;  %v3278_v33 = vmov 0  }
0x1548   : >> { %2970 = vpow2.f32 %v2567_v34  ;;  %2911 = vset.pattern.permute.xlu1 %v3278_v33  ;;  %2912 = vset.pattern.permute.xlu2 %v3278_v33  ;;  %v2921_v34 = vld [vmem:[#allocation9 + $0x160] ss:$0 sm:$0xff] }
0x1549   : >> { %2972 = vrcp.f32 %v2072_v35  ;;  %v2085_v43 = vand.u32 2147483648, %v2072_v35  ;;  %v2083_v18 = vand.u32 2147483647, %v2072_v35  ;;  %vm2079_vm8 = vweird.f32 %v2072_v35  ;;  %2913 = vset.pattern.permute.xlu0 %v3278_v33 }
0x154b   : >> { %v2086_v46 = vor.u32 1.1754944e-38, %v2085_v43  ;;  %vm2084_vm10 = vcmp.eq.f32.partialorder %v2083_v18, 8.507059e+37 }
0x154e   : >> { %v2971_v36 = vpop.eup %2970 }
0x154f   : >> { %v2973_v32 = vpop.eup %2972  ;;  %v2073_v37 = vadd.f32 1.0, %v2971_v36 }
0x1550   : >> { %v2075_v38 = vmul.f32 %v2973_v32, %v2072_v35  ;;  %vm2080_vm7 = vweird.f32 %v2973_v32 }
0x1551   : >> { %2974 = vrcp.f32 %v2073_v37  ;;  %vm2081_vm9 = vmor %vm2079_vm8, %vm2080_vm7  ;;  %v2100_v51 = vand.u32 2147483648, %v2073_v37  ;;  %v2098_v39 = vand.u32 2147483647, %v2073_v37  ;;  %vm2094_vm12 = vweird.f32 %v2073_v37 }
0x1552   : >> { %v2076_v40 = vsub.f32 1.0, %v2075_v38 }
0x1553   : >> { %v2101_v45 = vor.u32 1.1754944e-38, %v2100_v51  ;;  %vm2099_vm14 = vcmp.eq.f32.partialorder %v2098_v39, 8.507059e+37 }
0x1554   : >> { %v2077_v44 = vmul.f32 %v2973_v32, %v2076_v40 }
0x1556   : >> { %v2078_v19 = vadd.f32 %v2973_v32, %v2077_v44 }
0x1557   : >> { %v2975_v21 = vpop.eup %2974 }
0x1558   : >> { %v2082_v48 = vsel %vm2081_vm9, %v2973_v32, %v2078_v19  ;;  %v2090_v2 = vmul.f32 %v2975_v21, %v2073_v37  ;;  %vm2095_vm11 = vweird.f32 %v2975_v21  ;;  %vm2261_vm9 = vcmask 130112  }
0x1559   : >> { %v2087_v20 = vsel %vm2084_vm10, %v2086_v46, %v2082_v48  ;;  %vm2096_vm13 = vmor %vm2094_vm12, %vm2095_vm11  ;;  %vm2265_vm10 = vcmask 122880  }
0x155a   : >> { %2568 = vmatmul.msk.f32.vlgmr.msrb.gmra.mxu3 %vm189_vm0, %v2087_v20  ;;  %v2091_v50 = vsub.f32 1.0, %v2090_v2 }
0x155c   : >> { %v2092_v52 = vmul.f32 %v2975_v21, %v2091_v50 }
0x155e   : >> { %v2093_v4 = vadd.f32 %v2975_v21, %v2092_v52 }
0x1560   : >> { %v2097_v53 = vsel %vm2096_vm13, %v2975_v21, %v2093_v4 }
0x1561   : >> { %v2102_v3 = vsel %vm2099_vm14, %v2101_v45, %v2097_v53 }
0x1562   : >> { %2569 = vmatmul.msk.f32.gmra.mxu3 %vm189_vm0, %v2102_v3  ;;  %v2257_v3 = vand.u32 127, %v214_v0 }
0x15dd   : >> { %v2131_v55 = vpop.f32.mrf.mxu3 }
0x15de   : >> { %v2132_v59 = vadd.f32 %v2920_v57, %v2131_v55  ;;  %v2259_v55 = vadd.s32 4294967288, %v2257_v3 }
0x15e5   : >> { %v2134_v58 = vpop.f32.mrf.mxu3 }
0x15e6   : >> { %v2135_v26 = vadd.f32 %v2920_v57, %v2134_v58 }
0x15e8   : >> { %2151 = vmatpush.msrb.mxu0 %v2135_v26 }
0x15ea   : >> { %2152 = vmatpush.msrb.mxu0 %v2132_v59 }
0x15eb   : >> { %2570 = vmatmul.msk.f32.vlgmr.msrb.gmra.mxu0 %vm189_vm0, %v3973_v49 }
0x15f3   : >> { %2571 = vmatmul.msk.f32.gmra.mxu0 %vm189_vm0, %v3977_v63 }
0x1668   : >> { %v2154_v61 = vpop.f32.mrf.mxu0 }
0x1669   : >> { %v2572_v5 = vmul.f32 -1.442695, %v2154_v61 }
0x166b   : >> { %2976 = vpow2.f32 %v2572_v5 }
0x1670   : >> { %v2157_v6 = vpop.f32.mrf.mxu0 }
0x1671   : >> { %v2977_v11 = vpop.eup %2976  ;;  %v2573_v8 = vmul.f32 -1.442695, %v2157_v6 }
0x1672   : >> { %v2166_v1 = vadd.f32 1.0, %v2977_v11 }
0x1673   : >> { %2978 = vpow2.f32 %v2573_v8 }
0x1674   : >> { %2980 = vrcp.f32 %v2166_v1  ;;  %v2179_v14 = vand.u32 2147483648, %v2166_v1  ;;  %v2177_v63 = vand.u32 2147483647, %v2166_v1  ;;  %vm2173_vm2 = vweird.f32 %v2166_v1 }
0x1676   : >> { %v2180_v23 = vor.u32 1.1754944e-38, %v2179_v14  ;;  %vm2178_vm4 = vcmp.eq.f32.partialorder %v2177_v63, 8.507059e+37 }
0x1679   : >> { %v2979_v9 = vpop.eup %2978 }
0x167a   : >> { %v2981_v56 = vpop.eup %2980  ;;  %v2167_v10 = vadd.f32 1.0, %v2979_v9 }
0x167b   : >> { %v2169_v12 = vmul.f32 %v2981_v56, %v2166_v1  ;;  %vm2174_vm15 = vweird.f32 %v2981_v56 }
0x167c   : >> { %2982 = vrcp.f32 %v2167_v10  ;;  %vm2175_vm3 = vmor %vm2173_vm2, %vm2174_vm15  ;;  %v2194_v27 = vand.u32 2147483648, %v2167_v10  ;;  %v2192_v47 = vand.u32 2147483647, %v2167_v10  ;;  %vm2188_vm6 = vweird.f32 %v2167_v10 }
0x167d   : >> { %v2170_v49 = vsub.f32 1.0, %v2169_v12 }
0x167e   : >> { %v2195_v41 = vor.u32 1.1754944e-38, %v2194_v27  ;;  %vm2193_vm8 = vcmp.eq.f32.partialorder %v2192_v47, 8.507059e+37 }
0x167f   : >> { %v2171_v15 = vmul.f32 %v2981_v56, %v2170_v49 }
0x1681   : >> { %v2172_v16 = vadd.f32 %v2981_v56, %v2171_v15 }
0x1682   : >> { %v2983_v17 = vpop.eup %2982 }
0x1683   : >> { %v2176_v42 = vsel %vm2175_vm3, %v2981_v56, %v2172_v16  ;;  %v2184_v22 = vmul.f32 %v2983_v17, %v2167_v10  ;;  %vm2189_vm5 = vweird.f32 %v2983_v17 }
0x1684   : >> { %v2181_v24 = vsel %vm2178_vm4, %v2180_v23, %v2176_v42  ;;  %vm2190_vm7 = vmor %vm2188_vm6, %vm2189_vm5 }
0x1685   : >> { %2574 = vmatmul.msk.f32.vlgmr.msrb.gmra.mxu1 %vm179_vm1, %v2181_v24  ;;  %v2185_v25 = vsub.f32 1.0, %v2184_v22 }
0x1687   : >> { %v2186_v28 = vmul.f32 %v2983_v17, %v2185_v25 }
0x1689   : >> { %v2187_v29 = vadd.f32 %v2983_v17, %v2186_v28 }
0x168b   : >> { %v2191_v30 = vsel %vm2190_vm7, %v2983_v17, %v2187_v29 }
0x168c   : >> { %v2196_v31 = vsel %vm2193_vm8, %v2195_v41, %v2191_v30 }
0x168d   : >> { %2575 = vmatmul.msk.f32.gmra.mxu1 %vm179_vm1, %v2196_v31 }
0x1702   : >> { %v2224_v35 = vpop.f32.mrf.mxu1 }
0x1703   : >> { %v2225_v36 = vadd.f32 %v2921_v34, %v2224_v35 }
0x1705   : >> { %v2232_v32 = vand.u32 2147483647, %v2225_v36  ;;  %v2230_v50 = vmin.f32 %v2225_v36, 0.0 }
0x1707   : >> { %v2234_v37 = vsub.f32 0.0, %v2232_v32 }
0x1709   : >> { %v2236_v38 = vmul.f32 1.442695, %v2234_v37 }
0x170a   : >> { %v2227_v40 = vpop.f32.mrf.mxu1 }
0x170b   : >> { %2984 = vpow2.f32 %v2236_v38  ;;  %v2228_v43 = vadd.f32 %v2921_v34, %v2227_v40 }
0x170d   : >> { %v2233_v44 = vand.u32 2147483647, %v2228_v43  ;;  %v2231_v4 = vmin.f32 %v2228_v43, 0.0 }
0x170f   : >> { %v2235_v18 = vsub.f32 0.0, %v2233_v44 }
0x1711   : >> { %v2985_v19 = vpop.eup %2984  ;;  %v2238_v21 = vmul.f32 1.442695, %v2235_v18 }
0x1712   : >> { %v2240_v46 = vadd.f32 1.0, %v2985_v19 }
0x1713   : >> { %2986 = vpow2.f32 %v2238_v21 }
0x1714   : >> { %2988 = vlog2.f32 %v2240_v46 }
0x1719   : >> { %v2987_v48 = vpop.eup %2986 }
0x171a   : >> { %v2989_v2 = vpop.eup %2988  ;;  %v2241_v20 = vadd.f32 1.0, %v2987_v48 }
0x171b   : >> { %v2243_v51 = vmul.f32 0.6931472, %v2989_v2 }
0x171c   : >> { %2990 = vlog2.f32 %v2241_v20 }
0x171d   : >> { %v2246_v52 = vsub.f32 %v2230_v50, %v2243_v51 }
0x171f   : >> { %2251 = vperm.xlu1 %2911, %v2246_v52  }
0x1722   : >> { %v2991_v39 = vpop.eup %2990 }
0x1723   : >> { %v2245_v45 = vmul.f32 0.6931472, %v2991_v39 }
0x1725   : >> { %v2247_v53 = vsub.f32 %v2231_v4, %v2245_v45 }
0x1727   : >> { %2271 = vrot.lane.b32.xlu1 %v3956_v7, %s3276_s13  ;;  %2254 = vperm.xlu2 %2912, %v2247_v53  }
0x1781   : >> { %v2255_v57 = vpop.permute.xlu2 %2254 }
0x1782   : >> { %v2260_v26 = vperm.slane %v2255_v57, %v2259_v55 }
0x1791   : >> { %v2252_v58 = vpop.permute.xlu1 %2251 }
0x1792   : >> { %v2258_v59 = vperm.slane %v2252_v58, %v2257_v3 }
0x1794   : >> { %v2262_v60 = vsel %vm2261_vm9, %v2260_v26, %v2258_v59 }
0x1795   : >> { %2266 = vst.msk [vmem:[%s2264_s15] sm:$0x1] %vm2265_vm10, %v2262_v60  ;;  %1399 = sbr.rel (!%p1397_p8) target bundleno = 3151 (0xc4f), region = 172 }
0x1799   : >> { %v2272_v41 = vpop.permute.xlu1 %2271  }
0x179a   : > { %3079 = shalt.err (!%p3076_p6)
}
0x179b   : > { %2600 = dma.vmem_to_hbm [thread:$0]  (%p3354_p13), %s2289_s22, 128, %s2291_s24, %s2276_s25  }
0x179c PF: > { %s2302_s29 = sand.u32 1, %s3178_s9   ;;  %p4101_p1 = scmp.ge.s32.totalorder %s3190_s12, 2 }
0x179d   : > { %s2303_s17 = scalar_lea.sflag [#allocation8], %s2302_s29 }
0x179e   : > { %p2611_p3 = pnand %p4101_p1, %p3359_p4 }
0x17a0   : > { %p2612_p5 = pneg %p2611_p3 }
0x17a2   : > { %3173 = dma.done.wait (%p2612_p5), %s2303_s17, 128  }
0x17a3   : > { %3175 = vsyncadd (%p2612_p5), %s2303_s17, 4294967168  ;;  %p16_p12 = scmp.ge.s32.totalorder %s3334_s23, 4   ;;  %s4102_s9 = smov %s3182_s10 }
0x17a4   : > { %s4103_s10 = smov %s3186_s11  ;;  %s4104_s11 = smov %s3346_s26 }
0x17a5   : > { %s4105_s12 = smov %s3334_s23  ;;  %18 = sbr.rel (!%p16_p12) target bundleno = 6 (0x6), region = 183 }
0x17aa   :  { %2309 = vsyncpa [#allocation7], 1 }
0x17ab   :  { %2311 = vsyncpa [#allocation7 + $0x1], 1 }
0x17ac   :  { %2312 = vsyncpa [#allocation10], 1 }
0x17ad   :  { %2313 = vsyncpa [#allocation8], 1 }
0x17ae   :  { %2315 = vsyncpa [#allocation8 + $0x1], 1 }

</bundles_post_ra>
